<compile_context>
chip_gen: v7x
topology: tpu7x:2x2x1
jax: 0.10.0
libtpu: 0.0.40
codegen_flags: <defaults>
</compile_context>

<pallas_src>
import jax
import jax.numpy as jnp
from jax import lax
from jax.experimental import pallas as pl
from jax.experimental.pallas import tpu as pltpu

_EPS = 1e-5
# conv2 tap-group d = (kh//2)*2 + (kw//2) -> column shift (kh//2)*12 + (kw//2)
_DELTAS = (0, 1, 12, 13)
_QV = 119          # conv2 spatial width kept in-kernel (11x12 grid, cols 0..118)
_P1 = 132          # conv1 spatial positions per parity block (11 * 12)
_K1P = 256         # conv1 im2col contraction dim, zero-padded 192 -> 256


def _dqn_kernel(p1_ref, w1_ref, b1_ref, g1_ref, be1_ref,
                w2s_ref, b2_ref, g2_ref, be2_ref,
                afc1_ref, bfc1_ref, wfc2_ref, bfc2_ref, mask_ref,
                out_ref):
    f32 = jnp.float32

    # ---- conv1: W1[16,256] @ patches[256,132] per parity block, + bias, ReLU.
    w1 = w1_ref[...]
    b1 = b1_ref[...]
    acts = []
    for blk in range(4):
        y = jnp.dot(w1, p1_ref[blk], preferred_element_type=f32)        # (16,132)
        acts.append(jnp.maximum(y + b1, 0.0))

    # ---- BatchNorm2d(16): batch stats over all 4*132 = 528 pixels.
    n1 = 4.0 * _P1
    mean1 = sum(jnp.sum(a, axis=1, keepdims=True) for a in acts) / n1    # (16,1)
    var1 = sum(jnp.sum((a - mean1) ** 2, axis=1, keepdims=True) for a in acts) / n1
    scale1 = lax.rsqrt(var1 + _EPS) * g1_ref[...]                        # (16,1)
    shift1 = be1_ref[...] - mean1 * scale1
    h1 = jnp.concatenate([a * scale1 + shift1 for a in acts], axis=0)    # (64,132)

    # ---- conv2: 4 tap-group matmuls over statically shifted column windows.
    acc2 = jnp.zeros((32, _QV), f32)
    for d in range(4):
        delta = _DELTAS[d]
        acc2 = acc2 + jnp.dot(w2s_ref[d], h1[:, delta:delta + _QV],
                              preferred_element_type=f32)                # (32,119)
    a2 = jnp.maximum(acc2 + b2_ref[...], 0.0)

    # ---- BatchNorm2d(32) over the 110 valid pixels (mask kills dead columns).
    m = mask_ref[...]                                                     # (1,119)
    mean2 = jnp.sum(a2 * m, axis=1, keepdims=True) / 110.0                # (32,1)
    var2 = jnp.sum(((a2 - mean2) ** 2) * m, axis=1, keepdims=True) / 110.0
    scale2 = lax.rsqrt(var2 + _EPS) * g2_ref[...]
    shift2 = be2_ref[...] - mean2 * scale2
    h2 = a2 * scale2 + shift2                                             # (32,119)

    # ---- fc1 (+ReLU): flatten is folded into afc1's (c, j, q) layout; the
    # dead/padded columns of afc1 are zero so garbage columns contribute 0.
    t = lax.dot_general(h2[:, None, :], afc1_ref[...],
                        dimension_numbers=(((2,), (2,)), ((0,), (0,))),
                        preferred_element_type=f32)                       # (32,1,50)
    z1 = jnp.maximum(jnp.sum(t, axis=0) + bfc1_ref[...], 0.0)             # (1,50)

    # ---- fc2.
    out_ref[...] = (jnp.dot(z1, wfc2_ref[...], preferred_element_type=f32)
                    + bfc2_ref[...])


def _im2col(x_chw, k, s):
    """(C,H,W) -> (C*k*k, OH, OW); row index = c*k*k + i*k + j."""
    C, H, W = x_chw.shape
    OH = (H - k) // s + 1
    OW = (W - k) // s + 1
    cols = []
    for i in range(k):
        for j in range(k):
            cols.append(lax.slice(x_chw, (0, i, j),
                                  (C, i + s * (OH - 1) + 1, j + s * (OW - 1) + 1),
                                  (1, s, s)))
    return jnp.stack(cols, axis=1).reshape(C * k * k, OH, OW)


@jax.jit
def dqn_forward(x, params):
    """x: (1, 3, 92, 100) float32 -> (1, num_actions) float32."""
    w1, b1 = params["w1"], params["b1"]
    g1, be1 = params["g1"], params["be1"]
    w2, b2 = params["w2"], params["b2"]
    g2, be2 = params["g2"], params["be2"]
    wfc1, bfc1 = params["wfc1"], params["bfc1"]
    wfc2, bfc2 = params["wfc2"], params["bfc2"]
    num_actions = wfc2.shape[0]

    # conv1 im2col, K zero-padded 192->256, columns grouped into the four
    # (h%2, w%2) parity blocks: p1[b, k, hh*12 + wh] with b = (h%2)*2 + (w%2).
    pat1 = _im2col(x[0], 8, 4)                                    # (192, 22, 24)
    pat1 = jnp.pad(pat1, ((0, _K1P - 192), (0, 0), (0, 0)))       # (256, 22, 24)
    pat1 = pat1.reshape(_K1P, 11, 2, 12, 2).transpose(2, 4, 0, 1, 3)
    p1 = pat1.reshape(4, _K1P, _P1)
    w1p = jnp.pad(w1.reshape(16, 192), ((0, 0), (0, _K1P - 192)))  # (16, 256)

    # conv2 weights regrouped by tap half-offset d = (kh//2)*2 + (kw//2);
    # columns ordered (parity block b)*16 + ci to match the kernel's h1 rows.
    w2s = (w2.reshape(32, 16, 2, 2, 2, 2)
             .transpose(2, 4, 0, 3, 5, 1)
             .reshape(4, 32, 64))

    # fc1 weights rearranged to (c, j, q = oh*12 + ow); ow padded 11 -> 12
    # with zeros so the conv2 grid's dead columns contribute nothing.
    afc1 = wfc1.reshape(50, 32, 10, 11)
    afc1 = jnp.pad(afc1, ((0, 0), (0, 0), (0, 0), (0, 1)))
    afc1 = afc1.transpose(1, 0, 2, 3).reshape(32, 50, 120)[:, :, :_QV]

    mask2 = (jnp.arange(_QV, dtype=jnp.int32) % 12 < 11)
    mask2 = mask2.astype(jnp.float32).reshape(1, _QV)

    col = lambda v: v.reshape(-1, 1).astype(jnp.float32)
    row = lambda v: v.reshape(1, -1).astype(jnp.float32)
    inputs = (p1, w1p, col(b1), col(g1), col(be1),
              w2s, col(b2), col(g2), col(be2),
              afc1, row(bfc1), wfc2.T.astype(jnp.float32), row(bfc2), mask2)

    return pl.pallas_call(
        _dqn_kernel,
        out_shape=jax.ShapeDtypeStruct((1, num_actions), jnp.float32),
        in_specs=[pl.BlockSpec(memory_space=pltpu.MemorySpace.VMEM)] * len(inputs),
        out_specs=pl.BlockSpec(memory_space=pltpu.MemorySpace.VMEM),
    )(*inputs)


def _reference_forward(x, params, eps=_EPS):
    """Plain-JAX (XLA) reference matching the PyTorch forward in train() mode."""
    hi = lax.Precision.HIGHEST

    def conv(v, w, b, s):
        y = lax.conv_general_dilated(v, w, (s, s), "VALID",
                                     dimension_numbers=("NCHW", "OIHW", "NCHW"),
                                     precision=hi)
        return y + b[None, :, None, None]

    def bn(v, g, be):
        mean = jnp.mean(v, axis=(0, 2, 3), keepdims=True)
        var = jnp.mean((v - mean) ** 2, axis=(0, 2, 3), keepdims=True)
        return ((v - mean) * lax.rsqrt(var + eps) * g[None, :, None, None]
                + be[None, :, None, None])

    h = bn(jax.nn.relu(conv(x, params["w1"], params["b1"], 4)),
           params["g1"], params["be1"])
    h = bn(jax.nn.relu(conv(h, params["w2"], params["b2"], 2)),
           params["g2"], params["be2"])
    h = h.reshape(1, -1)
    h = jax.nn.relu(jnp.dot(h, params["wfc1"].T, precision=hi) + params["bfc1"])
    return jnp.dot(h, params["wfc2"].T, precision=hi) + params["bfc2"]


if __name__ == "__main__":
    num_actions = 4
    key = jax.random.PRNGKey(0)
    ks = jax.random.split(key, 16)

    def uni(k, shape, fan_in):
        b = float(fan_in) ** -0.5
        return jax.random.uniform(k, shape, jnp.float32, -b, b)

    params = {
        "w1": uni(ks[0], (16, 3, 8, 8), 3 * 8 * 8),
        "b1": uni(ks[1], (16,), 3 * 8 * 8),
        "g1": jnp.ones((16,), jnp.float32),
        "be1": jnp.zeros((16,), jnp.float32),
        "w2": uni(ks[2], (32, 16, 4, 4), 16 * 4 * 4),
        "b2": uni(ks[3], (32,), 16 * 4 * 4),
        "g2": jnp.ones((32,), jnp.float32),
        "be2": jnp.zeros((32,), jnp.float32),
        "wfc1": uni(ks[4], (50, 3520), 3520),
        "bfc1": uni(ks[5], (50,), 3520),
        "wfc2": uni(ks[6], (num_actions, 50), 50),
        "bfc2": uni(ks[7], (num_actions,), 50),
    }
    # Input shape is forced by Linear(3520, 50):
    # (1,3,92,100) -> conv1(k8,s4) -> (1,16,22,24) -> conv2(k4,s2) -> (1,32,10,11).
    x = jax.random.normal(ks[8], (1, 3, 92, 100), jnp.float32)

    out = jax.block_until_ready(dqn_forward(x, params))
    ref = jax.block_until_ready(_reference_forward(x, params))
    max_err = float(jnp.max(jnp.abs(out - ref)))
    if not (out.shape == (1, num_actions) and max_err < 5e-3):
        raise AssertionError(f"DQN Pallas kernel mismatch: max_err={max_err}")
    print("KERNEL_OK")
</pallas_src>

<mosaic_0001>
module attributes {stable_mosaic.version = 11 : i64} {
  func.func @_dqn_kernel(%arg0: memref<4x256x132xf32, #tpu.memory_space<vmem>>, %arg1: memref<16x256xf32, #tpu.memory_space<vmem>>, %arg2: memref<16x1xf32, #tpu.memory_space<vmem>>, %arg3: memref<16x1xf32, #tpu.memory_space<vmem>>, %arg4: memref<16x1xf32, #tpu.memory_space<vmem>>, %arg5: memref<4x32x64xf32, #tpu.memory_space<vmem>>, %arg6: memref<32x1xf32, #tpu.memory_space<vmem>>, %arg7: memref<32x1xf32, #tpu.memory_space<vmem>>, %arg8: memref<32x1xf32, #tpu.memory_space<vmem>>, %arg9: memref<32x50x119xf32, #tpu.memory_space<vmem>>, %arg10: memref<1x50xf32, #tpu.memory_space<vmem>>, %arg11: memref<50x4xf32, #tpu.memory_space<vmem>>, %arg12: memref<1x4xf32, #tpu.memory_space<vmem>>, %arg13: memref<1x119xf32, #tpu.memory_space<vmem>>, %arg14: memref<1x4xf32, #tpu.memory_space<vmem>>) attributes {dimension_semantics = [], scalar_prefetch = 0 : i64, scratch_operands = 0 : i64, tpu.core_type = #tpu.core_type<tc>} {
    %c0 = arith.constant 0 : index
    %c0_0 = arith.constant 0 : index
    %0 = vector.load %arg1[%c0, %c0_0] : memref<16x256xf32, #tpu.memory_space<vmem>>, vector<16x256xf32>
    %c0_1 = arith.constant 0 : index
    %c0_2 = arith.constant 0 : index
    %1 = vector.load %arg2[%c0_1, %c0_2] : memref<16x1xf32, #tpu.memory_space<vmem>>, vector<16x1xf32>
    %c0_3 = arith.constant 0 : index
    %c0_4 = arith.constant 0 : index
    %c0_5 = arith.constant 0 : index
    %2 = vector.load %arg0[%c0_3, %c0_4, %c0_5] : memref<4x256x132xf32, #tpu.memory_space<vmem>>, vector<1x256x132xf32>
    %3 = vector.shape_cast %2 : vector<1x256x132xf32> to vector<256x132xf32>
    %cst = arith.constant dense<0.000000e+00> : vector<16x132xf32>
    %4 = tpu.matmul %0, %3, %cst {dimension_numbers = #tpu.dot_dimension_numbers<[1], [0], [0], [1], [0, 0, 1, 1], [], []>} : vector<16x256xf32>, vector<256x132xf32>, vector<16x132xf32> -> vector<16x132xf32>
    %5 = vector.broadcast %1 : vector<16x1xf32> to vector<16x132xf32>
    %6 = arith.addf %4, %5 : vector<16x132xf32>
    %cst_6 = arith.constant 0.000000e+00 : f32
    %7 = vector.broadcast %cst_6 : f32 to vector<16x132xf32>
    %8 = arith.maximumf %6, %7 : vector<16x132xf32>
    %c1 = arith.constant 1 : index
    %c0_7 = arith.constant 0 : index
    %c0_8 = arith.constant 0 : index
    %9 = vector.load %arg0[%c1, %c0_7, %c0_8] : memref<4x256x132xf32, #tpu.memory_space<vmem>>, vector<1x256x132xf32>
    %10 = vector.shape_cast %9 : vector<1x256x132xf32> to vector<256x132xf32>
    %cst_9 = arith.constant dense<0.000000e+00> : vector<16x132xf32>
    %11 = tpu.matmul %0, %10, %cst_9 {dimension_numbers = #tpu.dot_dimension_numbers<[1], [0], [0], [1], [0, 0, 1, 1], [], []>} : vector<16x256xf32>, vector<256x132xf32>, vector<16x132xf32> -> vector<16x132xf32>
    %12 = vector.broadcast %1 : vector<16x1xf32> to vector<16x132xf32>
    %13 = arith.addf %11, %12 : vector<16x132xf32>
    %cst_10 = arith.constant 0.000000e+00 : f32
    %14 = vector.broadcast %cst_10 : f32 to vector<16x132xf32>
    %15 = arith.maximumf %13, %14 : vector<16x132xf32>
    %c2 = arith.constant 2 : index
    %c0_11 = arith.constant 0 : index
    %c0_12 = arith.constant 0 : index
    %16 = vector.load %arg0[%c2, %c0_11, %c0_12] : memref<4x256x132xf32, #tpu.memory_space<vmem>>, vector<1x256x132xf32>
    %17 = vector.shape_cast %16 : vector<1x256x132xf32> to vector<256x132xf32>
    %cst_13 = arith.constant dense<0.000000e+00> : vector<16x132xf32>
    %18 = tpu.matmul %0, %17, %cst_13 {dimension_numbers = #tpu.dot_dimension_numbers<[1], [0], [0], [1], [0, 0, 1, 1], [], []>} : vector<16x256xf32>, vector<256x132xf32>, vector<16x132xf32> -> vector<16x132xf32>
    %19 = vector.broadcast %1 : vector<16x1xf32> to vector<16x132xf32>
    %20 = arith.addf %18, %19 : vector<16x132xf32>
    %cst_14 = arith.constant 0.000000e+00 : f32
    %21 = vector.broadcast %cst_14 : f32 to vector<16x132xf32>
    %22 = arith.maximumf %20, %21 : vector<16x132xf32>
    %c3 = arith.constant 3 : index
    %c0_15 = arith.constant 0 : index
    %c0_16 = arith.constant 0 : index
    %23 = vector.load %arg0[%c3, %c0_15, %c0_16] : memref<4x256x132xf32, #tpu.memory_space<vmem>>, vector<1x256x132xf32>
    %24 = vector.shape_cast %23 : vector<1x256x132xf32> to vector<256x132xf32>
    %cst_17 = arith.constant dense<0.000000e+00> : vector<16x132xf32>
    %25 = tpu.matmul %0, %24, %cst_17 {dimension_numbers = #tpu.dot_dimension_numbers<[1], [0], [0], [1], [0, 0, 1, 1], [], []>} : vector<16x256xf32>, vector<256x132xf32>, vector<16x132xf32> -> vector<16x132xf32>
    %26 = vector.broadcast %1 : vector<16x1xf32> to vector<16x132xf32>
    %27 = arith.addf %25, %26 : vector<16x132xf32>
    %cst_18 = arith.constant 0.000000e+00 : f32
    %28 = vector.broadcast %cst_18 : f32 to vector<16x132xf32>
    %29 = arith.maximumf %27, %28 : vector<16x132xf32>
    %cst_19 = arith.constant dense<0.000000e+00> : vector<16xf32>
    %30 = vector.multi_reduction <add>, %8, %cst_19 [1] : vector<16x132xf32> to vector<16xf32>
    %31 = vector.shape_cast %30 : vector<16xf32> to vector<16x1xf32>
    %cst_20 = arith.constant 0.000000e+00 : f32
    %32 = vector.broadcast %cst_20 : f32 to vector<16x1xf32>
    %33 = arith.addf %32, %31 : vector<16x1xf32>
    %cst_21 = arith.constant dense<0.000000e+00> : vector<16xf32>
    %34 = vector.multi_reduction <add>, %15, %cst_21 [1] : vector<16x132xf32> to vector<16xf32>
    %35 = vector.shape_cast %34 : vector<16xf32> to vector<16x1xf32>
    %36 = arith.addf %33, %35 : vector<16x1xf32>
    %cst_22 = arith.constant dense<0.000000e+00> : vector<16xf32>
    %37 = vector.multi_reduction <add>, %22, %cst_22 [1] : vector<16x132xf32> to vector<16xf32>
    %38 = vector.shape_cast %37 : vector<16xf32> to vector<16x1xf32>
    %39 = arith.addf %36, %38 : vector<16x1xf32>
    %cst_23 = arith.constant dense<0.000000e+00> : vector<16xf32>
    %40 = vector.multi_reduction <add>, %29, %cst_23 [1] : vector<16x132xf32> to vector<16xf32>
    %41 = vector.shape_cast %40 : vector<16xf32> to vector<16x1xf32>
    %42 = arith.addf %39, %41 : vector<16x1xf32>
    %cst_24 = arith.constant 5.280000e+02 : f32
    %43 = vector.broadcast %cst_24 : f32 to vector<16x1xf32>
    %44 = arith.divf %42, %43 : vector<16x1xf32>
    %45 = vector.broadcast %44 : vector<16x1xf32> to vector<16x132xf32>
    %46 = arith.subf %8, %45 : vector<16x132xf32>
    %47 = arith.mulf %46, %46 : vector<16x132xf32>
    %cst_25 = arith.constant dense<0.000000e+00> : vector<16xf32>
    %48 = vector.multi_reduction <add>, %47, %cst_25 [1] : vector<16x132xf32> to vector<16xf32>
    %49 = vector.shape_cast %48 : vector<16xf32> to vector<16x1xf32>
    %cst_26 = arith.constant 0.000000e+00 : f32
    %50 = vector.broadcast %cst_26 : f32 to vector<16x1xf32>
    %51 = arith.addf %50, %49 : vector<16x1xf32>
    %52 = vector.broadcast %44 : vector<16x1xf32> to vector<16x132xf32>
    %53 = arith.subf %15, %52 : vector<16x132xf32>
    %54 = arith.mulf %53, %53 : vector<16x132xf32>
    %cst_27 = arith.constant dense<0.000000e+00> : vector<16xf32>
    %55 = vector.multi_reduction <add>, %54, %cst_27 [1] : vector<16x132xf32> to vector<16xf32>
    %56 = vector.shape_cast %55 : vector<16xf32> to vector<16x1xf32>
    %57 = arith.addf %51, %56 : vector<16x1xf32>
    %58 = vector.broadcast %44 : vector<16x1xf32> to vector<16x132xf32>
    %59 = arith.subf %22, %58 : vector<16x132xf32>
    %60 = arith.mulf %59, %59 : vector<16x132xf32>
    %cst_28 = arith.constant dense<0.000000e+00> : vector<16xf32>
    %61 = vector.multi_reduction <add>, %60, %cst_28 [1] : vector<16x132xf32> to vector<16xf32>
    %62 = vector.shape_cast %61 : vector<16xf32> to vector<16x1xf32>
    %63 = arith.addf %57, %62 : vector<16x1xf32>
    %64 = vector.broadcast %44 : vector<16x1xf32> to vector<16x132xf32>
    %65 = arith.subf %29, %64 : vector<16x132xf32>
    %66 = arith.mulf %65, %65 : vector<16x132xf32>
    %cst_29 = arith.constant dense<0.000000e+00> : vector<16xf32>
    %67 = vector.multi_reduction <add>, %66, %cst_29 [1] : vector<16x132xf32> to vector<16xf32>
    %68 = vector.shape_cast %67 : vector<16xf32> to vector<16x1xf32>
    %69 = arith.addf %63, %68 : vector<16x1xf32>
    %cst_30 = arith.constant 5.280000e+02 : f32
    %70 = vector.broadcast %cst_30 : f32 to vector<16x1xf32>
    %71 = arith.divf %69, %70 : vector<16x1xf32>
    %cst_31 = arith.constant 9.99999974E-6 : f32
    %72 = vector.broadcast %cst_31 : f32 to vector<16x1xf32>
    %73 = arith.addf %71, %72 : vector<16x1xf32>
    %74 = math.rsqrt %73 : vector<16x1xf32>
    %c0_32 = arith.constant 0 : index
    %c0_33 = arith.constant 0 : index
    %75 = vector.load %arg3[%c0_32, %c0_33] : memref<16x1xf32, #tpu.memory_space<vmem>>, vector<16x1xf32>
    %76 = arith.mulf %74, %75 : vector<16x1xf32>
    %c0_34 = arith.constant 0 : index
    %c0_35 = arith.constant 0 : index
    %77 = vector.load %arg4[%c0_34, %c0_35] : memref<16x1xf32, #tpu.memory_space<vmem>>, vector<16x1xf32>
    %78 = arith.mulf %44, %76 : vector<16x1xf32>
    %79 = arith.subf %77, %78 : vector<16x1xf32>
    %80 = vector.broadcast %76 : vector<16x1xf32> to vector<16x132xf32>
    %81 = arith.mulf %8, %80 : vector<16x132xf32>
    %82 = vector.broadcast %79 : vector<16x1xf32> to vector<16x132xf32>
    %83 = arith.addf %81, %82 : vector<16x132xf32>
    %84 = vector.broadcast %76 : vector<16x1xf32> to vector<16x132xf32>
    %85 = arith.mulf %15, %84 : vector<16x132xf32>
    %86 = vector.broadcast %79 : vector<16x1xf32> to vector<16x132xf32>
    %87 = arith.addf %85, %86 : vector<16x132xf32>
    %88 = vector.broadcast %76 : vector<16x1xf32> to vector<16x132xf32>
    %89 = arith.mulf %22, %88 : vector<16x132xf32>
    %90 = vector.broadcast %79 : vector<16x1xf32> to vector<16x132xf32>
    %91 = arith.addf %89, %90 : vector<16x132xf32>
    %92 = vector.broadcast %76 : vector<16x1xf32> to vector<16x132xf32>
    %93 = arith.mulf %29, %92 : vector<16x132xf32>
    %94 = vector.broadcast %79 : vector<16x1xf32> to vector<16x132xf32>
    %95 = arith.addf %93, %94 : vector<16x132xf32>
    %96 = tpu.concatenate %83, %87, %91, %95 in 0 : vector<16x132xf32>, vector<16x132xf32>, vector<16x132xf32>, vector<16x132xf32> -> vector<64x132xf32>
    %cst_36 = arith.constant 0.000000e+00 : f32
    %97 = vector.broadcast %cst_36 : f32 to vector<32x119xf32>
    %c0_37 = arith.constant 0 : index
    %c0_38 = arith.constant 0 : index
    %c0_39 = arith.constant 0 : index
    %98 = vector.load %arg5[%c0_37, %c0_38, %c0_39] : memref<4x32x64xf32, #tpu.memory_space<vmem>>, vector<1x32x64xf32>
    %99 = vector.shape_cast %98 : vector<1x32x64xf32> to vector<32x64xf32>
    %100 = vector.extract_strided_slice %96 {offsets = [0, 0], sizes = [64, 119], strides = [1, 1]} : vector<64x132xf32> to vector<64x119xf32>
    %cst_40 = arith.constant dense<0.000000e+00> : vector<32x119xf32>
    %101 = tpu.matmul %99, %100, %cst_40 {dimension_numbers = #tpu.dot_dimension_numbers<[1], [0], [0], [1], [0, 0, 1, 1], [], []>} : vector<32x64xf32>, vector<64x119xf32>, vector<32x119xf32> -> vector<32x119xf32>
    %102 = arith.addf %97, %101 : vector<32x119xf32>
    %c1_41 = arith.constant 1 : index
    %c0_42 = arith.constant 0 : index
    %c0_43 = arith.constant 0 : index
    %103 = vector.load %arg5[%c1_41, %c0_42, %c0_43] : memref<4x32x64xf32, #tpu.memory_space<vmem>>, vector<1x32x64xf32>
    %104 = vector.shape_cast %103 : vector<1x32x64xf32> to vector<32x64xf32>
    %105 = vector.extract_strided_slice %96 {offsets = [0, 1], sizes = [64, 119], strides = [1, 1]} : vector<64x132xf32> to vector<64x119xf32>
    %cst_44 = arith.constant dense<0.000000e+00> : vector<32x119xf32>
    %106 = tpu.matmul %104, %105, %cst_44 {dimension_numbers = #tpu.dot_dimension_numbers<[1], [0], [0], [1], [0, 0, 1, 1], [], []>} : vector<32x64xf32>, vector<64x119xf32>, vector<32x119xf32> -> vector<32x119xf32>
    %107 = arith.addf %102, %106 : vector<32x119xf32>
    %c2_45 = arith.constant 2 : index
    %c0_46 = arith.constant 0 : index
    %c0_47 = arith.constant 0 : index
    %108 = vector.load %arg5[%c2_45, %c0_46, %c0_47] : memref<4x32x64xf32, #tpu.memory_space<vmem>>, vector<1x32x64xf32>
    %109 = vector.shape_cast %108 : vector<1x32x64xf32> to vector<32x64xf32>
    %110 = vector.extract_strided_slice %96 {offsets = [0, 12], sizes = [64, 119], strides = [1, 1]} : vector<64x132xf32> to vector<64x119xf32>
    %cst_48 = arith.constant dense<0.000000e+00> : vector<32x119xf32>
    %111 = tpu.matmul %109, %110, %cst_48 {dimension_numbers = #tpu.dot_dimension_numbers<[1], [0], [0], [1], [0, 0, 1, 1], [], []>} : vector<32x64xf32>, vector<64x119xf32>, vector<32x119xf32> -> vector<32x119xf32>
    %112 = arith.addf %107, %111 : vector<32x119xf32>
    %c3_49 = arith.constant 3 : index
    %c0_50 = arith.constant 0 : index
    %c0_51 = arith.constant 0 : index
    %113 = vector.load %arg5[%c3_49, %c0_50, %c0_51] : memref<4x32x64xf32, #tpu.memory_space<vmem>>, vector<1x32x64xf32>
    %114 = vector.shape_cast %113 : vector<1x32x64xf32> to vector<32x64xf32>
    %115 = vector.extract_strided_slice %96 {offsets = [0, 13], sizes = [64, 119], strides = [1, 1]} : vector<64x132xf32> to vector<64x119xf32>
    %cst_52 = arith.constant dense<0.000000e+00> : vector<32x119xf32>
    %116 = tpu.matmul %114, %115, %cst_52 {dimension_numbers = #tpu.dot_dimension_numbers<[1], [0], [0], [1], [0, 0, 1, 1], [], []>} : vector<32x64xf32>, vector<64x119xf32>, vector<32x119xf32> -> vector<32x119xf32>
    %117 = arith.addf %112, %116 : vector<32x119xf32>
    %c0_53 = arith.constant 0 : index
    %c0_54 = arith.constant 0 : index
    %118 = vector.load %arg6[%c0_53, %c0_54] : memref<32x1xf32, #tpu.memory_space<vmem>>, vector<32x1xf32>
    %119 = vector.broadcast %118 : vector<32x1xf32> to vector<32x119xf32>
    %120 = arith.addf %117, %119 : vector<32x119xf32>
    %cst_55 = arith.constant 0.000000e+00 : f32
    %121 = vector.broadcast %cst_55 : f32 to vector<32x119xf32>
    %122 = arith.maximumf %120, %121 : vector<32x119xf32>
    %c0_56 = arith.constant 0 : index
    %c0_57 = arith.constant 0 : index
    %123 = vector.load %arg13[%c0_56, %c0_57] : memref<1x119xf32, #tpu.memory_space<vmem>>, vector<1x119xf32>
    %124 = vector.broadcast %123 : vector<1x119xf32> to vector<32x119xf32>
    %125 = arith.mulf %122, %124 : vector<32x119xf32>
    %cst_58 = arith.constant dense<0.000000e+00> : vector<32xf32>
    %126 = vector.multi_reduction <add>, %125, %cst_58 [1] : vector<32x119xf32> to vector<32xf32>
    %127 = vector.shape_cast %126 : vector<32xf32> to vector<32x1xf32>
    %cst_59 = arith.constant 1.100000e+02 : f32
    %128 = vector.broadcast %cst_59 : f32 to vector<32x1xf32>
    %129 = arith.divf %127, %128 : vector<32x1xf32>
    %130 = vector.broadcast %129 : vector<32x1xf32> to vector<32x119xf32>
    %131 = arith.subf %122, %130 : vector<32x119xf32>
    %132 = arith.mulf %131, %131 : vector<32x119xf32>
    %133 = vector.broadcast %123 : vector<1x119xf32> to vector<32x119xf32>
    %134 = arith.mulf %132, %133 : vector<32x119xf32>
    %cst_60 = arith.constant dense<0.000000e+00> : vector<32xf32>
    %135 = vector.multi_reduction <add>, %134, %cst_60 [1] : vector<32x119xf32> to vector<32xf32>
    %136 = vector.shape_cast %135 : vector<32xf32> to vector<32x1xf32>
    %cst_61 = arith.constant 1.100000e+02 : f32
    %137 = vector.broadcast %cst_61 : f32 to vector<32x1xf32>
    %138 = arith.divf %136, %137 : vector<32x1xf32>
    %cst_62 = arith.constant 9.99999974E-6 : f32
    %139 = vector.broadcast %cst_62 : f32 to vector<32x1xf32>
    %140 = arith.addf %138, %139 : vector<32x1xf32>
    %141 = math.rsqrt %140 : vector<32x1xf32>
    %c0_63 = arith.constant 0 : index
    %c0_64 = arith.constant 0 : index
    %142 = vector.load %arg7[%c0_63, %c0_64] : memref<32x1xf32, #tpu.memory_space<vmem>>, vector<32x1xf32>
    %143 = arith.mulf %141, %142 : vector<32x1xf32>
    %c0_65 = arith.constant 0 : index
    %c0_66 = arith.constant 0 : index
    %144 = vector.load %arg8[%c0_65, %c0_66] : memref<32x1xf32, #tpu.memory_space<vmem>>, vector<32x1xf32>
    %145 = arith.mulf %129, %143 : vector<32x1xf32>
    %146 = arith.subf %144, %145 : vector<32x1xf32>
    %147 = vector.broadcast %143 : vector<32x1xf32> to vector<32x119xf32>
    %148 = arith.mulf %122, %147 : vector<32x119xf32>
    %149 = vector.broadcast %146 : vector<32x1xf32> to vector<32x119xf32>
    %150 = arith.addf %148, %149 : vector<32x119xf32>
    %151 = vector.shape_cast %150 : vector<32x119xf32> to vector<32x1x119xf32>
    %c0_67 = arith.constant 0 : index
    %c0_68 = arith.constant 0 : index
    %c0_69 = arith.constant 0 : index
    %152 = vector.load %arg9[%c0_67, %c0_68, %c0_69] : memref<32x50x119xf32, #tpu.memory_space<vmem>>, vector<32x50x119xf32>
    %cst_70 = arith.constant dense<0.000000e+00> : vector<32x1x50xf32>
    %153 = tpu.matmul %151, %152, %cst_70 {dimension_numbers = #tpu.dot_dimension_numbers<[2], [2], [1], [1], [0, 0, 0, 1, 1, 1], [0], [0]>} : vector<32x1x119xf32>, vector<32x50x119xf32>, vector<32x1x50xf32> -> vector<32x1x50xf32>
    %cst_71 = arith.constant dense<0.000000e+00> : vector<1x50xf32>
    %154 = vector.multi_reduction <add>, %153, %cst_71 [0] : vector<32x1x50xf32> to vector<1x50xf32>
    %c0_72 = arith.constant 0 : index
    %c0_73 = arith.constant 0 : index
    %155 = vector.load %arg10[%c0_72, %c0_73] : memref<1x50xf32, #tpu.memory_space<vmem>>, vector<1x50xf32>
    %156 = arith.addf %154, %155 : vector<1x50xf32>
    %cst_74 = arith.constant 0.000000e+00 : f32
    %157 = vector.broadcast %cst_74 : f32 to vector<1x50xf32>
    %158 = arith.maximumf %156, %157 : vector<1x50xf32>
    %c0_75 = arith.constant 0 : index
    %c0_76 = arith.constant 0 : index
    %159 = vector.load %arg11[%c0_75, %c0_76] : memref<50x4xf32, #tpu.memory_space<vmem>>, vector<50x4xf32>
    %cst_77 = arith.constant dense<0.000000e+00> : vector<1x4xf32>
    %160 = tpu.matmul %158, %159, %cst_77 {dimension_numbers = #tpu.dot_dimension_numbers<[1], [0], [0], [1], [0, 0, 1, 1], [], []>} : vector<1x50xf32>, vector<50x4xf32>, vector<1x4xf32> -> vector<1x4xf32>
    %c0_78 = arith.constant 0 : index
    %c0_79 = arith.constant 0 : index
    %161 = vector.load %arg12[%c0_78, %c0_79] : memref<1x4xf32, #tpu.memory_space<vmem>>, vector<1x4xf32>
    %162 = arith.addf %160, %161 : vector<1x4xf32>
    %c0_80 = arith.constant 0 : index
    %c0_81 = arith.constant 0 : index
    %163 = vector.load %arg14[%c0_80, %c0_81] : memref<1x4xf32, #tpu.memory_space<vmem>>, vector<1x4xf32>
    tpu.vector_store %arg14[%c0_80, %c0_81], %162 {strides = array<i32>} : memref<1x4xf32, #tpu.memory_space<vmem>>, vector<1x4xf32>,
    return
  }
}

</mosaic_0001>

<bundles_post_ra>
// kernel: dqn_forward.1
= control target key start
LH: loop header
LB: loop body
LE: loop exit
PB: predicated region body
PF: predicated region fallthrough
CT: control target
= control target key end

     0   :  { %v7432_v47 = vmov 0   ;;  %s9915_s0 = inlined_call_operand.vmem [shape: f32[4,256,132], index: 0, kind: input, shape index: {}]   ;;  %s9916_s1 = inlined_call_operand.vmem [shape: f32[16,256], index: 1, kind: input, shape index: {}]   ;;  %s9917_s2 = inlined_call_operand.vmem [shape: f32[16,1], index: 2, kind: input, shape index: {}]   ;;  %s9918_s3 = inlined_call_operand.vmem [shape: f32[16,1], index: 3, kind: input, shape index: {}]   ;;  %s9919_s4 = inlined_call_operand.vmem [shape: f32[16,1], index: 4, kind: input, shape index: {}]   ;;  %s9920_s5 = inlined_call_operand.vmem [shape: f32[4,32,64], index: 5, kind: input, shape index: {}]   ;;  %s9921_s6 = inlined_call_operand.vmem [shape: f32[32,1], index: 6, kind: input, shape index: {}]   ;;  %s9922_s7 = inlined_call_operand.vmem [shape: f32[32,1], index: 7, kind: input, shape index: {}]   ;;  %s9923_s8 = inlined_call_operand.vmem [shape: f32[32,1], index: 8, kind: input, shape index: {}]   ;;  %s9924_s9 = inlined_call_operand.vmem [shape: f32[32,50,119], index: 9, kind: input, shape index: {}]   ;;  %s9925_s10 = inlined_call_operand.vmem [shape: f32[1,50], index: 10, kind: input, shape index: {}]   ;;  %s9926_s11 = inlined_call_operand.vmem [shape: f32[50,4], index: 11, kind: input, shape index: {}]   ;;  %s9927_s12 = inlined_call_operand.vmem [shape: f32[1,4], index: 12, kind: input, shape index: {}]   ;;  %s9928_s13 = inlined_call_operand.vmem [shape: f32[1,119], index: 13, kind: input, shape index: {}]   ;;  %s9929_s14 = inlined_call_operand.hbm [shape: f32[1,4], index: 14, kind: output, shape index: {}]  }
   0x1   :  { %v55_v0 = vld [vmem:[%s9915_s0 + $0x8] sm:$0xff]  ;;  %v57_v1 = vld [vmem:[%s9915_s0 + $0x18] sm:$0xff]  ;;  %v54_v5 = vld [vmem:[%s9915_s0] sm:$0xff]  ;;  %7293 = vset.pattern.permute.xlu0 %v7432_v47  ;;  %7294 = vset.pattern.permute.xlu1 %v7432_v47 }
   0x2   :  { %v5120_v2 = vld [vmem:[%s9915_s0 + $0x208] sm:$0xff]  ;;  %v6559_v3 = vpack.c.bf16 %v57_v1, %v55_v0  ;;  %v5122_v4 = vld [vmem:[%s9915_s0 + $0x218] sm:$0xff]  ;;  %v56_v6 = vld [vmem:[%s9915_s0 + $0x10] sm:$0xff] }
   0x3   :  { %v6623_v7 = vpack.c.bf16 %v5122_v4, %v5120_v2  ;;  %v6561_v8 = vpack.c.bf16 %v56_v6, %v54_v5  ;;  %v5119_v9 = vld [vmem:[%s9915_s0 + $0x200] sm:$0xff]  ;;  %v5121_v10 = vld [vmem:[%s9915_s0 + $0x210] sm:$0xff]  ;;  %v59_v11 = vld [vmem:[%s9915_s0 + $0x28] sm:$0xff] }
   0x4   :  { %6560 = vmatprep.subr.bf16.mxu0 %v6559_v3  ;;  %v6625_v12 = vpack.c.bf16 %v5121_v10, %v5119_v9  ;;  %v61_v13 = vld [vmem:[%s9915_s0 + $0x38] sm:$0xff]  ;;  %v5124_v14 = vld [vmem:[%s9915_s0 + $0x228] sm:$0xff]  ;;  %v58_v18 = vld [vmem:[%s9915_s0 + $0x20] sm:$0xff] }
   0x5   :  { %v5126_v15 = vld [vmem:[%s9915_s0 + $0x238] sm:$0xff]  ;;  %6624 = vmatprep.subr.bf16.mxu1 %v6623_v7  ;;  %6562 = vmatpush1.bf16.msra.mxu0 %v6561_v8  ;;  %v6563_v16 = vpack.c.bf16 %v61_v13, %v59_v11  ;;  %v60_v19 = vld [vmem:[%s9915_s0 + $0x30] sm:$0xff]  ;;  %v5123_v20 = vld [vmem:[%s9915_s0 + $0x220] sm:$0xff] }
   0x6   :  { %v6627_v17 = vpack.c.bf16 %v5126_v15, %v5124_v14  ;;  %6626 = vmatpush1.bf16.msra.mxu1 %v6625_v12  ;;  %v6565_v21 = vpack.c.bf16 %v60_v19, %v58_v18  ;;  %v5125_v22 = vld [vmem:[%s9915_s0 + $0x230] sm:$0xff]  ;;  %v63_v23 = vld [vmem:[%s9915_s0 + $0x48] sm:$0xff]  ;;  %v65_v24 = vld [vmem:[%s9915_s0 + $0x58] sm:$0xff] }
   0x7   :  { %6564 = vmatprep.subr.bf16.mxu0 %v6563_v16  ;;  %v6629_v25 = vpack.c.bf16 %v5125_v22, %v5123_v20  ;;  %v6567_v26 = vpack.c.bf16 %v65_v24, %v63_v23  ;;  %v5128_v27 = vld [vmem:[%s9915_s0 + $0x248] sm:$0xff]  ;;  %v5130_v28 = vld [vmem:[%s9915_s0 + $0x258] sm:$0xff]  ;;  %v62_v29 = vld [vmem:[%s9915_s0 + $0x40] sm:$0xff] }
   0x8   :  { %6628 = vmatprep.subr.bf16.mxu1 %v6627_v17  ;;  %v6631_v30 = vpack.c.bf16 %v5130_v28, %v5128_v27  ;;  %v64_v31 = vld [vmem:[%s9915_s0 + $0x50] sm:$0xff]  ;;  %v5127_v32 = vld [vmem:[%s9915_s0 + $0x240] sm:$0xff]  ;;  %v67_v35 = vld [vmem:[%s9915_s0 + $0x68] sm:$0xff] }
   0x9   :  { %v5129_v33 = vld [vmem:[%s9915_s0 + $0x250] sm:$0xff]  ;;  %6566 = vmatpush1.bf16.msra.mxu0 %v6565_v21  ;;  %v6569_v34 = vpack.c.bf16 %v64_v31, %v62_v29  ;;  %v69_v36 = vld [vmem:[%s9915_s0 + $0x78] sm:$0xff]  ;;  %v5132_v37 = vld [vmem:[%s9915_s0 + $0x268] sm:$0xff] }
   0xa   :  { %6630 = vmatpush1.bf16.msra.mxu1 %v6629_v25  ;;  %6568 = vmatprep.subr.bf16.mxu0 %v6567_v26  ;;  %v6633_v38 = vpack.c.bf16 %v5129_v33, %v5127_v32  ;;  %v6571_v39 = vpack.c.bf16 %v69_v36, %v67_v35  ;;  %v5134_v40 = vld [vmem:[%s9915_s0 + $0x278] sm:$0xff]  ;;  %v66_v41 = vld [vmem:[%s9915_s0 + $0x60] sm:$0xff]  ;;  %v68_v42 = vld [vmem:[%s9915_s0 + $0x70] sm:$0xff] }
   0xb   :  { %6632 = vmatprep.subr.bf16.mxu1 %v6631_v30  ;;  %v6635_v43 = vpack.c.bf16 %v5134_v40, %v5132_v37  ;;  %v5131_v44 = vld [vmem:[%s9915_s0 + $0x260] sm:$0xff]  ;;  %v5133_v45 = vld [vmem:[%s9915_s0 + $0x270] sm:$0xff]  ;;  %v71_v46 = vld [vmem:[%s9915_s0 + $0x88] sm:$0xff]  ;;  %v6573_v51 = vpack.c.bf16 %v68_v42, %v66_v41 }
   0xc   :  { %v73_v48 = vld [vmem:[%s9915_s0 + $0x98] sm:$0xff]  ;;  %v5136_v49 = vld [vmem:[%s9915_s0 + $0x288] sm:$0xff]  ;;  %v6637_v52 = vpack.c.bf16 %v5133_v45, %v5131_v44  ;;  %v70_v54 = vld [vmem:[%s9915_s0 + $0x80] sm:$0xff] }
   0xd   :  { %v5138_v50 = vld [vmem:[%s9915_s0 + $0x298] sm:$0xff]  ;;  %6570 = vmatpush1.bf16.msra.mxu0 %v6569_v34  ;;  %v6575_v53 = vpack.c.bf16 %v73_v48, %v71_v46  ;;  %v72_v55 = vld [vmem:[%s9915_s0 + $0x90] sm:$0xff]  ;;  %v5135_v56 = vld [vmem:[%s9915_s0 + $0x280] sm:$0xff] }
   0xe   :  { %6634 = vmatpush1.bf16.msra.mxu1 %v6633_v38  ;;  %6572 = vmatprep.subr.bf16.mxu0 %v6571_v39  ;;  %v6639_v57 = vpack.c.bf16 %v5138_v50, %v5136_v49  ;;  %v5137_v58 = vld [vmem:[%s9915_s0 + $0x290] sm:$0xff]  ;;  %v75_v59 = vld [vmem:[%s9915_s0 + $0xa8] sm:$0xff]  ;;  %v77_v60 = vld [vmem:[%s9915_s0 + $0xb8] sm:$0xff]  ;;  %v6577_v63 = vpack.c.bf16 %v72_v55, %v70_v54 }
   0xf   :  { %6636 = vmatprep.subr.bf16.mxu1 %v6635_v43  ;;  %v5140_v61 = vld [vmem:[%s9915_s0 + $0x2a8] sm:$0xff]  ;;  %v5142_v62 = vld [vmem:[%s9915_s0 + $0x2b8] sm:$0xff]  ;;  %v6641_v0 = vpack.c.bf16 %v5137_v58, %v5135_v56  ;;  %v6579_v1 = vpack.c.bf16 %v77_v60, %v75_v59  ;;  %v74_v2 = vld [vmem:[%s9915_s0 + $0xa0] sm:$0xff] }
  0x10   :  { %v76_v3 = vld [vmem:[%s9915_s0 + $0xb0] sm:$0xff]  ;;  %v5139_v4 = vld [vmem:[%s9915_s0 + $0x2a0] sm:$0xff]  ;;  %v6643_v5 = vpack.c.bf16 %v5142_v62, %v5140_v61  ;;  %v79_v7 = vld [vmem:[%s9915_s0 + $0xc8] sm:$0xff] }
  0x11   :  { %6574 = vmatpush1.bf16.msra.mxu0 %v6573_v51  ;;  %v5141_v6 = vld [vmem:[%s9915_s0 + $0x2b0] sm:$0xff]  ;;  %v81_v8 = vld [vmem:[%s9915_s0 + $0xd8] sm:$0xff]  ;;  %v5144_v9 = vld [vmem:[%s9915_s0 + $0x2c8] sm:$0xff]  ;;  %v6581_v11 = vpack.c.bf16 %v76_v3, %v74_v2 }
  0x12   :  { %6638 = vmatpush1.bf16.msra.mxu1 %v6637_v52  ;;  %6576 = vmatprep.subr.bf16.mxu0 %v6575_v53  ;;  %v5146_v10 = vld [vmem:[%s9915_s0 + $0x2d8] sm:$0xff]  ;;  %v6645_v12 = vpack.c.bf16 %v5141_v6, %v5139_v4  ;;  %v6583_v13 = vpack.c.bf16 %v81_v8, %v79_v7  ;;  %v78_v14 = vld [vmem:[%s9915_s0 + $0xc0] sm:$0xff]  ;;  %v80_v15 = vld [vmem:[%s9915_s0 + $0xd0] sm:$0xff] }
  0x13   :  { %6640 = vmatprep.subr.bf16.mxu1 %v6639_v57  ;;  %v5143_v16 = vld [vmem:[%s9915_s0 + $0x2c0] sm:$0xff]  ;;  %v6647_v17 = vpack.c.bf16 %v5146_v10, %v5144_v9  ;;  %v5145_v18 = vld [vmem:[%s9915_s0 + $0x2d0] sm:$0xff]  ;;  %v83_v19 = vld [vmem:[%s9915_s0 + $0xe8] sm:$0xff]  ;;  %v6585_v23 = vpack.c.bf16 %v80_v15, %v78_v14 }
  0x14   :  { %v85_v20 = vld [vmem:[%s9915_s0 + $0xf8] sm:$0xff]  ;;  %v5148_v21 = vld [vmem:[%s9915_s0 + $0x2e8] sm:$0xff]  ;;  %v6649_v24 = vpack.c.bf16 %v5145_v18, %v5143_v16  ;;  %v82_v26 = vld [vmem:[%s9915_s0 + $0xe0] sm:$0xff] }
  0x15   :  { %6578 = vmatpush1.bf16.msra.mxu0 %v6577_v63  ;;  %v5150_v22 = vld [vmem:[%s9915_s0 + $0x2f8] sm:$0xff]  ;;  %v6587_v25 = vpack.c.bf16 %v85_v20, %v83_v19  ;;  %v84_v27 = vld [vmem:[%s9915_s0 + $0xf0] sm:$0xff]  ;;  %v5147_v28 = vld [vmem:[%s9915_s0 + $0x2e0] sm:$0xff] }
  0x16   :  { %6642 = vmatpush1.bf16.msra.mxu1 %v6641_v0  ;;  %6580 = vmatprep.subr.bf16.mxu0 %v6579_v1  ;;  %v6651_v29 = vpack.c.bf16 %v5150_v22, %v5148_v21  ;;  %v5149_v30 = vld [vmem:[%s9915_s0 + $0x2f0] sm:$0xff]  ;;  %v87_v31 = vld [vmem:[%s9915_s0 + $0x108] sm:$0xff]  ;;  %v89_v32 = vld [vmem:[%s9915_s0 + $0x118] sm:$0xff]  ;;  %v6589_v35 = vpack.c.bf16 %v84_v27, %v82_v26 }
  0x17   :  { %6644 = vmatprep.subr.bf16.mxu1 %v6643_v5  ;;  %v5152_v33 = vld [vmem:[%s9915_s0 + $0x308] sm:$0xff]  ;;  %v5154_v34 = vld [vmem:[%s9915_s0 + $0x318] sm:$0xff]  ;;  %v6653_v36 = vpack.c.bf16 %v5149_v30, %v5147_v28  ;;  %v6591_v37 = vpack.c.bf16 %v89_v32, %v87_v31  ;;  %v86_v38 = vld [vmem:[%s9915_s0 + $0x100] sm:$0xff] }
  0x18   :  { %v88_v39 = vld [vmem:[%s9915_s0 + $0x110] sm:$0xff]  ;;  %v5151_v40 = vld [vmem:[%s9915_s0 + $0x300] sm:$0xff]  ;;  %v6655_v41 = vpack.c.bf16 %v5154_v34, %v5152_v33  ;;  %v91_v43 = vld [vmem:[%s9915_s0 + $0x128] sm:$0xff] }
  0x19   :  { %6582 = vmatpush1.bf16.msra.mxu0 %v6581_v11  ;;  %v5153_v42 = vld [vmem:[%s9915_s0 + $0x310] sm:$0xff]  ;;  %v93_v44 = vld [vmem:[%s9915_s0 + $0x138] sm:$0xff]  ;;  %v5156_v45 = vld [vmem:[%s9915_s0 + $0x328] sm:$0xff]  ;;  %v6593_v47 = vpack.c.bf16 %v88_v39, %v86_v38 }
  0x1a   :  { %6646 = vmatpush1.bf16.msra.mxu1 %v6645_v12  ;;  %6584 = vmatprep.subr.bf16.mxu0 %v6583_v13  ;;  %v5158_v46 = vld [vmem:[%s9915_s0 + $0x338] sm:$0xff]  ;;  %v6657_v48 = vpack.c.bf16 %v5153_v42, %v5151_v40  ;;  %v6595_v49 = vpack.c.bf16 %v93_v44, %v91_v43  ;;  %v90_v50 = vld [vmem:[%s9915_s0 + $0x120] sm:$0xff]  ;;  %v92_v51 = vld [vmem:[%s9915_s0 + $0x130] sm:$0xff] }
  0x1b   :  { %6648 = vmatprep.subr.bf16.mxu1 %v6647_v17  ;;  %v5155_v52 = vld [vmem:[%s9915_s0 + $0x320] sm:$0xff]  ;;  %v6659_v53 = vpack.c.bf16 %v5158_v46, %v5156_v45  ;;  %v5157_v54 = vld [vmem:[%s9915_s0 + $0x330] sm:$0xff]  ;;  %v95_v55 = vld [vmem:[%s9915_s0 + $0x148] sm:$0xff]  ;;  %v6597_v59 = vpack.c.bf16 %v92_v51, %v90_v50 }
  0x1c   :  { %v97_v56 = vld [vmem:[%s9915_s0 + $0x158] sm:$0xff]  ;;  %v5160_v57 = vld [vmem:[%s9915_s0 + $0x348] sm:$0xff]  ;;  %v6661_v60 = vpack.c.bf16 %v5157_v54, %v5155_v52  ;;  %v94_v62 = vld [vmem:[%s9915_s0 + $0x140] sm:$0xff] }
  0x1d   :  { %6586 = vmatpush1.bf16.msra.mxu0 %v6585_v23  ;;  %v5162_v58 = vld [vmem:[%s9915_s0 + $0x358] sm:$0xff]  ;;  %v6599_v61 = vpack.c.bf16 %v97_v56, %v95_v55  ;;  %v96_v63 = vld [vmem:[%s9915_s0 + $0x150] sm:$0xff]  ;;  %v5159_v0 = vld [vmem:[%s9915_s0 + $0x340] sm:$0xff] }
  0x1e   :  { %6650 = vmatpush1.bf16.msra.mxu1 %v6649_v24  ;;  %6588 = vmatprep.subr.bf16.mxu0 %v6587_v25  ;;  %v6663_v1 = vpack.c.bf16 %v5162_v58, %v5160_v57  ;;  %v5161_v2 = vld [vmem:[%s9915_s0 + $0x350] sm:$0xff]  ;;  %v99_v3 = vld [vmem:[%s9915_s0 + $0x168] sm:$0xff]  ;;  %v101_v4 = vld [vmem:[%s9915_s0 + $0x178] sm:$0xff]  ;;  %v6601_v7 = vpack.c.bf16 %v96_v63, %v94_v62 }
  0x1f   :  { %6652 = vmatprep.subr.bf16.mxu1 %v6651_v29  ;;  %v5164_v5 = vld [vmem:[%s9915_s0 + $0x368] sm:$0xff]  ;;  %v5166_v6 = vld [vmem:[%s9915_s0 + $0x378] sm:$0xff]  ;;  %v98_v8 = vld [vmem:[%s9915_s0 + $0x160] sm:$0xff]  ;;  %v6665_v9 = vpack.c.bf16 %v5161_v2, %v5159_v0  ;;  %v6603_v10 = vpack.c.bf16 %v101_v4, %v99_v3 }
  0x20   :  { %v100_v11 = vld [vmem:[%s9915_s0 + $0x170] sm:$0xff]  ;;  %v5163_v12 = vld [vmem:[%s9915_s0 + $0x360] sm:$0xff]  ;;  %v6667_v14 = vpack.c.bf16 %v5166_v6, %v5164_v5  ;;  %v103_v15 = vld [vmem:[%s9915_s0 + $0x188] sm:$0xff] }
  0x21   :  { %6590 = vmatpush1.bf16.msra.mxu0 %v6589_v35  ;;  %v5165_v13 = vld [vmem:[%s9915_s0 + $0x370] sm:$0xff]  ;;  %v105_v16 = vld [vmem:[%s9915_s0 + $0x198] sm:$0xff]  ;;  %v7813_v17 = vld [vmem:[%s9916_s1 + $0x8] sm:$0xff]  ;;  %v6605_v20 = vpack.c.bf16 %v100_v11, %v98_v8 }
  0x22   :  { %6654 = vmatpush1.bf16.msra.mxu1 %v6653_v36  ;;  %6592 = vmatprep.subr.bf16.mxu0 %v6591_v37  ;;  %v5168_v18 = vld [vmem:[%s9915_s0 + $0x388] sm:$0xff]  ;;  %v5170_v19 = vld [vmem:[%s9915_s0 + $0x398] sm:$0xff]  ;;  %v6669_v21 = vpack.c.bf16 %v5165_v13, %v5163_v12  ;;  %v6607_v22 = vpack.c.bf16 %v105_v16, %v103_v15  ;;  %v102_v23 = vld [vmem:[%s9915_s0 + $0x180] sm:$0xff] }
  0x23   :  { %6656 = vmatprep.subr.bf16.mxu1 %v6655_v41  ;;  %192 = vmatprep.mubr.f32.mxu0 %v7813_v17  ;;  %v104_v24 = vld [vmem:[%s9915_s0 + $0x190] sm:$0xff]  ;;  %v5167_v25 = vld [vmem:[%s9915_s0 + $0x380] sm:$0xff]  ;;  %v6671_v26 = vpack.c.bf16 %v5170_v19, %v5168_v18  ;;  %v107_v28 = vld [vmem:[%s9915_s0 + $0x1a8] sm:$0xff] }
  0x24   :  { %338 = vmatprep.mubr.f32.mxu1 %v7813_v17  ;;  %v5169_v27 = vld [vmem:[%s9915_s0 + $0x390] sm:$0xff]  ;;  %v109_v29 = vld [vmem:[%s9915_s0 + $0x1b8] sm:$0xff]  ;;  %v5172_v30 = vld [vmem:[%s9915_s0 + $0x3a8] sm:$0xff]  ;;  %v6609_v32 = vpack.c.bf16 %v104_v24, %v102_v23 }
  0x25   :  { %6594 = vmatpush1.bf16.msra.mxu0 %v6593_v47  ;;  %v5174_v31 = vld [vmem:[%s9915_s0 + $0x3b8] sm:$0xff]  ;;  %v6673_v33 = vpack.c.bf16 %v5169_v27, %v5167_v25  ;;  %v6611_v34 = vpack.c.bf16 %v109_v29, %v107_v28  ;;  %v106_v35 = vld [vmem:[%s9915_s0 + $0x1a0] sm:$0xff]  ;;  %v108_v36 = vld [vmem:[%s9915_s0 + $0x1b0] sm:$0xff] }
  0x26   :  { %6658 = vmatpush1.bf16.msra.mxu1 %v6657_v48  ;;  %6596 = vmatprep.subr.bf16.mxu0 %v6595_v49  ;;  %v5171_v37 = vld [vmem:[%s9915_s0 + $0x3a0] sm:$0xff]  ;;  %v6675_v38 = vpack.c.bf16 %v5174_v31, %v5172_v30  ;;  %v5173_v39 = vld [vmem:[%s9915_s0 + $0x3b0] sm:$0xff]  ;;  %v111_v40 = vld [vmem:[%s9915_s0 + $0x1c8] sm:$0xff]  ;;  %v6613_v44 = vpack.c.bf16 %v108_v36, %v106_v35 }
  0x27   :  { %6660 = vmatprep.subr.bf16.mxu1 %v6659_v53  ;;  %v113_v41 = vld [vmem:[%s9915_s0 + $0x1d8] sm:$0xff]  ;;  %v5176_v42 = vld [vmem:[%s9915_s0 + $0x3c8] sm:$0xff]  ;;  %v6677_v45 = vpack.c.bf16 %v5173_v39, %v5171_v37  ;;  %v110_v47 = vld [vmem:[%s9915_s0 + $0x1c0] sm:$0xff] }
  0x28   :  { %v5178_v43 = vld [vmem:[%s9915_s0 + $0x3d8] sm:$0xff]  ;;  %v6615_v46 = vpack.c.bf16 %v113_v41, %v111_v40  ;;  %v112_v48 = vld [vmem:[%s9915_s0 + $0x1d0] sm:$0xff]  ;;  %v5175_v49 = vld [vmem:[%s9915_s0 + $0x3c0] sm:$0xff] }
  0x29   :  { %6598 = vmatpush1.bf16.msra.mxu0 %v6597_v59  ;;  %v6679_v50 = vpack.c.bf16 %v5178_v43, %v5176_v42  ;;  %v5177_v51 = vld [vmem:[%s9915_s0 + $0x3d0] sm:$0xff]  ;;  %v115_v52 = vld [vmem:[%s9915_s0 + $0x1e8] sm:$0xff]  ;;  %v117_v53 = vld [vmem:[%s9915_s0 + $0x1f8] sm:$0xff]  ;;  %v6617_v56 = vpack.c.bf16 %v112_v48, %v110_v47 }
  0x2a   :  { %6662 = vmatpush1.bf16.msra.mxu1 %v6661_v60  ;;  %6600 = vmatprep.subr.bf16.mxu0 %v6599_v61  ;;  %v5180_v54 = vld [vmem:[%s9915_s0 + $0x3e8] sm:$0xff]  ;;  %v5182_v55 = vld [vmem:[%s9915_s0 + $0x3f8] sm:$0xff]  ;;  %v6681_v57 = vpack.c.bf16 %v5177_v51, %v5175_v49  ;;  %v6619_v58 = vpack.c.bf16 %v117_v53, %v115_v52  ;;  %v114_v59 = vld [vmem:[%s9915_s0 + $0x1e0] sm:$0xff] }
  0x2b   :  { %6664 = vmatprep.subr.bf16.mxu1 %v6663_v1  ;;  %v116_v60 = vld [vmem:[%s9915_s0 + $0x1f0] sm:$0xff]  ;;  %v5179_v61 = vld [vmem:[%s9915_s0 + $0x3e0] sm:$0xff]  ;;  %v6683_v62 = vpack.c.bf16 %v5182_v55, %v5180_v54  ;;  %v5184_v0 = vld [vmem:[%s9915_s0 + $0x408] sm:$0xff] }
  0x2c   :  { %v5181_v63 = vld [vmem:[%s9915_s0 + $0x3f0] sm:$0xff]  ;;  %v5186_v1 = vld [vmem:[%s9915_s0 + $0x418] sm:$0xff]  ;;  %v5248_v2 = vld [vmem:[%s9915_s0 + $0x608] sm:$0xff]  ;;  %v6621_v4 = vpack.c.bf16 %v116_v60, %v114_v59 }
  0x2d   :  { %6602 = vmatpush1.bf16.msra.mxu0 %v6601_v7  ;;  %v5250_v3 = vld [vmem:[%s9915_s0 + $0x618] sm:$0xff]  ;;  %v6685_v5 = vpack.c.bf16 %v5181_v63, %v5179_v61  ;;  %v6687_v6 = vpack.c.bf16 %v5186_v1, %v5184_v0  ;;  %v5183_v7 = vld [vmem:[%s9915_s0 + $0x400] sm:$0xff]  ;;  %v5185_v8 = vld [vmem:[%s9915_s0 + $0x410] sm:$0xff] }
  0x2e   :  { %6666 = vmatpush1.bf16.msra.mxu1 %v6665_v9  ;;  %6604 = vmatprep.subr.bf16.mxu0 %v6603_v10  ;;  %v5247_v9 = vld [vmem:[%s9915_s0 + $0x600] sm:$0xff]  ;;  %v6751_v10 = vpack.c.bf16 %v5250_v3, %v5248_v2  ;;  %v5249_v11 = vld [vmem:[%s9915_s0 + $0x610] sm:$0xff]  ;;  %v5188_v12 = vld [vmem:[%s9915_s0 + $0x428] sm:$0xff]  ;;  %v6689_v18 = vpack.c.bf16 %v5185_v8, %v5183_v7 }
  0x2f   :  { %6668 = vmatprep.subr.bf16.mxu1 %v6667_v14  ;;  %v5190_v13 = vld [vmem:[%s9915_s0 + $0x438] sm:$0xff]  ;;  %v5252_v14 = vld [vmem:[%s9915_s0 + $0x628] sm:$0xff]  ;;  %v7946_v16 = vld [vmem:[%s9916_s1] sm:$0xff]  ;;  %v6753_v19 = vpack.c.bf16 %v5249_v11, %v5247_v9 }
  0x30   :  { %v5254_v15 = vld [vmem:[%s9915_s0 + $0x638] sm:$0xff]  ;;  %v5251_v23 = vld [vmem:[%s9915_s0 + $0x620] sm:$0xff]  ;;  %v5253_v25 = vld [vmem:[%s9915_s0 + $0x630] sm:$0xff] }
  0x31   :  { %6606 = vmatpush1.bf16.msra.mxu0 %v6605_v20  ;;  %v6691_v20 = vpack.c.bf16 %v5190_v13, %v5188_v12  ;;  %v6755_v24 = vpack.c.bf16 %v5254_v15, %v5252_v14  ;;  %v5194_v27 = vld [vmem:[%s9915_s0 + $0x458] sm:$0xff]  ;;  %v5256_v28 = vld [vmem:[%s9915_s0 + $0x648] sm:$0xff]  ;;  %v6757_v31 = vpack.c.bf16 %v5253_v25, %v5251_v23  ;;  %v5255_v35 = vld [vmem:[%s9915_s0 + $0x640] sm:$0xff] }
  0x32   :  { %6670 = vmatpush1.bf16.msra.mxu1 %v6669_v21  ;;  %6608 = vmatprep.subr.bf16.mxu0 %v6607_v22  ;;  %v5187_v21 = vld [vmem:[%s9915_s0 + $0x420] sm:$0xff]  ;;  %v5189_v22 = vld [vmem:[%s9915_s0 + $0x430] sm:$0xff]  ;;  %v5258_v29 = vld [vmem:[%s9915_s0 + $0x658] sm:$0xff] }
  0x33   :  { %6672 = vmatprep.subr.bf16.mxu1 %v6671_v26  ;;  %v5192_v26 = vld [vmem:[%s9915_s0 + $0x448] sm:$0xff]  ;;  %v6693_v30 = vpack.c.bf16 %v5189_v22, %v5187_v21  ;;  %v6759_v36 = vpack.c.bf16 %v5258_v29, %v5256_v28  ;;  %v5257_v37 = vld [vmem:[%s9915_s0 + $0x650] sm:$0xff]  ;;  %v5198_v39 = vld [vmem:[%s9915_s0 + $0x478] sm:$0xff] }
  0x34   :  { %v5260_v40 = vld [vmem:[%s9915_s0 + $0x668] sm:$0xff]  ;;  %v5262_v41 = vld [vmem:[%s9915_s0 + $0x678] sm:$0xff]  ;;  %v5195_v43 = vld [vmem:[%s9915_s0 + $0x460] sm:$0xff] }
  0x35   :  { %6610 = vmatpush1.bf16.msra.mxu0 %v6609_v32  ;;  %v6695_v32 = vpack.c.bf16 %v5194_v27, %v5192_v26  ;;  %v5259_v47 = vld [vmem:[%s9915_s0 + $0x660] sm:$0xff]  ;;  %v5261_v48 = vld [vmem:[%s9915_s0 + $0x670] sm:$0xff]  ;;  %v6763_v49 = vpack.c.bf16 %v5262_v41, %v5260_v40  ;;  %v5202_v51 = vld [vmem:[%s9915_s0 + $0x498] sm:$0xff] }
  0x36   :  { %6674 = vmatpush1.bf16.msra.mxu1 %v6673_v33  ;;  %6612 = vmatprep.subr.bf16.mxu0 %v6611_v34  ;;  %v5191_v33 = vld [vmem:[%s9915_s0 + $0x440] sm:$0xff]  ;;  %v5193_v34 = vld [vmem:[%s9915_s0 + $0x450] sm:$0xff]  ;;  %v5264_v52 = vld [vmem:[%s9915_s0 + $0x688] sm:$0xff] }
  0x37   :  { %6676 = vmatprep.subr.bf16.mxu1 %v6675_v38  ;;  %v5196_v38 = vld [vmem:[%s9915_s0 + $0x468] sm:$0xff]  ;;  %v6697_v42 = vpack.c.bf16 %v5193_v34, %v5191_v33  ;;  %v5266_v53 = vld [vmem:[%s9915_s0 + $0x698] sm:$0xff]  ;;  %v8030_v55 = vld [vmem:[%s9916_s1 + $0x10] sm:$0xff] }
  0x38   :  { %v8025_v54 = vld [vmem:[%s9916_s1 + $0x18] sm:$0xff]  ;;  %v5199_v59 = vld [vmem:[%s9915_s0 + $0x480] sm:$0xff]  ;;  %v5201_v60 = vld [vmem:[%s9915_s0 + $0x490] sm:$0xff] }
  0x39   :  { %6614 = vmatpush1.bf16.msra.mxu0 %v6613_v44  ;;  %v6761_v44 = vpack.c.bf16 %v5257_v37, %v5255_v35  ;;  %v5263_v61 = vld [vmem:[%s9915_s0 + $0x680] sm:$0xff]  ;;  %v5265_v63 = vld [vmem:[%s9915_s0 + $0x690] sm:$0xff]  ;;  %v5204_v0 = vld [vmem:[%s9915_s0 + $0x4a8] sm:$0xff] }
  0x3a   :  { %6678 = vmatpush1.bf16.msra.mxu1 %v6677_v45  ;;  %6616 = vmatprep.subr.bf16.mxu0 %v6615_v46  ;;  %v6699_v45 = vpack.c.bf16 %v5198_v39, %v5196_v38  ;;  %v5197_v46 = vld [vmem:[%s9915_s0 + $0x470] sm:$0xff]  ;;  %v5206_v1 = vld [vmem:[%s9915_s0 + $0x4b8] sm:$0xff]  ;;  %v5268_v2 = vld [vmem:[%s9915_s0 + $0x6a8] sm:$0xff] }
  0x3b   :  { %6680 = vmatprep.subr.bf16.mxu1 %v6679_v50  ;;  %v5200_v50 = vld [vmem:[%s9915_s0 + $0x488] sm:$0xff]  ;;  %v5270_v3 = vld [vmem:[%s9915_s0 + $0x6b8] sm:$0xff]  ;;  %v5203_v7 = vld [vmem:[%s9915_s0 + $0x4a0] sm:$0xff] }
  0x3c   :  { %v5205_v8 = vld [vmem:[%s9915_s0 + $0x4b0] sm:$0xff]  ;;  %v5267_v9 = vld [vmem:[%s9915_s0 + $0x6a0] sm:$0xff]  ;;  %v5208_v12 = vld [vmem:[%s9915_s0 + $0x4c8] sm:$0xff] }
  0x3d   :  { %6618 = vmatpush1.bf16.msra.mxu0 %v6617_v56  ;;  %v6701_v56 = vpack.c.bf16 %v5197_v46, %v5195_v43  ;;  %v5269_v11 = vld [vmem:[%s9915_s0 + $0x6b0] sm:$0xff]  ;;  %v5210_v13 = vld [vmem:[%s9915_s0 + $0x4d8] sm:$0xff]  ;;  %v5272_v14 = vld [vmem:[%s9915_s0 + $0x6c8] sm:$0xff] }
  0x3e   :  { %6682 = vmatpush1.bf16.msra.mxu1 %v6681_v57  ;;  %6620 = vmatprep.subr.bf16.mxu0 %v6619_v58  ;;  %v6765_v57 = vpack.c.bf16 %v5261_v48, %v5259_v47  ;;  %v6703_v58 = vpack.c.bf16 %v5202_v51, %v5200_v50  ;;  %v5274_v15 = vld [vmem:[%s9915_s0 + $0x6d8] sm:$0xff]  ;;  %v6711_v21 = vpack.c.bf16 %v5210_v13, %v5208_v12  ;;  %v5271_v22 = vld [vmem:[%s9915_s0 + $0x6c0] sm:$0xff]  ;;  %v5273_v23 = vld [vmem:[%s9915_s0 + $0x6d0] sm:$0xff] }
  0x3f   :  { %6684 = vmatprep.subr.bf16.mxu1 %v6683_v62  ;;  %v6767_v62 = vpack.c.bf16 %v5266_v53, %v5264_v52  ;;  %v5212_v25 = vld [vmem:[%s9915_s0 + $0x4e8] sm:$0xff]  ;;  %v5214_v26 = vld [vmem:[%s9915_s0 + $0x4f8] sm:$0xff]  ;;  %v52_v27 = vld [vmem:[%s9917_s2] sm:$0xff] }
  0x40   :  { %v5276_v28 = vld [vmem:[%s9915_s0 + $0x6e8] sm:$0xff]  ;;  %v5278_v29 = vld [vmem:[%s9915_s0 + $0x6f8] sm:$0xff]  ;;  %120 = vperm.xlu0 %7293, %v52_v27  }
  0x41   :  { %6622 = vmatpush1.bf16.msra.mxu0 %v6621_v4  ;;  %v6705_v4 = vpack.c.bf16 %v5201_v60, %v5199_v59 }
  0x42   :  { %6686 = vmatpush1.bf16.msra.mxu1 %v6685_v5  ;;  %6688 = vmatprep.subr.bf16.mxu0 %v6687_v6  ;;  %v6769_v5 = vpack.c.bf16 %v5265_v63, %v5263_v61  ;;  %v6707_v6 = vpack.c.bf16 %v5206_v1, %v5204_v0 }
  0x43   :  { %6752 = vmatprep.subr.bf16.mxu1 %v6751_v10  ;;  %v6771_v10 = vpack.c.bf16 %v5270_v3, %v5268_v2 }
  0x44   :  { %193 = vmatmul.mubr.f32.vlgmr.msra.gmra.mrb[0].mxu0 %v7946_v16 }
  0x45   :  { %339 = vmatmul.mubr.f32.vlgmr.msra.gmra.mrb[0].mxu1 %v7946_v16  ;;  %6690 = vmatpush1.bf16.msra.mxu0 %v6689_v18  ;;  %v6709_v18 = vpack.c.bf16 %v5205_v8, %v5203_v7 }
  0x46   :  { %6754 = vmatpush1.bf16.msra.mxu1 %v6753_v19  ;;  %6692 = vmatprep.subr.bf16.mxu0 %v6691_v20  ;;  %v5207_v19 = vld [vmem:[%s9915_s0 + $0x4c0] sm:$0xff]  ;;  %v6773_v20 = vpack.c.bf16 %v5269_v11, %v5267_v9 }
  0x47   :  { %6756 = vmatprep.subr.bf16.mxu1 %v6755_v24  ;;  %198 = vmatprep.mubr.f32.mxu0 %v8025_v54  ;;  %v6775_v24 = vpack.c.bf16 %v5274_v15, %v5272_v14 }
  0x48   :  { %199 = vmatmul.mubr.f32.gmra.mrb[2].mxu0 %v8030_v55  ;;  %344 = vmatprep.mubr.f32.mxu1 %v8025_v54 }
  0x49   :  { %6694 = vmatpush1.bf16.msra.mxu0 %v6693_v30  ;;  %484 = vmatprep.mubr.f32.mxu0 %v7813_v17 }
  0x4a   :  { %6758 = vmatpush1.bf16.msra.mxu1 %v6757_v31  ;;  %6696 = vmatprep.subr.bf16.mxu0 %v6695_v32 }
  0x4b   :  { %6760 = vmatprep.subr.bf16.mxu1 %v6759_v36  ;;  %345 = vmatmul.mubr.f32.gmra.mrb[2].mxu1 %v8030_v55 }
  0x4c   :  { %630 = vmatprep.mubr.f32.mxu1 %v7813_v17  ;;  %v5209_v17 = vld [vmem:[%s9915_s0 + $0x4d0] sm:$0xff] }
  0x4d   :  { %6698 = vmatpush1.bf16.msra.mxu0 %v6697_v42 }
  0x4e   :  { %6762 = vmatpush1.bf16.msra.mxu1 %v6761_v44  ;;  %6700 = vmatprep.subr.bf16.mxu0 %v6699_v45 }
  0x4f   :  { %6764 = vmatprep.subr.bf16.mxu1 %v6763_v49 }
  0x51   :  { %6702 = vmatpush1.bf16.msra.mxu0 %v6701_v56 }
  0x52   :  { %6766 = vmatpush1.bf16.msra.mxu1 %v6765_v57  ;;  %6704 = vmatprep.subr.bf16.mxu0 %v6703_v58 }
  0x53   :  { %6768 = vmatprep.subr.bf16.mxu1 %v6767_v62 }
  0x55   :  { %6706 = vmatpush1.bf16.msra.mxu0 %v6705_v4 }
  0x56   :  { %6770 = vmatpush1.bf16.msra.mxu1 %v6769_v5  ;;  %6708 = vmatprep.subr.bf16.mxu0 %v6707_v6 }
  0x57   :  { %6772 = vmatprep.subr.bf16.mxu1 %v6771_v10 }
  0x58   :  { %19 = vsyncpa [#allocation3], 0  ;;  %v6713_v30 = vpack.c.bf16 %v5209_v17, %v5207_v19  ;;  %v53_v31 = vld [vmem:[%s9917_s2 + $0x8] sm:$0xff]  ;;  %v6777_v32 = vpack.c.bf16 %v5273_v23, %v5271_v22  ;;  %v6715_v33 = vpack.c.bf16 %v5214_v26, %v5212_v25  ;;  %v5211_v34 = vld [vmem:[%s9915_s0 + $0x4e0] sm:$0xff]  ;;  %v6779_v37 = vpack.c.bf16 %v5278_v29, %v5276_v28  ;;  %s7434_s30 = smov 116   ;;  %s7435_s15 = smov 115  }
  0x59   :  { %6710 = vmatpush1.bf16.msra.mxu0 %v6709_v18  ;;  %v5213_v35 = vld [vmem:[%s9915_s0 + $0x4f0] sm:$0xff]  ;;  %v5275_v36 = vld [vmem:[%s9915_s0 + $0x6e0] sm:$0xff]  ;;  %v5216_v39 = vld [vmem:[%s9915_s0 + $0x508] sm:$0xff]  ;;  %125 = vperm.xlu0 %7293, %v53_v31   ;;  %vm647_vm0 = vcmask 31744   ;;  %vm872_vm1 = vcmask 523264   ;;  %vm1112_vm2 = vcmask 949248  }
  0x5a   :  { %6774 = vmatpush1.bf16.msra.mxu1 %v6773_v20  ;;  %6712 = vmatprep.subr.bf16.mxu0 %v6711_v21  ;;  %v5277_v38 = vld [vmem:[%s9915_s0 + $0x6f0] sm:$0xff]  ;;  %v5218_v40 = vld [vmem:[%s9915_s0 + $0x518] sm:$0xff]  ;;  %v5280_v41 = vld [vmem:[%s9915_s0 + $0x708] sm:$0xff]  ;;  %v6717_v43 = vpack.c.bf16 %v5213_v35, %v5211_v34  ;;  %vm1267_vm3 = vcmask 941056   ;;  %vm1428_vm4 = vcmask 973824   ;;  %vm7438_vm6 = vmmov 0  }
  0x5b   :  { %6776 = vmatprep.subr.bf16.mxu1 %v6775_v24  ;;  %v5282_v42 = vld [vmem:[%s9915_s0 + $0x718] sm:$0xff]  ;;  %v6781_v44 = vpack.c.bf16 %v5277_v38, %v5275_v36  ;;  %v6719_v45 = vpack.c.bf16 %v5218_v40, %v5216_v39  ;;  %v5215_v46 = vld [vmem:[%s9915_s0 + $0x500] sm:$0xff]  ;;  %v5217_v47 = vld [vmem:[%s9915_s0 + $0x510] sm:$0xff]  ;;  %vm4950_vm7 = vcmask 401408   ;;  %vm5029_vm8 = vcmask 1041408  }
  0x5c   :  { %v5279_v48 = vld [vmem:[%s9915_s0 + $0x700] sm:$0xff]  ;;  %v6783_v49 = vpack.c.bf16 %v5282_v42, %v5280_v41  ;;  %v5281_v50 = vld [vmem:[%s9915_s0 + $0x710] sm:$0xff]  ;;  %v5220_v51 = vld [vmem:[%s9915_s0 + $0x528] sm:$0xff]  ;;  %v6721_v57 = vpack.c.bf16 %v5217_v47, %v5215_v46  ;;  %vm5025_vm9 = vcmask 408576   ;;  %vm5103_vm10 = vcmask 24576  }
  0x5d   :  { %6714 = vmatpush1.bf16.msra.mxu0 %v6713_v30  ;;  %v5222_v52 = vld [vmem:[%s9915_s0 + $0x538] sm:$0xff]  ;;  %v5284_v53 = vld [vmem:[%s9915_s0 + $0x728] sm:$0xff]  ;;  %v6785_v58 = vpack.c.bf16 %v5281_v50, %v5279_v48  ;;  %v5219_v60 = vld [vmem:[%s9915_s0 + $0x520] sm:$0xff] }
  0x5e   :  { %6778 = vmatpush1.bf16.msra.mxu1 %v6777_v32  ;;  %6716 = vmatprep.subr.bf16.mxu0 %v6715_v33  ;;  %v5286_v56 = vld [vmem:[%s9915_s0 + $0x738] sm:$0xff]  ;;  %v6723_v59 = vpack.c.bf16 %v5222_v52, %v5220_v51  ;;  %v5221_v61 = vld [vmem:[%s9915_s0 + $0x530] sm:$0xff]  ;;  %v5283_v62 = vld [vmem:[%s9915_s0 + $0x720] sm:$0xff] }
  0x5f   :  { %6780 = vmatprep.subr.bf16.mxu1 %v6779_v37  ;;  %v6787_v63 = vpack.c.bf16 %v5286_v56, %v5284_v53  ;;  %v5285_v0 = vld [vmem:[%s9915_s0 + $0x730] sm:$0xff]  ;;  %v5224_v1 = vld [vmem:[%s9915_s0 + $0x548] sm:$0xff]  ;;  %v5226_v2 = vld [vmem:[%s9915_s0 + $0x558] sm:$0xff]  ;;  %v6725_v5 = vpack.c.bf16 %v5221_v61, %v5219_v60 }
  0x60   :  { %v5288_v3 = vld [vmem:[%s9915_s0 + $0x748] sm:$0xff]  ;;  %v5290_v4 = vld [vmem:[%s9915_s0 + $0x758] sm:$0xff]  ;;  %v6789_v6 = vpack.c.bf16 %v5285_v0, %v5283_v62  ;;  %v6727_v7 = vpack.c.bf16 %v5226_v2, %v5224_v1  ;;  %v5223_v8 = vld [vmem:[%s9915_s0 + $0x540] sm:$0xff] }
  0x61   :  { %6718 = vmatpush1.bf16.msra.mxu0 %v6717_v43  ;;  %v5225_v9 = vld [vmem:[%s9915_s0 + $0x550] sm:$0xff]  ;;  %v5287_v10 = vld [vmem:[%s9915_s0 + $0x740] sm:$0xff]  ;;  %v6791_v11 = vpack.c.bf16 %v5290_v4, %v5288_v3  ;;  %v5228_v13 = vld [vmem:[%s9915_s0 + $0x568] sm:$0xff] }
  0x62   :  { %6782 = vmatpush1.bf16.msra.mxu1 %v6781_v44  ;;  %6720 = vmatprep.subr.bf16.mxu0 %v6719_v45  ;;  %v5289_v12 = vld [vmem:[%s9915_s0 + $0x750] sm:$0xff]  ;;  %v5230_v14 = vld [vmem:[%s9915_s0 + $0x578] sm:$0xff]  ;;  %v5292_v15 = vld [vmem:[%s9915_s0 + $0x768] sm:$0xff]  ;;  %v6729_v19 = vpack.c.bf16 %v5225_v9, %v5223_v8 }
  0x63   :  { %6784 = vmatprep.subr.bf16.mxu1 %v6783_v49  ;;  %v5294_v18 = vld [vmem:[%s9915_s0 + $0x778] sm:$0xff]  ;;  %v6793_v20 = vpack.c.bf16 %v5289_v12, %v5287_v10  ;;  %v6731_v21 = vpack.c.bf16 %v5230_v14, %v5228_v13  ;;  %v5227_v17 = vld [vmem:[%s9915_s0 + $0x560] sm:$0xff]  ;;  %v5229_v22 = vld [vmem:[%s9915_s0 + $0x570] sm:$0xff] }
  0x64   :  { %v5291_v23 = vld [vmem:[%s9915_s0 + $0x760] sm:$0xff]  ;;  %v6795_v24 = vpack.c.bf16 %v5294_v18, %v5292_v15  ;;  %v5293_v25 = vld [vmem:[%s9915_s0 + $0x770] sm:$0xff]  ;;  %v5232_v26 = vld [vmem:[%s9915_s0 + $0x588] sm:$0xff]  ;;  %v6733_v30 = vpack.c.bf16 %v5229_v22, %v5227_v17 }
  0x65   :  { %6722 = vmatpush1.bf16.msra.mxu0 %v6721_v57  ;;  %v5234_v27 = vld [vmem:[%s9915_s0 + $0x598] sm:$0xff]  ;;  %v5296_v28 = vld [vmem:[%s9915_s0 + $0x788] sm:$0xff]  ;;  %v6797_v31 = vpack.c.bf16 %v5293_v25, %v5291_v23  ;;  %v5231_v33 = vld [vmem:[%s9915_s0 + $0x580] sm:$0xff] }
  0x66   :  { %6786 = vmatpush1.bf16.msra.mxu1 %v6785_v58  ;;  %6724 = vmatprep.subr.bf16.mxu0 %v6723_v59  ;;  %v5298_v29 = vld [vmem:[%s9915_s0 + $0x798] sm:$0xff]  ;;  %v6735_v32 = vpack.c.bf16 %v5234_v27, %v5232_v26  ;;  %v5233_v34 = vld [vmem:[%s9915_s0 + $0x590] sm:$0xff]  ;;  %v5295_v35 = vld [vmem:[%s9915_s0 + $0x780] sm:$0xff] }
  0x67   :  { %6788 = vmatprep.subr.bf16.mxu1 %v6787_v63  ;;  %v6799_v36 = vpack.c.bf16 %v5298_v29, %v5296_v28  ;;  %v5297_v37 = vld [vmem:[%s9915_s0 + $0x790] sm:$0xff]  ;;  %v5236_v38 = vld [vmem:[%s9915_s0 + $0x5a8] sm:$0xff]  ;;  %v5238_v39 = vld [vmem:[%s9915_s0 + $0x5b8] sm:$0xff]  ;;  %v6737_v42 = vpack.c.bf16 %v5233_v34, %v5231_v33 }
  0x68   :  { %v5300_v40 = vld [vmem:[%s9915_s0 + $0x7a8] sm:$0xff]  ;;  %v5302_v41 = vld [vmem:[%s9915_s0 + $0x7b8] sm:$0xff]  ;;  %v6801_v43 = vpack.c.bf16 %v5297_v37, %v5295_v35  ;;  %v6739_v44 = vpack.c.bf16 %v5238_v39, %v5236_v38  ;;  %v5235_v45 = vld [vmem:[%s9915_s0 + $0x5a0] sm:$0xff] }
  0x69   :  { %6726 = vmatpush1.bf16.msra.mxu0 %v6725_v5  ;;  %v5237_v46 = vld [vmem:[%s9915_s0 + $0x5b0] sm:$0xff]  ;;  %v5299_v47 = vld [vmem:[%s9915_s0 + $0x7a0] sm:$0xff]  ;;  %v6803_v48 = vpack.c.bf16 %v5302_v41, %v5300_v40  ;;  %v5240_v50 = vld [vmem:[%s9915_s0 + $0x5c8] sm:$0xff] }
  0x6a   :  { %6790 = vmatpush1.bf16.msra.mxu1 %v6789_v6  ;;  %6728 = vmatprep.subr.bf16.mxu0 %v6727_v7  ;;  %v5301_v49 = vld [vmem:[%s9915_s0 + $0x7b0] sm:$0xff]  ;;  %v5242_v51 = vld [vmem:[%s9915_s0 + $0x5d8] sm:$0xff]  ;;  %v5304_v52 = vld [vmem:[%s9915_s0 + $0x7c8] sm:$0xff]  ;;  %v6741_v56 = vpack.c.bf16 %v5237_v46, %v5235_v45 }
  0x6b   :  { %6792 = vmatprep.subr.bf16.mxu1 %v6791_v11  ;;  %v5306_v53 = vld [vmem:[%s9915_s0 + $0x7d8] sm:$0xff]  ;;  %v6805_v57 = vpack.c.bf16 %v5301_v49, %v5299_v47  ;;  %v6743_v58 = vpack.c.bf16 %v5242_v51, %v5240_v50  ;;  %v5239_v59 = vld [vmem:[%s9915_s0 + $0x5c0] sm:$0xff]  ;;  %v5241_v60 = vld [vmem:[%s9915_s0 + $0x5d0] sm:$0xff] }
  0x6c   :  { %v5303_v61 = vld [vmem:[%s9915_s0 + $0x7c0] sm:$0xff]  ;;  %v6807_v62 = vpack.c.bf16 %v5306_v53, %v5304_v52  ;;  %v5305_v63 = vld [vmem:[%s9915_s0 + $0x7d0] sm:$0xff]  ;;  %v5244_v0 = vld [vmem:[%s9915_s0 + $0x5e8] sm:$0xff]  ;;  %v6745_v4 = vpack.c.bf16 %v5241_v60, %v5239_v59 }
  0x6d   :  { %6730 = vmatpush1.bf16.msra.mxu0 %v6729_v19  ;;  %v5246_v1 = vld [vmem:[%s9915_s0 + $0x5f8] sm:$0xff]  ;;  %v5308_v2 = vld [vmem:[%s9915_s0 + $0x7e8] sm:$0xff]  ;;  %v6809_v5 = vpack.c.bf16 %v5305_v63, %v5303_v61  ;;  %v5243_v7 = vld [vmem:[%s9915_s0 + $0x5e0] sm:$0xff] }
  0x6e   :  { %6794 = vmatpush1.bf16.msra.mxu1 %v6793_v20  ;;  %6732 = vmatprep.subr.bf16.mxu0 %v6731_v21  ;;  %v5310_v3 = vld [vmem:[%s9915_s0 + $0x7f8] sm:$0xff]  ;;  %v6747_v6 = vpack.c.bf16 %v5246_v1, %v5244_v0  ;;  %v5245_v8 = vld [vmem:[%s9915_s0 + $0x5f0] sm:$0xff]  ;;  %v5307_v10 = vld [vmem:[%s9915_s0 + $0x7e0] sm:$0xff] }
  0x6f   :  { %6796 = vmatprep.subr.bf16.mxu1 %v6795_v24  ;;  %v6811_v9 = vpack.c.bf16 %v5310_v3, %v5308_v2  ;;  %v5309_v11 = vld [vmem:[%s9915_s0 + $0x7f0] sm:$0xff]  ;;  %v6749_v12 = vpack.c.bf16 %v5245_v8, %v5243_v7  ;;  %vm8588_vm5 = vmpackc.low %vm1428_vm4, %vm1428_vm4 }
  0x70   :  { %v6813_v13 = vpack.c.bf16 %v5309_v11, %v5307_v10 }
  0x71   :  { %6734 = vmatpush1.bf16.msra.mxu0 %v6733_v30 }
  0x72   :  { %6798 = vmatpush1.bf16.msra.mxu1 %v6797_v31  ;;  %6736 = vmatprep.subr.bf16.mxu0 %v6735_v32 }
  0x73   :  { %6800 = vmatprep.subr.bf16.mxu1 %v6799_v36 }
  0x75   :  { %6738 = vmatpush1.bf16.msra.mxu0 %v6737_v42 }
  0x76   :  { %6802 = vmatpush1.bf16.msra.mxu1 %v6801_v43  ;;  %6740 = vmatprep.subr.bf16.mxu0 %v6739_v44 }
  0x77   :  { %6804 = vmatprep.subr.bf16.mxu1 %v6803_v48 }
  0x79   :  { %6742 = vmatpush1.bf16.msra.mxu0 %v6741_v56 }
  0x7a   :  { %6806 = vmatpush1.bf16.msra.mxu1 %v6805_v57  ;;  %6744 = vmatprep.subr.bf16.mxu0 %v6743_v58 }
  0x7b   :  { %6808 = vmatprep.subr.bf16.mxu1 %v6807_v62 }
  0x7d   :  { %6746 = vmatpush1.bf16.msra.mxu0 %v6745_v4 }
  0x7e   :  { %6810 = vmatpush1.bf16.msra.mxu1 %v6809_v5  ;;  %6748 = vmatprep.subr.bf16.mxu0 %v6747_v6 }
  0x7f   :  { %6812 = vmatprep.subr.bf16.mxu1 %v6811_v9 }
  0x81   :  { %6750 = vmatpush1.bf16.msra.mxu0 %v6749_v12 }
  0x82   :  { %6814 = vmatpush1.bf16.msra.mxu1 %v6813_v13 }
  0x84   :  { %485 = vmatmul.mubr.f32.vlgmr.msra.gmra.mrb[4].mxu0 %v7946_v16 }
  0x85   :  { %631 = vmatmul.mubr.f32.vlgmr.msra.gmra.mrb[4].mxu1 %v7946_v16  ;;  %490 = vmatprep.mubr.f32.mxu0 %v8025_v54 }
  0x86   :  { %636 = vmatprep.mubr.f32.mxu1 %v8025_v54 }
  0x88   :  { %491 = vmatmul.mubr.f32.gmra.mrb[6].mxu0 %v8030_v55 }
  0x89   :  { %637 = vmatmul.mubr.f32.gmra.mrb[6].mxu1 %v8030_v55 }
  0xbf   :  { %v121_v14 = vpop.permute.xlu0 %120 }
  0xd8   :  { %v126_v29 = vpop.permute.xlu0 %125 }
 0x117   :  { %v194_v15 = vpop.f32.mrb[0].mxu0 }
 0x118   :  { %v340_v18 = vpop.f32.mrb[0].mxu1  ;;  %v196_v19 = vpop.f32.mrb[1].mxu0  ;;  %v195_v20 = vadd.f32 %v194_v15, %v121_v14 }
 0x119   :  { %v197_v21 = vadd.f32 %v196_v19, %v121_v14  ;;  %v342_v17 = vpop.f32.mrb[1].mxu1  ;;  %v341_v22 = vadd.f32 %v340_v18, %v121_v14 }
 0x11a   :  { %v343_v23 = vadd.f32 %v342_v17, %v121_v14  ;;  %v8326_v24 = vmax.f32 %v195_v20, 0.0 }
 0x11b   :  { %v8328_v16 = vmax.f32 %v197_v21, 0.0  ;;  %v8330_v25 = vmax.f32 %v341_v22, 0.0  ;;  %v200_v30 = vpop.f32.mrb[2].mxu0 }
 0x11c   :  { %v8332_v54 = vmax.f32 %v343_v23, 0.0  ;;  %v202_v31 = vpop.f32.mrb[3].mxu0  ;;  %v201_v32 = vadd.f32 %v200_v30, %v126_v29 }
 0x11d   :  { %v648_v55 = vsel %vm647_vm0, %v8328_v16, 0.0  ;;  %v203_v33 = vadd.f32 %v202_v31, %v126_v29 }
 0x11e   :  { %v658_v26 = vsel %vm647_vm0, %v8332_v54, 0.0  ;;  %v649_v27 = vadd.f32 %v648_v55, %v8326_v24  ;;  %v346_v34 = vpop.f32.mrb[2].mxu1  ;;  %v8340_v37 = vmax.f32 %v201_v32, 0.0 }
 0x11f   :  { %v659_v28 = vadd.f32 %v658_v26, %v8330_v25  ;;  %v347_v35 = vadd.f32 %v346_v34, %v126_v29  ;;  %v348_v36 = vpop.f32.mrb[3].mxu1  ;;  %v8342_v38 = vmax.f32 %v203_v33, 0.0 }
 0x120   :  { %650 = vadd.xlane.f32.xlu1 %v649_v27  ;;  %v349_v39 = vadd.f32 %v348_v36, %v126_v29 }
 0x121   :  { %660 = vadd.xlane.f32.xlu0 %v659_v28  ;;  %v8344_v40 = vmax.f32 %v347_v35, 0.0  ;;  %v652_v42 = vsel %vm647_vm0, %v8342_v38, 0.0 }
 0x122   :  { %v8346_v41 = vmax.f32 %v349_v39, 0.0  ;;  %v653_v43 = vadd.f32 %v652_v42, %v8340_v37 }
 0x124   :  { %v662_v44 = vsel %vm647_vm0, %v8346_v41, 0.0  ;;  %654 = vadd.xlane.f32.xlu1 %v653_v43 }
 0x125   :  { %v663_v45 = vadd.f32 %v662_v44, %v8344_v40 }
 0x128   :  { %664 = vadd.xlane.f32.xlu1 %v663_v45 }
 0x157   :  { %v486_v46 = vpop.f32.mrb[4].mxu0 }
 0x158   :  { %v487_v47 = vadd.f32 %v486_v46, %v121_v14  ;;  %v632_v48 = vpop.f32.mrb[4].mxu1  ;;  %v488_v49 = vpop.f32.mrb[5].mxu0 }
 0x159   :  { %v489_v50 = vadd.f32 %v488_v49, %v121_v14  ;;  %v634_v51 = vpop.f32.mrb[5].mxu1  ;;  %v633_v58 = vadd.f32 %v632_v48, %v121_v14 }
 0x15a   :  { %v635_v52 = vadd.f32 %v634_v51, %v121_v14  ;;  %v8356_v57 = vmax.f32 %v487_v47, 0.0 }
 0x15b   :  { %v8354_v53 = vmax.f32 %v489_v50, 0.0  ;;  %v492_v56 = vpop.f32.mrb[6].mxu0  ;;  %v8367_v5 = vmax.f32 %v633_v58, 0.0 }
 0x15c   :  { %v8358_v59 = vmax.f32 %v635_v52, 0.0  ;;  %v638_v60 = vpop.f32.mrb[6].mxu1  ;;  %v494_v61 = vpop.f32.mrb[7].mxu0  ;;  %v493_v6 = vadd.f32 %v492_v56, %v126_v29 }
 0x15d   :  { %v495_v62 = vadd.f32 %v494_v61, %v126_v29  ;;  %v640_v63 = vpop.f32.mrb[7].mxu1  ;;  %v668_v0 = vsel %vm647_vm0, %v8354_v53, 0.0  ;;  %v639_v11 = vadd.f32 %v638_v60, %v126_v29 }
 0x15e   :  { %v669_v1 = vadd.f32 %v668_v0, %v8356_v57  ;;  %v641_v3 = vadd.f32 %v640_v63, %v126_v29  ;;  %v678_v4 = vsel %vm647_vm0, %v8358_v59, 0.0  ;;  %v8374_v10 = vmax.f32 %v493_v6, 0.0 }
 0x15f   :  { %v8363_v2 = vmax.f32 %v495_v62, 0.0  ;;  %v679_v7 = vadd.f32 %v678_v4, %v8367_v5  ;;  %v8379_v14 = vmax.f32 %v639_v11, 0.0 }
 0x160   :  { %670 = vadd.xlane.f32.xlu1 %v669_v1  ;;  %v8370_v8 = vmax.f32 %v641_v3, 0.0 }
 0x161   :  { %v672_v9 = vsel %vm647_vm0, %v8363_v2, 0.0 }
 0x162   :  { %v673_v12 = vadd.f32 %v672_v9, %v8374_v10  ;;  %v682_v13 = vsel %vm647_vm0, %v8370_v8, 0.0 }
 0x163   :  { %v683_v15 = vadd.f32 %v682_v13, %v8379_v14 }
 0x164   :  { %680 = vadd.xlane.f32.xlu1 %v679_v7 }
 0x168   :  { %674 = vadd.xlane.f32.xlu1 %v673_v12 }
 0x16c   :  { %684 = vadd.xlane.f32.xlu1 %v683_v15 }
 0x1ad   :  { %v651_v18 = vpop.xlane.xlu1 %650 }
 0x1ae   :  { %v661_v21 = vpop.xlane.xlu0 %660 }
 0x1af   :  { %v666_v22 = vadd.f32 %v661_v21, %v651_v18 }
 0x1b1   :  { %v655_v19 = vpop.xlane.xlu1 %654 }
 0x1b5   :  { %v665_v20 = vpop.xlane.xlu1 %664 }
 0x1b6   :  { %v667_v29 = vadd.f32 %v665_v20, %v655_v19 }
 0x1ed   :  { %v671_v17 = vpop.xlane.xlu1 %670 }
 0x1ee   :  { %v676_v23 = vadd.f32 %v671_v17, %v666_v22 }
 0x1f1   :  { %v681_v55 = vpop.xlane.xlu1 %680 }
 0x1f2   :  { %v686_v26 = vadd.f32 %v681_v55, %v676_v23 }
 0x1f4   :  { %v8382_v27 = vmul.f32 0.0018939395, %v686_v26 }
 0x1f5   :  { %v675_v28 = vpop.xlane.xlu1 %674 }
 0x1f6   :  { %v691_v30 = vsub.f32 %v8326_v24, %v8382_v27  ;;  %v692_v31 = vsub.f32 %v8328_v16, %v8382_v27  ;;  %v709_v32 = vsub.f32 %v8330_v25, %v8382_v27  ;;  %v710_v33 = vsub.f32 %v8332_v54, %v8382_v27 }
 0x1f7   :  { %v728_v34 = vsub.f32 %v8354_v53, %v8382_v27  ;;  %v677_v35 = vadd.f32 %v675_v28, %v667_v29  ;;  %v727_v44 = vsub.f32 %v8356_v57, %v8382_v27  ;;  %v746_v56 = vsub.f32 %v8358_v59, %v8382_v27 }
 0x1f8   :  { %v695_v36 = vmul.f32 %v691_v30, %v691_v30  ;;  %v696_v39 = vmul.f32 %v692_v31, %v692_v31  ;;  %v714_v43 = vmul.f32 %v710_v33, %v710_v33  ;;  %v713_v49 = vmul.f32 %v709_v32, %v709_v32 }
 0x1f9   :  { %v685_v42 = vpop.xlane.xlu1 %684  ;;  %v732_v47 = vmul.f32 %v728_v34, %v728_v34  ;;  %v731_v52 = vmul.f32 %v727_v44, %v727_v44  ;;  %v745_v15 = vsub.f32 %v8367_v5, %v8382_v27  ;;  %v750_v55 = vmul.f32 %v746_v56, %v746_v56 }
 0x1fa   :  { %v687_v45 = vadd.f32 %v685_v42, %v677_v35  ;;  %v699_v46 = vsel %vm647_vm0, %v696_v39, 0.0  ;;  %v717_v51 = vsel %vm647_vm0, %v714_v43, 0.0 }
 0x1fb   :  { %v700_v48 = vadd.f32 %v699_v46, %v695_v36  ;;  %v735_v58 = vsel %vm647_vm0, %v732_v47, 0.0  ;;  %v718_v63 = vadd.f32 %v717_v51, %v713_v49  ;;  %v749_v30 = vmul.f32 %v745_v15, %v745_v15 }
 0x1fc   :  { %v8397_v50 = vmul.f32 0.0018939395, %v687_v45  ;;  %v736_v12 = vadd.f32 %v735_v58, %v731_v52  ;;  %v753_v32 = vsel %vm647_vm0, %v750_v55, 0.0 }
 0x1fd   :  { %701 = vadd.xlane.f32.xlu1 %v700_v48  ;;  %v754_v34 = vadd.f32 %v753_v32, %v749_v30 }
 0x1fe   :  { %v711_v60 = vsub.f32 %v8344_v40, %v8397_v50  ;;  %v712_v61 = vsub.f32 %v8346_v41, %v8397_v50  ;;  %v730_v62 = vsub.f32 %v8363_v2, %v8397_v50  ;;  %v729_v0 = vsub.f32 %v8374_v10, %v8397_v50 }
 0x1ff   :  { %v693_v1 = vsub.f32 %v8340_v37, %v8397_v50  ;;  %v694_v3 = vsub.f32 %v8342_v38, %v8397_v50  ;;  %v748_v9 = vsub.f32 %v8370_v8, %v8397_v50  ;;  %v747_v21 = vsub.f32 %v8379_v14, %v8397_v50 }
 0x200   :  { %v715_v4 = vmul.f32 %v711_v60, %v711_v60  ;;  %v716_v6 = vmul.f32 %v712_v61, %v712_v61  ;;  %v734_v7 = vmul.f32 %v730_v62, %v730_v62  ;;  %v733_v19 = vmul.f32 %v729_v0, %v729_v0  ;;  %v769_v0 = vld [vmem:[%s9918_s3] sm:$0xff] }
 0x201   :  { %719 = vadd.xlane.f32.xlu1 %v718_v63  ;;  %v698_v11 = vmul.f32 %v694_v3, %v694_v3  ;;  %v697_v20 = vmul.f32 %v693_v1, %v693_v1  ;;  %v752_v23 = vmul.f32 %v748_v9, %v748_v9  ;;  %v751_v29 = vmul.f32 %v747_v21, %v747_v21  ;;  %v770_v63 = vld [vmem:[%s9918_s3 + $0x8] sm:$0xff]  ;;  %s7433_s3 = smov 127  }
 0x202   :  { %v721_v13 = vsel %vm647_vm0, %v716_v6, 0.0  ;;  %v739_v17 = vsel %vm647_vm0, %v734_v7, 0.0  ;;  %v773_v7 = vld [vmem:[%s9919_s4] sm:$0xff] }
 0x203   :  { %v722_v18 = vadd.f32 %v721_v13, %v715_v4  ;;  %v703_v22 = vsel %vm647_vm0, %v698_v11, 0.0  ;;  %v740_v26 = vadd.f32 %v739_v17, %v733_v19  ;;  %v757_v31 = vsel %vm647_vm0, %v752_v23, 0.0  ;;  %v774_v13 = vld [vmem:[%s9919_s4 + $0x8] sm:$0xff] }
 0x204   :  { %v704_v28 = vadd.f32 %v703_v22, %v697_v20  ;;  %v758_v33 = vadd.f32 %v757_v31, %v751_v29 }
 0x205   :  { %737 = vadd.xlane.f32.xlu1 %v736_v12  ;;  %723 = vadd.xlane.f32.xlu0 %v722_v18 }
 0x209   :  { %741 = vadd.xlane.f32.xlu0 %v740_v26  ;;  %705 = vadd.xlane.f32.xlu1 %v704_v28 }
 0x20d   :  { %759 = vadd.xlane.f32.xlu0 %v758_v33  ;;  %755 = vadd.xlane.f32.xlu1 %v754_v34 }
 0x28a   :  { %v702_v35 = vpop.xlane.xlu1 %701 }
 0x28e   :  { %v720_v36 = vpop.xlane.xlu1 %719 }
 0x28f   :  { %v725_v45 = vadd.f32 %v720_v36, %v702_v35 }
 0x292   :  { %v724_v39 = vpop.xlane.xlu0 %723  ;;  %v738_v42 = vpop.xlane.xlu1 %737 }
 0x293   :  { %v743_v47 = vadd.f32 %v738_v42, %v725_v45 }
 0x296   :  { %v742_v43 = vpop.xlane.xlu0 %741  ;;  %v706_v44 = vpop.xlane.xlu1 %705 }
 0x297   :  { %v726_v46 = vadd.f32 %v724_v39, %v706_v44 }
 0x299   :  { %v744_v48 = vadd.f32 %v742_v43, %v726_v46 }
 0x29a   :  { %v760_v49 = vpop.xlane.xlu0 %759  ;;  %v756_v51 = vpop.xlane.xlu1 %755 }
 0x29b   :  { %v762_v52 = vadd.f32 %v760_v49, %v744_v48  ;;  %v761_v56 = vadd.f32 %v756_v51, %v743_v47  ;;  %v5311_v49 = vld [vmem:[%s9920_s5 + $0x20] sm:$0xff] }
 0x29c   :  { %5926 = vmatprep.mubr.msk.f32.mxu0 %vm872_vm1, %v5311_v49  ;;  %v832_v49 = vld [vmem:[%s9920_s5 + $0x8] sm:$0xff] }
 0x29d   :  { %v764_v58 = vmul.f32 0.0018939395, %v762_v52  ;;  %v763_v60 = vmul.f32 0.0018939395, %v761_v56 }
 0x29f   :  { %v766_v61 = vadd.f32 1e-05, %v764_v58  ;;  %v765_v62 = vadd.f32 1e-05, %v763_v60 }
 0x2a1   :  { %7395 = vrsqrt.f32 %v766_v61 }
 0x2a2   :  { %7397 = vrsqrt.f32 %v765_v62 }
 0x2ab   :  { %v7396_v1 = vpop.eup %7395 }
 0x2ac   :  { %v7398_v3 = vpop.eup %7397  ;;  %v772_v4 = vmul.f32 %v7396_v1, %v770_v63 }
 0x2ad   :  { %v771_v6 = vmul.f32 %v7398_v3, %v769_v0 }
 0x2ae   :  { %786 = vperm.xlu0 %7293, %v772_v4   ;;  %v776_v12 = vmul.f32 %v772_v4, %v8397_v50 }
 0x2af   :  { %781 = vperm.xlu1 %7294, %v771_v6   ;;  %v775_v9 = vmul.f32 %v771_v6, %v8382_v27 }
 0x2b0   :  { %v778_v15 = vsub.f32 %v774_v13, %v776_v12 }
 0x2b1   :  { %v777_v11 = vsub.f32 %v773_v7, %v775_v9 }
 0x2b3   :  { %795 = vperm.xlu1 %7294, %v777_v11  }
 0x2b7   :  { %800 = vperm.xlu1 %7294, %v778_v15  }
 0x32d   :  { %v787_v19 = vpop.permute.xlu0 %786 }
 0x32e   :  { %v782_v18 = vpop.permute.xlu1 %781  ;;  %v791_v17 = vmul.f32 %v787_v19, %v8340_v37  ;;  %v809_v27 = vmul.f32 %v787_v19, %v8344_v40  ;;  %v817_v50 = vmul.f32 %v787_v19, %v8374_v10  ;;  %v825_v55 = vmul.f32 %v787_v19, %v8379_v14 }
 0x32f   :  { %v789_v21 = vmul.f32 %v782_v18, %v8326_v24  ;;  %v807_v22 = vmul.f32 %v782_v18, %v8330_v25  ;;  %v815_v31 = vmul.f32 %v782_v18, %v8356_v57  ;;  %v823_v37 = vmul.f32 %v782_v18, %v8367_v5 }
 0x330   :  { %v790_v40 = vmul.f32 %v782_v18, %v8328_v16  ;;  %v792_v35 = vmul.f32 %v787_v19, %v8342_v38  ;;  %v808_v16 = vmul.f32 %v782_v18, %v8332_v54  ;;  %v810_v38 = vmul.f32 %v787_v19, %v8346_v41 }
 0x331   :  { %v816_v51 = vmul.f32 %v782_v18, %v8354_v53  ;;  %v818_v52 = vmul.f32 %v787_v19, %v8363_v2  ;;  %v824_v60 = vmul.f32 %v782_v18, %v8358_v59  ;;  %v826_v61 = vmul.f32 %v787_v19, %v8370_v8  ;;  %v1385_v59 = vld [vmem:[%s9921_s6] sm:$0xff]  ;;  %v1386_v8 = vld [vmem:[%s9921_s6 + $0x8] sm:$0xff] }
 0x332   :  { %v796_v20 = vpop.permute.xlu1 %795 }
 0x333   :  { %v803_v26 = vadd.f32 %v796_v20, %v789_v21  ;;  %v811_v29 = vadd.f32 %v807_v22, %v796_v20  ;;  %v819_v25 = vadd.f32 %v815_v31, %v796_v20  ;;  %v827_v10 = vadd.f32 %v823_v37, %v796_v20 }
 0x334   :  { %v804_v36 = vadd.f32 %v796_v20, %v790_v40  ;;  %v812_v47 = vadd.f32 %v808_v16, %v796_v20  ;;  %v820_v56 = vadd.f32 %v816_v51, %v796_v20  ;;  %v828_v0 = vadd.f32 %v824_v60, %v796_v20 }
 0x336   :  { %v801_v23 = vpop.permute.xlu1 %800  ;;  %v7315_v45 = vpack.i.bf16 %v804_v36, %v803_v26  ;;  %v7320_v54 = vpack.i.bf16 %v812_v47, %v811_v29  ;;  %v7325_v62 = vpack.i.bf16 %v820_v56, %v819_v25  ;;  %v7330_v53 = vpack.i.bf16 %v828_v0, %v827_v10 }
 0x337   :  { %v805_v28 = vadd.f32 %v801_v23, %v791_v17  ;;  %v813_v30 = vadd.f32 %v809_v27, %v801_v23  ;;  %v821_v32 = vadd.f32 %v817_v50, %v801_v23  ;;  %v829_v34 = vadd.f32 %v825_v55, %v801_v23 }
 0x338   :  { %v806_v39 = vadd.f32 %v801_v23, %v792_v35  ;;  %v814_v48 = vadd.f32 %v810_v38, %v801_v23  ;;  %v822_v58 = vadd.f32 %v818_v52, %v801_v23  ;;  %v830_v1 = vadd.f32 %v826_v61, %v801_v23 }
 0x339   :  { %v7295_v33 = vpack.i.bf16 %v805_v28, %v803_v26  ;;  %v7300_v24 = vpack.i.bf16 %v813_v30, %v811_v29  ;;  %v7305_v14 = vpack.i.bf16 %v821_v32, %v819_v25  ;;  %v7310_v42 = vpack.i.bf16 %v829_v34, %v827_v10 }
 0x33a   :  { %v8450_v57 = vpack.c.bf16 %v805_v28, %v803_v26  ;;  %v8452_v43 = vpack.c.bf16 %v813_v30, %v811_v29  ;;  %v8454_v44 = vpack.c.bf16 %v821_v32, %v819_v25  ;;  %v8456_v5 = vpack.c.bf16 %v829_v34, %v827_v10  ;;  %v5313_v29 = vld [vmem:[%s9920_s5 + $0x30] sm:$0xff] }
 0x33b   :  { %7296 = vrot.lane.b32.xlu0 %v7295_v33, %s7433_s3  ;;  %7301 = vrot.lane.b32.xlu1 %v7300_v24, %s7433_s3  ;;  %v7355_v46 = vpack.i.bf16 %v806_v39, %v805_v28  ;;  %v7360_v41 = vpack.i.bf16 %v814_v48, %v813_v30  ;;  %v7365_v63 = vpack.i.bf16 %v822_v58, %v821_v32  ;;  %v5312_v28 = vld [vmem:[%s9920_s5 + $0x28] sm:$0xff]  ;;  %v5314_v32 = vld [vmem:[%s9920_s5 + $0x38] sm:$0xff] }
 0x33c   :  { %v7370_v2 = vpack.i.bf16 %v830_v1, %v829_v34  ;;  %v831_v33 = vld [vmem:[%s9920_s5] sm:$0xff] }
 0x33d   :  { %v5323_v1 = vld [vmem:[%s9920_s5 + $0x40] sm:$0xff] }
 0x33f   :  { %7306 = vrot.lane.b32.xlu0 %v7305_v14, %s7433_s3  ;;  %7311 = vrot.lane.b32.xlu1 %v7310_v42, %s7433_s3 }
 0x343   :  { %7316 = vrot.lane.b32.xlu0 %v7315_v45, %s7434_s30  ;;  %7356 = vrot.lane.b32.xlu1 %v7355_v46, %s7434_s30 }
 0x347   :  { %7321 = vrot.lane.b32.xlu0 %v7320_v54, %s7434_s30  ;;  %7361 = vrot.lane.b32.xlu1 %v7360_v41, %s7434_s30 }
 0x34b   :  { %7326 = vrot.lane.b32.xlu0 %v7325_v62, %s7434_s30  ;;  %7366 = vrot.lane.b32.xlu1 %v7365_v63, %s7434_s30 }
 0x34f   :  { %7331 = vrot.lane.b32.xlu0 %v7330_v53, %s7434_s30  ;;  %7371 = vrot.lane.b32.xlu1 %v7370_v2, %s7434_s30 }
 0x353   :  { %7336 = vrot.lane.b32.xlu0 %v7315_v45, %s7435_s15  ;;  %7376 = vrot.lane.b32.xlu1 %v7355_v46, %s7435_s15 }
 0x357   :  { %7341 = vrot.lane.b32.xlu0 %v7320_v54, %s7435_s15  ;;  %7381 = vrot.lane.b32.xlu1 %v7360_v41, %s7435_s15 }
 0x35b   :  { %7346 = vrot.lane.b32.xlu0 %v7325_v62, %s7435_s15  ;;  %7386 = vrot.lane.b32.xlu1 %v7365_v63, %s7435_s15  ;;  %v834_v62 = vld [vmem:[%s9920_s5 + $0x18] sm:$0xff] }
 0x35f   :  { %7351 = vrot.lane.b32.xlu0 %v7330_v53, %s7435_s15  ;;  %7391 = vrot.lane.b32.xlu1 %v7370_v2, %s7435_s15  ;;  %s7440_s15 = smov [#allocation2]  }
 0x360   :  { %s5111_s16 = sshll.u32 %s7440_s15, 4  ;;  %s5112_s16 = int_to_ptr.vmem [resolvable:$true] %s5111_s16 }
 0x361   :  { %s7408_s17 = scalar_lea.vmem %s5112_s16, 16  ;;  %p7413_p1 = scmp.lt.s32.totalorder %s5112_s16, %s5112_s16 }
 0x362   :  { %p7409_p0 = scmp.ne.s32.totalorder %s5112_s16, %s7408_s17 }
 0x363   :  { %1391 = vperm.xlu0 %7293, %v1385_v59  }
 0x367   :  { %1396 = vperm.xlu0 %7293, %v1386_v8  }
 0x3ad   :  { %v7297_v3 = vpop.permute.xlu0 %7296  ;;  %v7302_v4 = vpop.permute.xlu1 %7301 }
 0x3ae   :  { %v7299_v6 = vunpack.i.h.bf16 %v7297_v3  ;;  %v7298_v7 = vunpack.i.l.bf16 %v7297_v3  ;;  %v7304_v9 = vunpack.i.h.bf16 %v7302_v4  ;;  %v7303_v11 = vunpack.i.l.bf16 %v7302_v4 }
 0x3b0   :  { %v6815_v12 = vpack.c.bf16 %v7299_v6, %v7298_v7  ;;  %v6819_v18 = vpack.c.bf16 %v7304_v9, %v7303_v11 }
 0x3b1   :  { %v7307_v13 = vpop.permute.xlu0 %7306  ;;  %v7312_v15 = vpop.permute.xlu1 %7311 }
 0x3b2   :  { %v7309_v19 = vunpack.i.h.bf16 %v7307_v13  ;;  %v7308_v20 = vunpack.i.l.bf16 %v7307_v13  ;;  %6816 = vmatprep.subr.bf16.mxu0 %v6815_v12  ;;  %v7314_v17 = vunpack.i.h.bf16 %v7312_v15  ;;  %v7313_v22 = vunpack.i.l.bf16 %v7312_v15 }
 0x3b3   :  { %6818 = vmatpush3.bf16.msra.mxu0 %v6815_v12 }
 0x3b4   :  { %6820 = vmatprep.subr.bf16.mxu0 %v6819_v18  ;;  %v6823_v21 = vpack.c.bf16 %v7309_v19, %v7308_v20  ;;  %v6827_v50 = vpack.c.bf16 %v7314_v17, %v7313_v22 }
 0x3b5   :  { %v7317_v27 = vpop.permute.xlu0 %7316  ;;  %v7357_v23 = vpop.permute.xlu1 %7356 }
 0x3b6   :  { %v7319_v24 = vunpack.i.h.bf16 %v7317_v27  ;;  %v7318_v37 = vunpack.i.l.bf16 %v7317_v27  ;;  %v7359_v34 = vunpack.i.h.bf16 %v7357_v23  ;;  %v7358_v25 = vunpack.i.l.bf16 %v7357_v23 }
 0x3b7   :  { %6822 = vmatpush3.bf16.msra.mxu0 %v6819_v18 }
 0x3b8   :  { %6824 = vmatprep.subr.bf16.mxu0 %v6823_v21  ;;  %v1113_v10 = vsel %vm1112_vm2, %v7318_v37, %v7319_v24  ;;  %v1114_v14 = vsel %vm1112_vm2, %v7358_v25, %v7359_v34 }
 0x3b9   :  { %v7322_v55 = vpop.permute.xlu0 %7321  ;;  %v7362_v26 = vpop.permute.xlu1 %7361 }
 0x3ba   :  { %v7324_v36 = vunpack.i.h.bf16 %v7322_v55  ;;  %v7323_v39 = vunpack.i.l.bf16 %v7322_v55  ;;  %v7364_v42 = vunpack.i.h.bf16 %v7362_v26 }
 0x3bb   :  { %6826 = vmatpush3.bf16.msra.mxu0 %v6823_v21 }
 0x3bc   :  { %6828 = vmatprep.subr.bf16.mxu0 %v6827_v50  ;;  %v1115_v51 = vsel %vm1112_vm2, %v7323_v39, %v7324_v36 }
 0x3bd   :  { %v7327_v30 = vpop.permute.xlu0 %7326  ;;  %v7367_v31 = vpop.permute.xlu1 %7366 }
 0x3be   :  { %v7329_v16 = vunpack.i.h.bf16 %v7327_v30  ;;  %v7328_v38 = vunpack.i.l.bf16 %v7327_v30  ;;  %v7369_v45 = vunpack.i.h.bf16 %v7367_v31  ;;  %v7368_v46 = vunpack.i.l.bf16 %v7367_v31  ;;  %v5325_v30 = vld [vmem:[%s9920_s5 + $0x50] sm:$0xff] }
 0x3bf   :  { %6830 = vmatpush3.bf16.msra.mxu0 %v6827_v50  ;;  %v5324_v50 = vld [vmem:[%s9920_s5 + $0x48] sm:$0xff] }
 0x3c0   :  { %6832 = vmatprep.subr.bf16.mxu0 %v8450_v57  ;;  %v1117_v41 = vsel %vm1112_vm2, %v7328_v38, %v7329_v16 }
 0x3c1   :  { %v7332_v40 = vpop.permute.xlu0 %7331  ;;  %v7372_v35 = vpop.permute.xlu1 %7371 }
 0x3c2   :  { %5927 = vmatmul.mubr.msk.f32.vlgmr.msra.gmra.mrb[8].mxu0 %vm872_vm1, %v5312_v28  ;;  %v7334_v56 = vunpack.i.h.bf16 %v7332_v40  ;;  %v7333_v58 = vunpack.i.l.bf16 %v7332_v40  ;;  %v7374_v60 = vunpack.i.h.bf16 %v7372_v35  ;;  %v7373_v61 = vunpack.i.l.bf16 %v7372_v35  ;;  %v5326_v40 = vld [vmem:[%s9920_s5 + $0x58] sm:$0xff]  ;;  %v5331_v35 = vld [vmem:[%s9920_s5 + $0x60] sm:$0xff] }
 0x3c3   :  { %6834 = vmatpush3.bf16.msra.mxu0 %v8450_v57  ;;  %5929 = vmatprep.mubr.msk.f32.mxu0 %vm872_vm1, %v5313_v29  ;;  %v7363_v57 = vunpack.i.l.bf16 %v7362_v26 }
 0x3c4   :  { %6836 = vmatprep.subr.bf16.mxu0 %v8452_v43  ;;  %v1119_v4 = vsel %vm1112_vm2, %v7333_v58, %v7334_v56  ;;  %v1120_v6 = vsel %vm1112_vm2, %v7373_v61, %v7374_v60 }
 0x3c5   :  { %v7337_v47 = vpop.permute.xlu0 %7336  ;;  %v7377_v48 = vpop.permute.xlu1 %7376  ;;  %v1116_v52 = vsel %vm1112_vm2, %v7363_v57, %v7364_v42  ;;  %v6859_v11 = vpack.c.bf16 %v1120_v6, %v1119_v4  ;;  %v5332_v42 = vld [vmem:[%s9920_s5 + $0x68] sm:$0xff]  ;;  %v5333_v57 = vld [vmem:[%s9920_s5 + $0x70] sm:$0xff] }
 0x3c6   :  { %5930 = vmatmul.mubr.msk.f32.gmra.mrb[10].mxu0 %vm872_vm1, %v5314_v32  ;;  %v6851_v54 = vpack.c.bf16 %v1116_v52, %v1115_v51  ;;  %v7339_v2 = vunpack.i.h.bf16 %v7337_v47  ;;  %v7338_v59 = vunpack.i.l.bf16 %v7337_v47  ;;  %v7379_v8 = vunpack.i.h.bf16 %v7377_v48  ;;  %v1771_v4 = vld [vmem:[%s9924_s9 + $0xa8] sm:$0xff]  ;;  %v1772_v6 = vld [vmem:[%s9924_s9 + $0xb0] sm:$0xff] }
 0x3c7   :  { %6838 = vmatpush3.bf16.msra.mxu0 %v8452_v43  ;;  %5948 = vmatprep.mubr.msk.f32.mxu0 %vm872_vm1, %v831_v33  ;;  %v6847_v43 = vpack.c.bf16 %v1114_v14, %v1113_v10  ;;  %v7378_v3 = vunpack.i.l.bf16 %v7377_v48 }
 0x3c8   :  { %6840 = vmatprep.subr.bf16.mxu0 %v8454_v44  ;;  %v1268_v12 = vsel %vm1267_vm3, %v7338_v59, %v7339_v2  ;;  %v1751_v2 = vld [vmem:[%s9924_s9 + $0x8] sm:$0xff] }
 0x3c9   :  { %v7342_v63 = vpop.permute.xlu0 %7341  ;;  %v7382_v0 = vpop.permute.xlu1 %7381  ;;  %v1269_v13 = vsel %vm1267_vm3, %v7378_v3, %v7379_v8  ;;  %v7436_v8 = vmov 0.0|0.0  }
 0x3ca   :  { %v7344_v15 = vunpack.i.h.bf16 %v7342_v63  ;;  %v7343_v18 = vunpack.i.l.bf16 %v7342_v63  ;;  %v7384_v19 = vunpack.i.h.bf16 %v7382_v0  ;;  %v7383_v20 = vunpack.i.l.bf16 %v7382_v0  ;;  %6879 = vmatprep.subr.bf16.mxu1 %v7436_v8 }
 0x3cb   :  { %6842 = vmatpush3.bf16.msra.mxu0 %v8454_v44  ;;  %v833_v44 = vld [vmem:[%s9920_s5 + $0x10] sm:$0xff]  ;;  %v6863_v21 = vpack.c.bf16 %v1269_v13, %v1268_v12  ;;  %v1773_v12 = vld [vmem:[%s9924_s9 + $0xb8] sm:$0xff]  ;;  %v1774_v13 = vld [vmem:[%s9924_s9 + $0xc0] sm:$0xff] }
 0x3cc   :  { %6844 = vmatprep.subr.bf16.mxu0 %v8456_v5  ;;  %v1270_v55 = vsel %vm1267_vm3, %v7343_v18, %v7344_v15  ;;  %v1271_v26 = vsel %vm1267_vm3, %v7383_v20, %v7384_v19  ;;  %v6920_v18 = vpack.c.bf16 %v1774_v13, %v1773_v12  ;;  %v1754_v19 = vld [vmem:[%s9924_s9 + $0x20] sm:$0xff]  ;;  %v1755_v20 = vld [vmem:[%s9924_s9 + $0x28] sm:$0xff]  ;;  %v1788_v13 = vld [vmem:[%s9924_s9 + $0x130] sm:$0xff] }
 0x3cd   :  { %v7347_v7 = vpop.permute.xlu0 %7346  ;;  %v7387_v9 = vpop.permute.xlu1 %7386  ;;  %v6867_v31 = vpack.c.bf16 %v1271_v26, %v1270_v55  ;;  %v1490_v26 = vld [vmem:[%s9923_s8] sm:$0xff]  ;;  %v1787_v12 = vld [vmem:[%s9924_s9 + $0x128] sm:$0xff] }
 0x3ce   :  { %v7349_v17 = vunpack.i.h.bf16 %v7347_v7  ;;  %v7348_v22 = vunpack.i.l.bf16 %v7347_v7  ;;  %v7389_v27 = vunpack.i.h.bf16 %v7387_v9  ;;  %v7388_v23 = vunpack.i.l.bf16 %v7387_v9  ;;  %v1752_v9 = vld [vmem:[%s9924_s9 + $0x10] sm:$0xff] }
 0x3cf   :  { %6846 = vmatpush3.bf16.msra.mxu0 %v8456_v5  ;;  %v1118_v5 = vsel %vm1112_vm2, %v7368_v46, %v7369_v45  ;;  %v6916_v7 = vpack.c.bf16 %v1772_v6, %v1771_v4  ;;  %v1759_v4 = vld [vmem:[%s9924_s9 + $0x48] sm:$0xff]  ;;  %v1760_v6 = vld [vmem:[%s9924_s9 + $0x50] sm:$0xff] }
 0x3d0   :  { %6848 = vmatprep.subr.bf16.mxu0 %v6847_v43  ;;  %v6855_v53 = vpack.c.bf16 %v1118_v5, %v1117_v41  ;;  %v1272_v32 = vsel %vm1267_vm3, %v7348_v22, %v7349_v17  ;;  %v1273_v33 = vsel %vm1267_vm3, %v7388_v23, %v7389_v27  ;;  %v1482_v23 = vld [vmem:[%s9922_s7] sm:$0xff] }
 0x3d1   :  { %v7352_v28 = vpop.permute.xlu0 %7351  ;;  %v7392_v29 = vpop.permute.xlu1 %7391  ;;  %v6871_v10 = vpack.c.bf16 %v1273_v33, %v1272_v32  ;;  %v1387_v33 = vld [vmem:[%s9921_s6 + $0x10] sm:$0xff] }
 0x3d2   :  { %5949 = vmatmul.mubr.msk.f32.vlgmr.msra.gmra.mrb[8].mxu0 %vm872_vm1, %v832_v49  ;;  %v7354_v24 = vunpack.i.h.bf16 %v7352_v28  ;;  %v7353_v37 = vunpack.i.l.bf16 %v7352_v28  ;;  %v7394_v34 = vunpack.i.h.bf16 %v7392_v29  ;;  %v7393_v25 = vunpack.i.l.bf16 %v7392_v29  ;;  %v8561_v49 = vld [vmem:[%s9928_s13] ss:$0 sm:$0xff]  ;;  %v1775_v29 = vld [vmem:[%s9924_s9 + $0xc8] sm:$0xff] }
 0x3d3   :  { %6850 = vmatpush3.bf16.msra.mxu0 %v6847_v43  ;;  %5951 = vmatprep.mubr.msk.f32.mxu0 %vm872_vm1, %v833_v44  ;;  %v5334_v43 = vld [vmem:[%s9920_s5 + $0x78] sm:$0xff] }
 0x3d4   :  { %6852 = vmatprep.subr.bf16.mxu0 %v6851_v54  ;;  %v1274_v14 = vsel %vm1267_vm3, %v7353_v37, %v7354_v24  ;;  %v1275_v36 = vsel %vm1267_vm3, %v7393_v25, %v7394_v34  ;;  %v7437_v37 = vmov 0.0   ;;  %v1756_v34 = vld [vmem:[%s9924_s9 + $0x30] sm:$0x3] }
 0x3d5   :  { %v6875_v39 = vpack.c.bf16 %v1275_v36, %v1274_v14  ;;  %6012 = vmatprep.mubr.msk.f32.mxu1 %vm7438_vm6, %v7437_v37 }
 0x3d6   :  { %5952 = vmatmul.mubr.msk.f32.gmra.mrb[10].mxu0 %vm872_vm1, %v834_v62 }
 0x3d7   :  { %6854 = vmatpush3.bf16.msra.mxu0 %v6851_v54  ;;  %5970 = vmatprep.mubr.msk.f32.mxu0 %vm872_vm1, %v5323_v1 }
 0x3d8   :  { %6856 = vmatprep.subr.bf16.mxu0 %v6855_v53 }
 0x3db   :  { %6858 = vmatpush3.bf16.msra.mxu0 %v6855_v53  ;;  %v1750_v53 = vld [vmem:[%s9924_s9] sm:$0xff] }
 0x3dc   :  { %6860 = vmatprep.subr.bf16.mxu0 %v6859_v11  ;;  %v6880_v3 = vpack.c.bf16 %v1751_v2, %v1750_v53 }
 0x3de   :  { %6882 = vmatpush3.bf16.xpose.msk.msra.mxu1 %vm8588_vm5, %v6880_v3 }
 0x3df   :  { %6862 = vmatpush3.bf16.msra.mxu0 %v6859_v11  ;;  %6883 = vmatprep.subr.bf16.mxu1 %v7436_v8  ;;  %v1753_v11 = vld [vmem:[%s9924_s9 + $0x18] sm:$0xff] }
 0x3e0   :  { %6864 = vmatprep.subr.bf16.mxu0 %v6863_v21  ;;  %v6884_v15 = vpack.c.bf16 %v1753_v11, %v1752_v9  ;;  %v6896_v11 = vpack.c.bf16 %v1760_v6, %v1759_v4  ;;  %v1780_v6 = vld [vmem:[%s9924_s9 + $0xf0] sm:$0xff] }
 0x3e2   :  { %5971 = vmatmul.mubr.msk.f32.vlgmr.msra.gmra.mrb[8].mxu0 %vm872_vm1, %v5324_v50  ;;  %v1392_v16 = vpop.permute.xlu0 %1391 }
 0x3e3   :  { %6866 = vmatpush3.bf16.msra.mxu0 %v6863_v21  ;;  %5973 = vmatprep.mubr.msk.f32.mxu0 %vm872_vm1, %v5325_v30  ;;  %v6888_v21 = vpack.c.bf16 %v1755_v20, %v1754_v19  ;;  %v1776_v30 = vld [vmem:[%s9924_s9 + $0xd0] sm:$0xff]  ;;  %v1762_v19 = vld [vmem:[%s9924_s9 + $0x60] sm:$0xff] }
 0x3e4   :  { %6868 = vmatprep.subr.bf16.mxu0 %v6867_v31 }
 0x3e6   :  { %5974 = vmatmul.mubr.msk.f32.gmra.mrb[10].mxu0 %vm872_vm1, %v5326_v40  ;;  %v1397_v38 = vpop.permute.xlu0 %1396  ;;  %6886 = vmatpush3.bf16.xpose.msk.msra.mxu1 %vm8588_vm5, %v6884_v15  ;;  %v1777_v40 = vld [vmem:[%s9924_s9 + $0xd8] sm:$0x3]  ;;  %v6944_v15 = vpack.c.bf16 %v1788_v13, %v1787_v12  ;;  %v1816_v12 = vld [vmem:[%s9924_s9 + $0x210] sm:$0xff] }
 0x3e7   :  { %6870 = vmatpush3.bf16.msra.mxu0 %v6867_v31  ;;  %5992 = vmatprep.mubr.msk.f32.mxu0 %vm872_vm1, %v5331_v35  ;;  %v6924_v31 = vpack.c.bf16 %v1776_v30, %v1775_v29  ;;  %v1791_v30 = vld [vmem:[%s9924_s9 + $0x148] sm:$0x3] }
 0x3e8   :  { %6872 = vmatprep.subr.bf16.mxu0 %v6871_v10  ;;  %6887 = vmatprep.subr.bf16.mxu1 %v7436_v8 }
 0x3eb   :  { %6874 = vmatpush3.bf16.msra.mxu0 %v6871_v10 }
 0x3ec   :  { %6876 = vmatprep.subr.bf16.mxu0 %v6875_v39 }
 0x3ee   :  { %6890 = vmatpush3.bf16.xpose.msk.msra.mxu1 %vm8588_vm5, %v6888_v21  ;;  %v1789_v21 = vld [vmem:[%s9924_s9 + $0x138] sm:$0xff] }
 0x3ef   :  { %6878 = vmatpush3.bf16.msra.mxu0 %v6875_v39  ;;  %6010 = vmatprep.subr.mxu1 %v7437_v37  ;;  %v1388_v39 = vld [vmem:[%s9921_s6 + $0x18] sm:$0xff] }
 0x3f0   :  { %6915 = vmatprep.subr.bf16.mxu0 %v7436_v8 }
 0x3f2   :  { %5993 = vmatmul.mubr.msk.f32.vlgmr.msra.gmra.mrb[8].mxu0 %vm872_vm1, %v5332_v42  ;;  %v7439_v42 = vmov 1966171168  }
 0x3f3   :  { %5995 = vmatprep.mubr.msk.f32.mxu0 %vm872_vm1, %v5333_v57  ;;  %v1556_v57 = vunpack.c.l.s4 %v7439_v42 }
 0x3f6   :  { %5996 = vmatmul.mubr.msk.f32.gmra.mrb[10].mxu0 %vm872_vm1, %v5334_v43  ;;  %6011 = vmatpush3.xpose.msk.msra.mxu1 %vm1428_vm4, %v1756_v34  ;;  %v1558_v43 = vlaneseq  ;;  %v1766_v34 = vld [vmem:[%s9924_s9 + $0x80] sm:$0xff] }
 0x3f7   :  { %6891 = vmatprep.subr.bf16.mxu1 %v7436_v8  ;;  %6063 = vmatprep.mubr.msk.f32.mxu0 %vm7438_vm6, %v7437_v37 }
 0x3f8   :  { %6918 = vmatpush3.bf16.xpose.msk.msra.mxu0 %vm8588_vm5, %v6916_v7 }
 0x3f9   :  { %6919 = vmatprep.subr.bf16.mxu0 %v7436_v8 }
 0x400   :  { %6922 = vmatpush3.bf16.xpose.msk.msra.mxu0 %vm8588_vm5, %v6920_v18  ;;  %v1761_v18 = vld [vmem:[%s9924_s9 + $0x58] sm:$0xff] }
 0x401   :  { %6923 = vmatprep.subr.bf16.mxu0 %v7436_v8  ;;  %v6900_v20 = vpack.c.bf16 %v1762_v19, %v1761_v18  ;;  %v1783_v18 = vld [vmem:[%s9924_s9 + $0x108] sm:$0xff] }
 0x408   :  { %6926 = vmatpush3.bf16.xpose.msk.msra.mxu0 %vm8588_vm5, %v6924_v31  ;;  %v1799_v31 = vld [vmem:[%s9924_s9 + $0x188] sm:$0xff] }
 0x409   :  { %6061 = vmatprep.subr.mxu0 %v7437_v37 }
 0x410   :  { %6062 = vmatpush3.xpose.msk.msra.mxu0 %vm1428_vm4, %v1777_v40  ;;  %v1767_v40 = vld [vmem:[%s9924_s9 + $0x88] sm:$0xff] }
 0x411   :  { %6939 = vmatprep.subr.bf16.mxu0 %v7436_v8 }
 0x4c5   :  { %v5994_v45 = vpop.f32.mrb[8].mxu0 }
 0x4c6   :  { %v1410_v46 = vadd.f32 %v5994_v45, %v1397_v38  ;;  %v1362_v47 = vpop.f32.mrb[9].mxu0  ;;  %v1559_v38 = vshrl.u32 %v1558_v43, 7  ;;  %v1768_v43 = vld [vmem:[%s9924_s9 + $0x90] sm:$0xff] }
 0x4c7   :  { %v1409_v48 = vadd.f32 %v1392_v16, %v1362_v47  ;;  %v1557_v16 = vunpack.c.0.s8 %v1556_v57 }
 0x4c8   :  { %v8563_v51 = vmax.f32 %v1410_v46, 0.0 }
 0x4c9   :  { %v8565_v52 = vmax.f32 %v1409_v48, 0.0  ;;  %v8567_v44 = vpop.f32.mrb[10].mxu0  ;;  %v8675_v47 = vsub.s32 %v1557_v16, %v1559_v38  ;;  %v1769_v16 = vld [vmem:[%s9924_s9 + $0x98] sm:$0xff] }
 0x4ca   :  { %v8569_v54 = vpop.f32.mrb[11].mxu0  ;;  %v1425_v56 = vmul.f32 %v8561_v49, %v8563_v51  ;;  %v6912_v38 = vpack.c.bf16 %v1769_v16, %v1768_v43  ;;  %v1809_v43 = vld [vmem:[%s9924_s9 + $0x1d8] sm:$0xff] }
 0x4cb   :  { %v1424_v41 = vmul.f32 %v8561_v49, %v8565_v52 }
 0x4cc   :  { %v1432_v58 = vsel %vm1428_vm4, %v1425_v56, 0.0  ;;  %v1758_v56 = vld [vmem:[%s9924_s9 + $0x40] sm:$0xff] }
 0x4cd   :  { %v1429_v5 = vsel %vm1428_vm4, %v1424_v41, 0.0 }
 0x4ce   :  { %1430 = vadd.xlane.f32.xlu1 %v1429_v5  ;;  %v1757_v5 = vld [vmem:[%s9924_s9 + $0x38] sm:$0xff] }
 0x4d2   :  { %1433 = vadd.xlane.f32.xlu1 %v1432_v58 }
 0x55b   :  { %v1431_v60 = vpop.xlane.xlu1 %1430 }
 0x55c   :  { %v1442_v61 = vmul.f32 0.009090909, %v1431_v60 }
 0x55e   :  { %v1446_v62 = vsub.f32 %v8565_v52, %v1442_v61 }
 0x55f   :  { %v1434_v24 = vpop.xlane.xlu1 %1433 }
 0x560   :  { %v1450_v63 = vmul.f32 %v1446_v62, %v1446_v62  ;;  %v8655_v25 = vmul.f32 0.009090909, %v1434_v24 }
 0x562   :  { %v1454_v0 = vmul.f32 %v8561_v49, %v1450_v63  ;;  %v1447_v35 = vsub.f32 %v8563_v51, %v8655_v25 }
 0x564   :  { %v1458_v1 = vsel %vm1428_vm4, %v1454_v0, 0.0  ;;  %v1451_v10 = vmul.f32 %v1447_v35, %v1447_v35  ;;  %v1785_v0 = vld [vmem:[%s9924_s9 + $0x118] sm:$0xff]  ;;  %v6908_v35 = vpack.c.bf16 %v1767_v40, %v1766_v34  ;;  %v1796_v34 = vld [vmem:[%s9924_s9 + $0x170] sm:$0xff] }
 0x565   :  { %1459 = vadd.xlane.f32.xlu0 %v1458_v1  ;;  %v1786_v1 = vld [vmem:[%s9924_s9 + $0x120] sm:$0xff]  ;;  %v1797_v40 = vld [vmem:[%s9924_s9 + $0x178] sm:$0xff] }
 0x566   :  { %v1455_v14 = vmul.f32 %v8561_v49, %v1451_v10  ;;  %v6940_v3 = vpack.c.bf16 %v1786_v1, %v1785_v0 }
 0x568   :  { %v1461_v36 = vsel %vm1428_vm4, %v1455_v14, 0.0  ;;  %v1801_v14 = vld [vmem:[%s9924_s9 + $0x198] sm:$0xff] }
 0x5f2   :  { %v1460_v17 = vpop.xlane.xlu0 %1459 }
 0x5f3   :  { %v1470_v22 = vmul.f32 0.009090909, %v1460_v17  ;;  %v1790_v17 = vld [vmem:[%s9924_s9 + $0x140] sm:$0xff] }
 0x5f5   :  { %v1474_v27 = vadd.f32 1e-05, %v1470_v22  ;;  %v6948_v22 = vpack.c.bf16 %v1790_v17, %v1789_v21  ;;  %v1818_v21 = vld [vmem:[%s9924_s9 + $0x220] sm:$0xff] }
 0x5f7   :  { %7399 = vrsqrt.f32 %v1474_v27 }
 0x601   :  { %v7400_v50 = vpop.eup %7399 }
 0x602   :  { %v1486_v55 = vmul.f32 %v7400_v50, %v1482_v23  ;;  %v1763_v50 = vld [vmem:[%s9924_s9 + $0x68] sm:$0x3] }
 0x604   :  { %1504 = vperm.xlu0 %7293, %v1486_v55   ;;  %v1494_v28 = vmul.f32 %v1486_v55, %v1442_v61  ;;  %v6892_v61 = vpack.c.bf16 %v1758_v56, %v1757_v5  ;;  %v1764_v55 = vld [vmem:[%s9924_s9 + $0x70] sm:$0xff]  ;;  %v1770_v56 = vld [vmem:[%s9924_s9 + $0xa0] sm:$0x3] }
 0x606   :  { %v1498_v32 = vsub.f32 %v1490_v26, %v1494_v28  ;;  %v1765_v26 = vld [vmem:[%s9924_s9 + $0x78] sm:$0xff] }
 0x607   :  { %v6904_v28 = vpack.c.bf16 %v1765_v26, %v1764_v55  ;;  %v1784_v55 = vld [vmem:[%s9924_s9 + $0x110] sm:$0x3] }
 0x608   :  { %1528 = vperm.xlu1 %7294, %v1498_v32   ;;  %v1800_v32 = vld [vmem:[%s9924_s9 + $0x190] sm:$0xff] }
 0x609   :  { %v1792_v26 = vld [vmem:[%s9924_s9 + $0x150] sm:$0xff] }
 0x60c   :  { %1401 = vperm.xlu1 %7294, %v1387_v33   ;;  %v6964_v33 = vpack.c.bf16 %v1800_v32, %v1799_v31  ;;  %v1819_v31 = vld [vmem:[%s9924_s9 + $0x228] sm:$0x3] }
 0x623   :  { %1462 = vadd.xlane.f32.xlu0 %v1461_v36  ;;  %v1802_v36 = vld [vmem:[%s9924_s9 + $0x1a0] sm:$0xff] }
 0x624   :  { %v6968_v57 = vpack.c.bf16 %v1802_v36, %v1801_v14  ;;  %v1806_v14 = vld [vmem:[%s9924_s9 + $0x1c0] sm:$0xff]  ;;  %v1807_v36 = vld [vmem:[%s9924_s9 + $0x1c8] sm:$0xff] }
 0x639   :  { %1406 = vperm.xlu0 %7293, %v1388_v39  }
 0x683   :  { %v1505_v45 = vpop.permute.xlu0 %1504 }
 0x684   :  { %v1522_v46 = vmul.f32 %v1505_v45, %v8565_v52  ;;  %v1803_v45 = vld [vmem:[%s9924_s9 + $0x1a8] sm:$0xff] }
 0x687   :  { %v1529_v48 = vpop.permute.xlu1 %1528 }
 0x688   :  { %v1546_v41 = vadd.f32 %v1529_v48, %v1522_v46  ;;  %v1804_v46 = vld [vmem:[%s9924_s9 + $0x1b0] sm:$0xff] }
 0x689   :  { %v6972_v48 = vpack.c.bf16 %v1804_v46, %v1803_v45  ;;  %v1811_v45 = vld [vmem:[%s9924_s9 + $0x1e8] sm:$0xff] }
 0x68a   :  { %v1561_v58 = vrot.slane %v1546_v41, %v8675_v47  ;;  %v1554_v27 = vcombine.high %v1546_v41, %v1546_v41  ;;  %v1483_v41 = vld [vmem:[%s9922_s7 + $0x8] sm:$0xff] }
 0x68b   :  { %v1402_v60 = vpop.permute.xlu1 %1401 }
 0x68c   :  { %v1569_v62 = vcombine.high %v1561_v58, %v1561_v58  ;;  %v8685_v63 = vrot.slane %v1561_v58, %v8675_v47  ;;  %v1411_v52 = vadd.f32 %v1402_v60, %v8569_v54  ;;  %v8749_v23 = vrot.slane %v1554_v27, %v8675_v47  ;;  %v1778_v60 = vld [vmem:[%s9924_s9 + $0xe0] sm:$0xff] }
 0x68e   :  { %v1591_v53 = vrot.slane %v1569_v62, %v8675_v47  ;;  %6013 = vmatmul.mubr.msk.f32.vlgmr.msra.gmra.mrb[8].mxu1 %vm1428_vm4, %v8685_v63  ;;  %v8697_v2 = vmax.f32 %v1411_v52, 0.0  ;;  %v1570_v29 = vcombine.high %v8749_v23, %v8749_v23  ;;  %v1491_v62 = vld [vmem:[%s9923_s8 + $0x8] sm:$0xff]  ;;  %v1599_v1 = vcombine.high %v8685_v63, %v8685_v63 }
 0x68f   :  { %6894 = vmatpush3.bf16.xpose.msk.msra.mxu1 %vm8588_vm5, %v6892_v61  ;;  %6029 = vmatprep.mubr.msk.f32.mxu1 %vm7438_vm6, %v7437_v37  ;;  %v1779_v61 = vld [vmem:[%s9924_s9 + $0xe8] sm:$0xff] }
 0x690   :  { %v1601_v54 = vcombine.high %v1591_v53, %v1591_v53  ;;  %6895 = vmatprep.subr.bf16.mxu1 %v7436_v8  ;;  %v1426_v7 = vmul.f32 %v8561_v49, %v8697_v2  ;;  %v1598_v24 = vrot.slane %v1570_v29, %v8675_v47  ;;  %v6928_v0 = vpack.c.bf16 %v1779_v61, %v1778_v60 }
 0x691   :  { %v1584_v29 = vrot.slane %v8749_v23, %v8675_v47  ;;  %v1794_v23 = vld [vmem:[%s9924_s9 + $0x160] sm:$0xff] }
 0x692   :  { %6064 = vmatmul.mubr.msk.f32.vlgmr.msra.gmra.mrb[12].mxu0 %vm1428_vm4, %v1601_v54  ;;  %v1435_v9 = vsel %vm1428_vm4, %v1426_v7, 0.0  ;;  %v1813_v54 = vld [vmem:[%s9924_s9 + $0x1f8] sm:$0xff]  ;;  %v1602_v4 = vcombine.high %v1598_v24, %v1598_v24 }
 0x693   :  { %6942 = vmatpush3.bf16.xpose.msk.msra.mxu0 %vm8588_vm5, %v6940_v3  ;;  %6097 = vmatprep.mubr.msk.f32.mxu0 %vm7438_vm6, %v7437_v37  ;;  %v1805_v3 = vld [vmem:[%s9924_s9 + $0x1b8] sm:$0x3] }
 0x694   :  { %1436 = vadd.xlane.f32.xlu1 %v1435_v9  ;;  %6943 = vmatprep.subr.bf16.mxu0 %v7436_v8  ;;  %v1781_v7 = vld [vmem:[%s9924_s9 + $0xf8] sm:$0xff] }
 0x695   :  { %v6932_v9 = vpack.c.bf16 %v1781_v7, %v1780_v6 }
 0x697   :  { %6898 = vmatpush3.bf16.xpose.msk.msra.mxu1 %vm8588_vm5, %v6896_v11  ;;  %v1815_v11 = vld [vmem:[%s9924_s9 + $0x208] sm:$0xff] }
 0x698   :  { %6899 = vmatprep.subr.bf16.mxu1 %v7436_v8  ;;  %v6992_v13 = vpack.c.bf16 %v1816_v12, %v1815_v11  ;;  %v1823_v11 = vld [vmem:[%s9924_s9 + $0x248] sm:$0xff]  ;;  %v1829_v12 = vld [vmem:[%s9924_s9 + $0x278] sm:$0xff] }
 0x69b   :  { %6946 = vmatpush3.bf16.xpose.msk.msra.mxu0 %vm8588_vm5, %v6944_v15  ;;  %v1782_v15 = vld [vmem:[%s9924_s9 + $0x100] sm:$0xff] }
 0x69c   :  { %6947 = vmatprep.subr.bf16.mxu0 %v7436_v8  ;;  %v6936_v19 = vpack.c.bf16 %v1783_v18, %v1782_v15 }
 0x69f   :  { %6902 = vmatpush3.bf16.xpose.msk.msra.mxu1 %vm8588_vm5, %v6900_v20  ;;  %v1817_v20 = vld [vmem:[%s9924_s9 + $0x218] sm:$0xff] }
 0x6a0   :  { %6027 = vmatprep.subr.mxu1 %v7437_v37 }
 0x6a3   :  { %6950 = vmatpush3.bf16.xpose.msk.msra.mxu0 %vm8588_vm5, %v6948_v22  ;;  %v6996_v22 = vpack.c.bf16 %v1818_v21, %v1817_v20  ;;  %v1825_v20 = vld [vmem:[%s9924_s9 + $0x258] sm:$0xff]  ;;  %v1831_v21 = vld [vmem:[%s9924_s9 + $0x288] sm:$0xff] }
 0x6a4   :  { %6095 = vmatprep.subr.mxu0 %v7437_v37 }
 0x6a7   :  { %6028 = vmatpush3.xpose.msk.msra.mxu1 %vm1428_vm4, %v1763_v50 }
 0x6a8   :  { %6903 = vmatprep.subr.bf16.mxu1 %v7436_v8 }
 0x6aa   :  { %6030 = vmatmul.mubr.msk.f32.vlgmr.msra.gmra.mrb[10].mxu1 %vm1428_vm4, %v1591_v53 }
 0x6ab   :  { %6906 = vmatpush3.bf16.xpose.msk.msra.mxu1 %vm8588_vm5, %v6904_v28  ;;  %6096 = vmatpush3.xpose.msk.msra.mxu0 %vm1428_vm4, %v1791_v30  ;;  %v1793_v28 = vld [vmem:[%s9924_s9 + $0x158] sm:$0xff] }
 0x6ac   :  { %6963 = vmatprep.subr.bf16.mxu0 %v7436_v8  ;;  %6907 = vmatprep.subr.bf16.mxu1 %v7436_v8 }
 0x6ad   :  { %6046 = vmatprep.mubr.msk.f32.mxu1 %vm7438_vm6, %v7437_v37 }
 0x6ae   :  { %6098 = vmatmul.mubr.msk.f32.vlgmr.msra.gmra.mrb[14].mxu0 %vm1428_vm4, %v1598_v24 }
 0x6af   :  { %6966 = vmatpush3.bf16.xpose.msk.msra.mxu0 %vm8588_vm5, %v6964_v33  ;;  %6131 = vmatprep.mubr.msk.f32.mxu0 %vm7438_vm6, %v7437_v37  ;;  %v1795_v33 = vld [vmem:[%s9924_s9 + $0x168] sm:$0xff] }
 0x6b0   :  { %v1463_v10 = vpop.xlane.xlu0 %1462  ;;  %6967 = vmatprep.subr.bf16.mxu0 %v7436_v8  ;;  %v6956_v24 = vpack.c.bf16 %v1795_v33, %v1794_v23 }
 0x6b1   :  { %v1471_v39 = vmul.f32 0.009090909, %v1463_v10  ;;  %v1798_v10 = vld [vmem:[%s9924_s9 + $0x180] sm:$0x3] }
 0x6b3   :  { %v1475_v42 = vadd.f32 1e-05, %v1471_v39  ;;  %6910 = vmatpush3.bf16.xpose.msk.msra.mxu1 %vm8588_vm5, %v6908_v35  ;;  %v6960_v35 = vpack.c.bf16 %v1797_v40, %v1796_v34  ;;  %v6976_v39 = vpack.c.bf16 %v1807_v36, %v1806_v14  ;;  %v1837_v14 = vld [vmem:[%s9924_s9 + $0x2b8] sm:$0xff]  ;;  %v1843_v36 = vld [vmem:[%s9924_s9 + $0x2e8] sm:$0xff] }
 0x6b4   :  { %6911 = vmatprep.subr.bf16.mxu1 %v7436_v8 }
 0x6b5   :  { %7401 = vrsqrt.f32 %v1475_v42  ;;  %v1600_v42 = vcombine.high %v1584_v29, %v1584_v29 }
 0x6b7   :  { %6970 = vmatpush3.bf16.xpose.msk.msra.mxu0 %vm8588_vm5, %v6968_v57  ;;  %v1808_v57 = vld [vmem:[%s9924_s9 + $0x1d0] sm:$0xff] }
 0x6b8   :  { %6971 = vmatprep.subr.bf16.mxu0 %v7436_v8  ;;  %v1407_v17 = vpop.permute.xlu0 %1406  ;;  %v6980_v16 = vpack.c.bf16 %v1809_v43, %v1808_v57  ;;  %v1838_v43 = vld [vmem:[%s9924_s9 + $0x2c0] sm:$0xff] }
 0x6b9   :  { %v1412_v27 = vadd.f32 %v8567_v44, %v1407_v17  ;;  %v6952_v44 = vpack.c.bf16 %v1793_v28, %v1792_v26  ;;  %v1832_v17 = vld [vmem:[%s9924_s9 + $0x290] sm:$0xff]  ;;  %v1826_v28 = vld [vmem:[%s9924_s9 + $0x260] sm:$0x3] }
 0x6bb   :  { %6914 = vmatpush3.bf16.xpose.msk.msra.mxu1 %vm8588_vm5, %v6912_v38  ;;  %v8904_v50 = vmax.f32 %v1412_v27, 0.0  ;;  %v1810_v38 = vld [vmem:[%s9924_s9 + $0x1e0] sm:$0xff]  ;;  %v7020_v27 = vpack.c.bf16 %v1832_v17, %v1831_v21  ;;  %v1853_v21 = vld [vmem:[%s9924_s9 + $0x338] sm:$0xff]  ;;  %v1859_v17 = vld [vmem:[%s9924_s9 + $0x368] sm:$0xff] }
 0x6bc   :  { %6044 = vmatprep.subr.mxu1 %v7437_v37  ;;  %v6984_v46 = vpack.c.bf16 %v1811_v45, %v1810_v38  ;;  %v1845_v38 = vld [vmem:[%s9924_s9 + $0x2f8] sm:$0xff]  ;;  %v1846_v45 = vld [vmem:[%s9924_s9 + $0x300] sm:$0xff] }
 0x6bd   :  { %v1427_v30 = vmul.f32 %v8561_v49, %v8904_v50 }
 0x6bf   :  { %v7402_v5 = vpop.eup %7401  ;;  %6974 = vmatpush3.bf16.xpose.msk.msra.mxu0 %vm8588_vm5, %v6972_v48  ;;  %v1438_v32 = vsel %vm1428_vm4, %v1427_v30, 0.0  ;;  %v1812_v48 = vld [vmem:[%s9924_s9 + $0x1f0] sm:$0x3]  ;;  %v1833_v30 = vld [vmem:[%s9924_s9 + $0x298] sm:$0x3] }
 0x6c0   :  { %v1487_v58 = vmul.f32 %v7402_v5, %v1483_v41  ;;  %6129 = vmatprep.subr.mxu0 %v7437_v37 }
 0x6c2   :  { %1509 = vperm.xlu1 %7294, %v1487_v58   ;;  %v1495_v52 = vmul.f32 %v1487_v58, %v8655_v25  ;;  %v1814_v25 = vld [vmem:[%s9924_s9 + $0x200] sm:$0xff] }
 0x6c3   :  { %6045 = vmatpush3.xpose.msk.msra.mxu1 %vm1428_vm4, %v1770_v56  ;;  %v6988_v63 = vpack.c.bf16 %v1814_v25, %v1813_v54  ;;  %v1827_v54 = vld [vmem:[%s9924_s9 + $0x268] sm:$0xff] }
 0x6c4   :  { %6927 = vmatprep.subr.bf16.mxu1 %v7436_v8  ;;  %v1499_v53 = vsub.f32 %v1491_v62, %v1495_v52 }
 0x6c6   :  { %6047 = vmatmul.mubr.msk.f32.vlgmr.msra.gmra.mrb[12].mxu1 %vm1428_vm4, %v1599_v1  ;;  %1533 = vperm.xlu0 %7293, %v1499_v53   ;;  %v1820_v53 = vld [vmem:[%s9924_s9 + $0x230] sm:$0xff] }
 0x6c7   :  { %6930 = vmatpush3.bf16.xpose.msk.msra.mxu1 %vm8588_vm5, %v6928_v0  ;;  %6130 = vmatpush3.xpose.msk.msra.mxu0 %vm1428_vm4, %v1805_v3  ;;  %v1821_v3 = vld [vmem:[%s9924_s9 + $0x238] sm:$0xff] }
 0x6c8   :  { %6931 = vmatprep.subr.bf16.mxu1 %v7436_v8  ;;  %6080 = vmatprep.mubr.msk.f32.mxu1 %vm7438_vm6, %v7437_v37  ;;  %v7000_v25 = vpack.c.bf16 %v1821_v3, %v1820_v53 }
 0x6c9   :  { %6987 = vmatprep.subr.bf16.mxu0 %v7436_v8 }
 0x6ca   :  { %6132 = vmatmul.mubr.msk.f32.vlgmr.msra.gmra.mrb[16].mxu0 %vm1428_vm4, %v1602_v4 }
 0x6cb   :  { %6990 = vmatpush3.bf16.xpose.msk.msra.mxu0 %vm8588_vm5, %v6988_v63  ;;  %6165 = vmatprep.mubr.msk.f32.mxu0 %vm7438_vm6, %v7437_v37 }
 0x6cc   :  { %6991 = vmatprep.subr.bf16.mxu0 %v7436_v8 }
 0x6cf   :  { %6934 = vmatpush3.bf16.xpose.msk.msra.mxu1 %vm8588_vm5, %v6932_v9  ;;  %v1822_v9 = vld [vmem:[%s9924_s9 + $0x240] sm:$0xff] }
 0x6d0   :  { %6935 = vmatprep.subr.bf16.mxu1 %v7436_v8  ;;  %v7004_v15 = vpack.c.bf16 %v1823_v11, %v1822_v9  ;;  %v1850_v11 = vld [vmem:[%s9924_s9 + $0x320] sm:$0xff] }
 0x6d3   :  { %6994 = vmatpush3.bf16.xpose.msk.msra.mxu0 %vm8588_vm5, %v6992_v13  ;;  %v1830_v13 = vld [vmem:[%s9924_s9 + $0x280] sm:$0xff] }
 0x6d4   :  { %6995 = vmatprep.subr.bf16.mxu0 %v7436_v8  ;;  %v7016_v18 = vpack.c.bf16 %v1830_v13, %v1829_v12  ;;  %v1851_v12 = vld [vmem:[%s9924_s9 + $0x328] sm:$0xff]  ;;  %v1857_v13 = vld [vmem:[%s9924_s9 + $0x358] sm:$0xff] }
 0x6d7   :  { %6938 = vmatpush3.bf16.xpose.msk.msra.mxu1 %vm8588_vm5, %v6936_v19  ;;  %v1824_v19 = vld [vmem:[%s9924_s9 + $0x250] sm:$0xff] }
 0x6d8   :  { %6078 = vmatprep.subr.mxu1 %v7437_v37 }
 0x6db   :  { %6998 = vmatpush3.bf16.xpose.msk.msra.mxu0 %vm8588_vm5, %v6996_v22  ;;  %v7008_v22 = vpack.c.bf16 %v1825_v20, %v1824_v19  ;;  %v1852_v20 = vld [vmem:[%s9924_s9 + $0x330] sm:$0xff] }
 0x6dc   :  { %6163 = vmatprep.subr.mxu0 %v7437_v37 }
 0x6df   :  { %6079 = vmatpush3.xpose.msk.msra.mxu1 %vm1428_vm4, %v1784_v55 }
 0x6e0   :  { %6951 = vmatprep.subr.bf16.mxu1 %v7436_v8 }
 0x6e2   :  { %6081 = vmatmul.mubr.msk.f32.vlgmr.msra.gmra.mrb[14].mxu1 %vm1428_vm4, %v1584_v29  ;;  %v1835_v29 = vld [vmem:[%s9924_s9 + $0x2a8] sm:$0xff] }
 0x6e3   :  { %6954 = vmatpush3.bf16.xpose.msk.msra.mxu1 %vm8588_vm5, %v6952_v44  ;;  %6114 = vmatprep.mubr.msk.f32.mxu1 %vm7438_vm6, %v7437_v37  ;;  %v1834_v44 = vld [vmem:[%s9924_s9 + $0x2a0] sm:$0xff] }
 0x6e4   :  { %6955 = vmatprep.subr.bf16.mxu1 %v7436_v8  ;;  %6164 = vmatpush3.xpose.msk.msra.mxu0 %vm1428_vm4, %v1819_v31  ;;  %v1841_v31 = vld [vmem:[%s9924_s9 + $0x2d8] sm:$0xff]  ;;  %v7024_v33 = vpack.c.bf16 %v1835_v29, %v1834_v44  ;;  %v1854_v29 = vld [vmem:[%s9924_s9 + $0x340] sm:$0x3] }
 0x6e5   :  { %1439 = vadd.xlane.f32.xlu0 %v1438_v32  ;;  %7011 = vmatprep.subr.bf16.mxu0 %v7436_v8  ;;  %v1842_v32 = vld [vmem:[%s9924_s9 + $0x2e0] sm:$0xff] }
 0x6e6   :  { %v7036_v40 = vpack.c.bf16 %v1842_v32, %v1841_v31  ;;  %v1861_v32 = vld [vmem:[%s9924_s9 + $0x378] sm:$0x3] }
 0x6eb   :  { %6958 = vmatpush3.bf16.xpose.msk.msra.mxu1 %vm8588_vm5, %v6956_v24 }
 0x6ec   :  { %6959 = vmatprep.subr.bf16.mxu1 %v7436_v8 }
 0x6f3   :  { %6962 = vmatpush3.bf16.xpose.msk.msra.mxu1 %vm8588_vm5, %v6960_v35 }
 0x6f4   :  { %6112 = vmatprep.subr.mxu1 %v7437_v37 }
 0x6fb   :  { %6113 = vmatpush3.xpose.msk.msra.mxu1 %vm1428_vm4, %v1798_v10  ;;  %v1836_v10 = vld [vmem:[%s9924_s9 + $0x2b0] sm:$0xff] }
 0x6fc   :  { %6975 = vmatprep.subr.bf16.mxu1 %v7436_v8 }
 0x6fe   :  { %6115 = vmatmul.mubr.msk.f32.vlgmr.msra.gmra.mrb[16].mxu1 %vm1428_vm4, %v1600_v42  ;;  %v7028_v42 = vpack.c.bf16 %v1837_v14, %v1836_v10  ;;  %v1863_v10 = vld [vmem:[%s9924_s9 + $0x388] sm:$0xff]  ;;  %v1869_v14 = vld [vmem:[%s9924_s9 + $0x3b8] sm:$0xff] }
 0x6ff   :  { %6978 = vmatpush3.bf16.xpose.msk.msra.mxu1 %vm8588_vm5, %v6976_v39  ;;  %6148 = vmatprep.mubr.msk.f32.mxu1 %vm7438_vm6, %v7437_v37  ;;  %v1844_v39 = vld [vmem:[%s9924_s9 + $0x2f0] sm:$0xff] }
 0x700   :  { %6979 = vmatprep.subr.bf16.mxu1 %v7436_v8  ;;  %v7040_v57 = vpack.c.bf16 %v1844_v39, %v1843_v36  ;;  %v1870_v39 = vld [vmem:[%s9924_s9 + $0x3c0] sm:$0xff] }
 0x707   :  { %6982 = vmatpush3.bf16.xpose.msk.msra.mxu1 %vm8588_vm5, %v6980_v16  ;;  %v1839_v16 = vld [vmem:[%s9924_s9 + $0x2c8] sm:$0xff] }
 0x708   :  { %6983 = vmatprep.subr.bf16.mxu1 %v7436_v8 }
 0x70f   :  { %6986 = vmatpush3.bf16.xpose.msk.msra.mxu1 %vm8588_vm5, %v6984_v46  ;;  %v7032_v46 = vpack.c.bf16 %v1839_v16, %v1838_v43 }
 0x710   :  { %6146 = vmatprep.subr.mxu1 %v7437_v37 }
 0x717   :  { %6147 = vmatpush3.xpose.msk.msra.mxu1 %vm1428_vm4, %v1812_v48  ;;  %v7044_v48 = vpack.c.bf16 %v1846_v45, %v1845_v38 }
 0x718   :  { %6999 = vmatprep.subr.bf16.mxu1 %v7436_v8 }
 0x721   :  { %v1437_v41 = vpop.xlane.xlu1 %1436 }
 0x722   :  { %v8992_v5 = vmul.f32 0.009090909, %v1437_v41 }
 0x724   :  { %v1448_v56 = vsub.f32 %v8697_v2, %v8992_v5 }
 0x726   :  { %v1452_v58 = vmul.f32 %v1448_v56, %v1448_v56 }
 0x728   :  { %v1456_v60 = vmul.f32 %v8561_v49, %v1452_v58 }
 0x72a   :  { %v1464_v61 = vsel %vm1428_vm4, %v1456_v60, 0.0  ;;  %v1840_v60 = vld [vmem:[%s9924_s9 + $0x2d0] sm:$0x3] }
 0x72b   :  { %1465 = vadd.xlane.f32.xlu1 %v1464_v61 }
 0x741   :  { %v1510_v62 = vpop.permute.xlu1 %1509 }
 0x742   :  { %v1523_v52 = vmul.f32 %v1510_v62, %v8563_v51  ;;  %v1828_v51 = vld [vmem:[%s9924_s9 + $0x270] sm:$0xff] }
 0x743   :  { %v7012_v6 = vpack.c.bf16 %v1828_v51, %v1827_v54  ;;  %v1855_v54 = vld [vmem:[%s9924_s9 + $0x348] sm:$0xff]  ;;  %v1856_v51 = vld [vmem:[%s9924_s9 + $0x350] sm:$0xff] }
 0x745   :  { %v1534_v0 = vpop.permute.xlu0 %1533 }
 0x746   :  { %v8999_v1 = vadd.f32 %v1534_v0, %v1523_v52  ;;  %v1848_v0 = vld [vmem:[%s9924_s9 + $0x310] sm:$0xff] }
 0x748   :  { %v1610_v49 = vrot.slane %v8999_v1, %v8675_v47  ;;  %v1603_v41 = vcombine.high %v8999_v1, %v8999_v1  ;;  %v1849_v1 = vld [vmem:[%s9924_s9 + $0x318] sm:$0xff] }
 0x74a   :  { %v1618_v63 = vcombine.high %v1610_v49, %v1610_v49  ;;  %v1626_v4 = vrot.slane %v1610_v49, %v8675_v47  ;;  %v1617_v56 = vrot.slane %v1603_v41, %v8675_v47  ;;  %v1847_v49 = vld [vmem:[%s9924_s9 + $0x308] sm:$0x3] }
 0x74c   :  { %v1640_v7 = vrot.slane %v1618_v63, %v8675_v47  ;;  %6149 = vmatmul.mubr.msk.f32.vlgmr.msra.gmra.mrb[18].mxu1 %vm1428_vm4, %v1626_v4  ;;  %v1648_v24 = vcombine.high %v1626_v4, %v1626_v4  ;;  %v1619_v3 = vcombine.high %v1617_v56, %v1617_v56  ;;  %v7048_v63 = vpack.c.bf16 %v1849_v1, %v1848_v0  ;;  %v1866_v1 = vld [vmem:[%s9924_s9 + $0x3a0] sm:$0xff] }
 0x74d   :  { %7002 = vmatpush3.bf16.xpose.msk.msra.mxu1 %vm8588_vm5, %v7000_v25  ;;  %6182 = vmatprep.mubr.msk.f32.mxu1 %vm7438_vm6, %v7437_v37  ;;  %v1633_v4 = vrot.slane %v1617_v56, %v8675_v47 }
 0x74e   :  { %6166 = vmatmul.mubr.msk.f32.vlgmr.msra.gmra.mrb[18].mxu0 %vm1428_vm4, %v1640_v7  ;;  %7003 = vmatprep.subr.bf16.mxu1 %v7436_v8  ;;  %v1650_v35 = vcombine.high %v1640_v7, %v1640_v7  ;;  %v7060_v7 = vpack.c.bf16 %v1856_v51, %v1855_v54  ;;  %v1647_v9 = vrot.slane %v1619_v3, %v8675_v47  ;;  %v1484_v3 = vld [vmem:[%s9922_s7 + $0x10] sm:$0xff] }
 0x74f   :  { %7014 = vmatpush3.bf16.xpose.msk.msra.mxu0 %vm8588_vm5, %v7012_v6  ;;  %6199 = vmatprep.mubr.msk.f32.mxu0 %vm7438_vm6, %v7437_v37 }
 0x750   :  { %7015 = vmatprep.subr.bf16.mxu0 %v7436_v8 }
 0x755   :  { %7006 = vmatpush3.bf16.xpose.msk.msra.mxu1 %vm8588_vm5, %v7004_v15  ;;  %v1858_v15 = vld [vmem:[%s9924_s9 + $0x360] sm:$0xff] }
 0x756   :  { %7007 = vmatprep.subr.bf16.mxu1 %v7436_v8  ;;  %v7064_v19 = vpack.c.bf16 %v1858_v15, %v1857_v13 }
 0x757   :  { %7018 = vmatpush3.bf16.xpose.msk.msra.mxu0 %vm8588_vm5, %v7016_v18  ;;  %v7052_v18 = vpack.c.bf16 %v1851_v12, %v1850_v11 }
 0x758   :  { %7019 = vmatprep.subr.bf16.mxu0 %v7436_v8 }
 0x75d   :  { %7010 = vmatpush3.bf16.xpose.msk.msra.mxu1 %vm8588_vm5, %v7008_v22  ;;  %v1860_v22 = vld [vmem:[%s9924_s9 + $0x370] sm:$0xff] }
 0x75e   :  { %6180 = vmatprep.subr.mxu1 %v7437_v37 }
 0x75f   :  { %7022 = vmatpush3.bf16.xpose.msk.msra.mxu0 %vm8588_vm5, %v7020_v27  ;;  %v7056_v27 = vpack.c.bf16 %v1853_v21, %v1852_v20  ;;  %v1875_v20 = vld [vmem:[%s9924_s9 + $0x3e8] sm:$0x3] }
 0x760   :  { %6197 = vmatprep.subr.mxu0 %v7437_v37 }
 0x761   :  { %v2063_v55 = vpop.f32.mrb[8].mxu1 }
 0x762   :  { %v6014_v26 = vpop.f32.mrb[9].mxu1  ;;  %v4951_v61 = vsel %vm4950_vm7, %v2063_v55, 0.0  ;;  %v7068_v55 = vpack.c.bf16 %v1860_v22, %v1859_v17 }
 0x765   :  { %6181 = vmatpush3.xpose.msk.msra.mxu1 %vm1428_vm4, %v1826_v28  ;;  %v9084_v23 = vpop.f32.mrb[12].mxu0 }
 0x766   :  { %v6065_v34 = vpop.f32.mrb[13].mxu0  ;;  %7023 = vmatprep.subr.bf16.mxu1 %v7436_v8  ;;  %v4956_v31 = vsel %vm4950_vm7, %v9084_v23, 0.0  ;;  %v1862_v23 = vld [vmem:[%s9924_s9 + $0x380] sm:$0xff] }
 0x767   :  { %6198 = vmatpush3.xpose.msk.msra.mxu0 %vm1428_vm4, %v1833_v30  ;;  %v1649_v34 = vcombine.high %v1633_v4, %v1633_v4  ;;  %v7072_v36 = vpack.c.bf16 %v1863_v10, %v1862_v23 }
 0x768   :  { %6183 = vmatmul.mubr.msk.f32.vlgmr.msra.gmra.mrb[20].mxu1 %vm1428_vm4, %v1648_v24  ;;  %7035 = vmatprep.subr.bf16.mxu0 %v7436_v8 }
 0x769   :  { %7026 = vmatpush3.bf16.xpose.msk.msra.mxu1 %vm8588_vm5, %v7024_v33  ;;  %6216 = vmatprep.mubr.msk.f32.mxu1 %vm7438_vm6, %v7437_v37 }
 0x76a   :  { %6200 = vmatmul.mubr.msk.f32.vlgmr.msra.gmra.mrb[20].mxu0 %vm1428_vm4, %v1650_v35  ;;  %7027 = vmatprep.subr.bf16.mxu1 %v7436_v8  ;;  %v1651_v35 = vcombine.high %v1647_v9, %v1647_v9 }
 0x76b   :  { %7038 = vmatpush3.bf16.xpose.msk.msra.mxu0 %vm8588_vm5, %v7036_v40  ;;  %6233 = vmatprep.mubr.msk.f32.mxu0 %vm7438_vm6, %v7437_v37 }
 0x76c   :  { %7039 = vmatprep.subr.bf16.mxu0 %v7436_v8 }
 0x771   :  { %7030 = vmatpush3.bf16.xpose.msk.msra.mxu1 %vm8588_vm5, %v7028_v42  ;;  %v7084_v42 = vpack.c.bf16 %v1870_v39, %v1869_v14 }
 0x772   :  { %7031 = vmatprep.subr.bf16.mxu1 %v7436_v8  ;;  %v1440_v21 = vpop.xlane.xlu0 %1439 }
 0x773   :  { %7042 = vmatpush3.bf16.xpose.msk.msra.mxu0 %vm8588_vm5, %v7040_v57  ;;  %v9314_v17 = vmul.f32 0.009090909, %v1440_v21  ;;  %v1891_v21 = vld [vmem:[%s9924_s9 + $0x468] sm:$0xff] }
 0x774   :  { %7043 = vmatprep.subr.bf16.mxu0 %v7436_v8 }
 0x775   :  { %v1449_v22 = vsub.f32 %v8904_v50, %v9314_v17 }
 0x779   :  { %7034 = vmatpush3.bf16.xpose.msk.msra.mxu1 %vm8588_vm5, %v7032_v46 }
 0x77a   :  { %6214 = vmatprep.subr.mxu1 %v7437_v37 }
 0x77b   :  { %7046 = vmatpush3.bf16.xpose.msk.msra.mxu0 %vm8588_vm5, %v7044_v48 }
 0x77c   :  { %6231 = vmatprep.subr.mxu0 %v7437_v37 }
 0x77d   :  { %v2156_v58 = vpop.f32.mrb[10].mxu1 }
 0x77e   :  { %v4952_v62 = vsel %vm4950_vm7, %v2156_v58, 0.0  ;;  %v6031_v52 = vpop.f32.mrb[11].mxu1  ;;  %v1864_v58 = vld [vmem:[%s9924_s9 + $0x390] sm:$0xff] }
 0x77f   :  { %v4953_v53 = vadd.f32 %v4952_v62, %v4951_v61  ;;  %v1871_v61 = vld [vmem:[%s9924_s9 + $0x3c8] sm:$0xff]  ;;  %v1872_v52 = vld [vmem:[%s9924_s9 + $0x3d0] sm:$0xff] }
 0x780   :  { %v7088_v0 = vpack.c.bf16 %v1872_v52, %v1871_v61  ;;  %v1878_v52 = vld [vmem:[%s9924_s9 + $0x400] sm:$0xff] }
 0x781   :  { %v9160_v25 = vpop.f32.mrb[14].mxu0  ;;  %6215 = vmatpush3.xpose.msk.msra.mxu1 %vm1428_vm4, %v1840_v60  ;;  %v1865_v60 = vld [vmem:[%s9924_s9 + $0x398] sm:$0xff] }
 0x782   :  { %v6099_v6 = vpop.f32.mrb[15].mxu0  ;;  %7047 = vmatprep.subr.bf16.mxu1 %v7436_v8  ;;  %v4960_v45 = vsel %vm4950_vm7, %v9160_v25, 0.0  ;;  %v7076_v62 = vpack.c.bf16 %v1865_v60, %v1864_v58  ;;  %v1492_v25 = vld [vmem:[%s9923_s8 + $0x10] sm:$0xff] }
 0x783   :  { %6232 = vmatpush3.xpose.msk.msra.mxu0 %vm1428_vm4, %v1847_v49  ;;  %v1874_v6 = vld [vmem:[%s9924_s9 + $0x3e0] sm:$0xff] }
 0x784   :  { %6217 = vmatmul.mubr.msk.f32.vlgmr.msra.gmra.mrb[22].mxu1 %vm1428_vm4, %v1633_v4  ;;  %7059 = vmatprep.subr.bf16.mxu0 %v7436_v8  ;;  %v1873_v4 = vld [vmem:[%s9924_s9 + $0x3d8] sm:$0xff] }
 0x785   :  { %7050 = vmatpush3.bf16.xpose.msk.msra.mxu1 %vm8588_vm5, %v7048_v63  ;;  %6250 = vmatprep.mubr.msk.f32.mxu1 %vm7438_vm6, %v7437_v37 }
 0x786   :  { %6234 = vmatmul.mubr.msk.f32.vlgmr.msra.gmra.mrb[22].mxu0 %vm1428_vm4, %v1647_v9  ;;  %7051 = vmatprep.subr.bf16.mxu1 %v7436_v8 }
 0x787   :  { %7062 = vmatpush3.bf16.xpose.msk.msra.mxu0 %vm8588_vm5, %v7060_v7  ;;  %6267 = vmatprep.mubr.msk.f32.mxu0 %vm7438_vm6, %v7437_v37  ;;  %v7092_v7 = vpack.c.bf16 %v1874_v6, %v1873_v4 }
 0x788   :  { %7063 = vmatprep.subr.bf16.mxu0 %v7436_v8 }
 0x78d   :  { %7054 = vmatpush3.bf16.xpose.msk.msra.mxu1 %vm8588_vm5, %v7052_v18 }
 0x78e   :  { %7055 = vmatprep.subr.bf16.mxu1 %v7436_v8 }
 0x78f   :  { %7066 = vmatpush3.bf16.xpose.msk.msra.mxu0 %vm8588_vm5, %v7064_v19  ;;  %v1868_v19 = vld [vmem:[%s9924_s9 + $0x3b0] sm:$0x3] }
 0x790   :  { %7067 = vmatprep.subr.bf16.mxu0 %v7436_v8 }
 0x795   :  { %7058 = vmatpush3.bf16.xpose.msk.msra.mxu1 %vm8588_vm5, %v7056_v27  ;;  %v1453_v27 = vmul.f32 %v1449_v22, %v1449_v22  ;;  %v1889_v22 = vld [vmem:[%s9924_s9 + $0x458] sm:$0x3] }
 0x796   :  { %6248 = vmatprep.subr.mxu1 %v7437_v37 }
 0x797   :  { %7070 = vmatpush3.bf16.xpose.msk.msra.mxu0 %vm8588_vm5, %v7068_v55  ;;  %v7407_v55 = vld [vmem:[%s9928_s13] ss:$0 sm:$0xff] }
 0x798   :  { %6265 = vmatprep.subr.mxu0 %v7437_v37 }
 0x799   :  { %v2249_v26 = vpop.f32.mrb[12].mxu1 }
 0x79a   :  { %v4954_v28 = vsel %vm4950_vm7, %v2249_v26, 0.0  ;;  %v6048_v44 = vpop.f32.mrb[13].mxu1  ;;  %v1457_v26 = vmul.f32 %v7407_v55, %v1453_v27  ;;  %v1897_v27 = vld [vmem:[%s9924_s9 + $0x498] sm:$0xff]  ;;  %v1898_v55 = vld [vmem:[%s9924_s9 + $0x4a0] sm:$0xff] }
 0x79b   :  { %v4955_v30 = vadd.f32 %v4954_v28, %v4953_v53  ;;  %v1867_v53 = vld [vmem:[%s9924_s9 + $0x3a8] sm:$0xff] }
 0x79c   :  { %v7080_v49 = vpack.c.bf16 %v1867_v53, %v1866_v1  ;;  %v1467_v28 = vsel %vm1428_vm4, %v1457_v26, 0.0 }
 0x79d   :  { %v9225_v33 = vpop.f32.mrb[16].mxu0  ;;  %6249 = vmatpush3.xpose.msk.msra.mxu1 %vm1428_vm4, %v1854_v29  ;;  %v4957_v24 = vadd.f32 %v4956_v31, %v4955_v30 }
 0x79e   :  { %v6133_v40 = vpop.f32.mrb[17].mxu0  ;;  %7071 = vmatprep.subr.bf16.mxu1 %v7436_v8  ;;  %v4964_v15 = vsel %vm4950_vm7, %v9225_v33, 0.0 }
 0x79f   :  { %6266 = vmatpush3.xpose.msk.msra.mxu0 %vm1428_vm4, %v1861_v32 }
 0x7a0   :  { %6251 = vmatmul.mubr.msk.f32.vlgmr.msra.gmra.mrb[24].mxu1 %vm1428_vm4, %v1649_v34  ;;  %7083 = vmatprep.subr.bf16.mxu0 %v7436_v8 }
 0x7a1   :  { %6284 = vmatprep.mubr.msk.f32.mxu1 %vm7438_vm6, %v7437_v37  ;;  %7074 = vmatpush3.bf16.xpose.msk.msra.mxu1 %vm8588_vm5, %v7072_v36 }
 0x7a2   :  { %6268 = vmatmul.mubr.msk.f32.vlgmr.msra.gmra.mrb[24].mxu0 %vm1428_vm4, %v1651_v35  ;;  %7075 = vmatprep.subr.bf16.mxu1 %v7436_v8 }
 0x7a3   :  { %6301 = vmatprep.mubr.msk.f32.mxu0 %vm7438_vm6, %v7437_v37  ;;  %7086 = vmatpush3.bf16.xpose.msk.msra.mxu0 %vm8588_vm5, %v7084_v42 }
 0x7a4   :  { %7087 = vmatprep.subr.bf16.mxu0 %v7436_v8 }
 0x7a9   :  { %7078 = vmatpush3.bf16.xpose.msk.msra.mxu1 %vm8588_vm5, %v7076_v62 }
 0x7aa   :  { %7079 = vmatprep.subr.bf16.mxu1 %v7436_v8 }
 0x7ab   :  { %7090 = vmatpush3.bf16.xpose.msk.msra.mxu0 %vm8588_vm5, %v7088_v0  ;;  %v1879_v0 = vld [vmem:[%s9924_s9 + $0x408] sm:$0xff] }
 0x7ac   :  { %7091 = vmatprep.subr.bf16.mxu0 %v7436_v8 }
 0x7b1   :  { %7082 = vmatpush3.bf16.xpose.msk.msra.mxu1 %vm8588_vm5, %v7080_v49  ;;  %v1885_v49 = vld [vmem:[%s9924_s9 + $0x438] sm:$0xff] }
 0x7b2   :  { %6282 = vmatprep.subr.mxu1 %v7437_v37 }
 0x7b3   :  { %7094 = vmatpush3.bf16.xpose.msk.msra.mxu0 %vm8588_vm5, %v7092_v7 }
 0x7b4   :  { %6299 = vmatprep.subr.mxu0 %v7437_v37 }
 0x7b5   :  { %v2435_v57 = vpop.f32.mrb[14].mxu1 }
 0x7b6   :  { %v4958_v43 = vsel %vm4950_vm7, %v2435_v57, 0.0  ;;  %v6082_v16 = vpop.f32.mrb[15].mxu1 }
 0x7b7   :  { %v4959_v38 = vadd.f32 %v4958_v43, %v4957_v24 }
 0x7b8   :  { %v1466_v46 = vpop.xlane.xlu1 %1465 }
 0x7b9   :  { %v1472_v48 = vmul.f32 0.009090909, %v1466_v46  ;;  %v4961_v41 = vadd.f32 %v4960_v45, %v4959_v38  ;;  %6283 = vmatpush3.xpose.msk.msra.mxu1 %vm1428_vm4, %v1868_v19  ;;  %v1876_v45 = vld [vmem:[%s9924_s9 + $0x3f0] sm:$0xff]  ;;  %v1877_v46 = vld [vmem:[%s9924_s9 + $0x3f8] sm:$0xff]  ;;  %v1882_v19 = vld [vmem:[%s9924_s9 + $0x420] sm:$0x3] }
 0x7ba   :  { %7095 = vmatprep.subr.bf16.mxu1 %v7436_v8 }
 0x7bb   :  { %v1476_v56 = vadd.f32 1e-05, %v1472_v48  ;;  %6300 = vmatpush3.xpose.msk.msra.mxu0 %vm1428_vm4, %v1875_v20  ;;  %v1890_v20 = vld [vmem:[%s9924_s9 + $0x460] sm:$0xff] }
 0x7bc   :  { %7107 = vmatprep.subr.bf16.mxu0 %v7436_v8  ;;  %v7120_v26 = vpack.c.bf16 %v1891_v21, %v1890_v20  ;;  %v1909_v20 = vld [vmem:[%s9924_s9 + $0x4f8] sm:$0xff]  ;;  %v1916_v21 = vld [vmem:[%s9924_s9 + $0x530] sm:$0xff] }
 0x7bd   :  { %7403 = vrsqrt.f32 %v1476_v56  ;;  %v7096_v56 = vpack.c.bf16 %v1877_v46, %v1876_v45  ;;  %v1902_v45 = vld [vmem:[%s9924_s9 + $0x4c0] sm:$0xff] }
 0x7c7   :  { %v7404_v54 = vpop.eup %7403 }
 0x7c8   :  { %v1488_v51 = vmul.f32 %v7404_v54, %v1484_v3  ;;  %v1886_v54 = vld [vmem:[%s9924_s9 + $0x440] sm:$0xff] }
 0x7ca   :  { %1514 = vperm.xlu0 %7293, %v1488_v51   ;;  %v1496_v63 = vmul.f32 %v1488_v51, %v8992_v5 }
 0x7cc   :  { %v1500_v9 = vsub.f32 %v1492_v25, %v1496_v63  ;;  %v7100_v63 = vpack.c.bf16 %v1879_v0, %v1878_v52  ;;  %v1903_v0 = vld [vmem:[%s9924_s9 + $0x4c8] sm:$0x3] }
 0x7ce   :  { %1538 = vperm.xlu1 %7294, %v1500_v9   ;;  %v7112_v9 = vpack.c.bf16 %v1886_v54, %v1885_v49 }
 0x7d1   :  { %v2621_v5 = vpop.f32.mrb[16].mxu1 }
 0x7d2   :  { %v4962_v11 = vsel %vm4950_vm7, %v2621_v5, 0.0  ;;  %v6116_v12 = vpop.f32.mrb[17].mxu1  ;;  %v1880_v5 = vld [vmem:[%s9924_s9 + $0x410] sm:$0xff] }
 0x7d3   :  { %v4963_v13 = vadd.f32 %v4962_v11, %v4961_v41  ;;  %v1883_v41 = vld [vmem:[%s9924_s9 + $0x428] sm:$0xff]  ;;  %v1881_v11 = vld [vmem:[%s9924_s9 + $0x418] sm:$0xff] }
 0x7d4   :  { %v1887_v12 = vld [vmem:[%s9924_s9 + $0x448] sm:$0xff] }
 0x7d5   :  { %v4965_v18 = vadd.f32 %v4964_v15, %v4963_v13  ;;  %v1888_v13 = vld [vmem:[%s9924_s9 + $0x450] sm:$0xff]  ;;  %v7104_v15 = vpack.c.bf16 %v1881_v11, %v1880_v5  ;;  %v1913_v5 = vld [vmem:[%s9924_s9 + $0x518] sm:$0xff]  ;;  %v1914_v11 = vld [vmem:[%s9924_s9 + $0x520] sm:$0xff] }
 0x7f2   :  { %1468 = vadd.xlane.f32.xlu1 %v1467_v28 }
 0x81f   :  { %v2807_v44 = vpop.f32.mrb[18].mxu1 }
 0x820   :  { %v4966_v29 = vsel %vm4950_vm7, %v2807_v44, 0.0  ;;  %v6150_v30 = vpop.f32.mrb[19].mxu1  ;;  %v7132_v44 = vpack.c.bf16 %v1898_v55, %v1897_v27  ;;  %v1910_v55 = vld [vmem:[%s9924_s9 + $0x500] sm:$0x3] }
 0x821   :  { %v4967_v31 = vadd.f32 %v4966_v29, %v4965_v18  ;;  %v2900_v32 = vpop.f32.mrb[18].mxu0  ;;  %v7116_v18 = vpack.c.bf16 %v1888_v13, %v1887_v12  ;;  %v1892_v30 = vld [vmem:[%s9924_s9 + $0x470] sm:$0xff] }
 0x822   :  { %v4968_v33 = vsel %vm4950_vm7, %v2900_v32, 0.0  ;;  %v6167_v24 = vpop.f32.mrb[19].mxu0 }
 0x823   :  { %v4969_v34 = vadd.f32 %v4968_v33, %v4967_v31  ;;  %v1893_v31 = vld [vmem:[%s9924_s9 + $0x478] sm:$0xff] }
 0x83b   :  { %v2993_v40 = vpop.f32.mrb[20].mxu1 }
 0x83c   :  { %v4970_v35 = vsel %vm4950_vm7, %v2993_v40, 0.0  ;;  %v6184_v23 = vpop.f32.mrb[21].mxu1  ;;  %v1900_v40 = vld [vmem:[%s9924_s9 + $0x4b0] sm:$0xff] }
 0x83d   :  { %v4971_v10 = vadd.f32 %v4970_v35, %v4969_v34  ;;  %v3086_v14 = vpop.f32.mrb[20].mxu0  ;;  %v1899_v34 = vld [vmem:[%s9924_s9 + $0x4a8] sm:$0xff] }
 0x83e   :  { %v4972_v36 = vsel %vm4950_vm7, %v3086_v14, 0.0  ;;  %v6201_v39 = vpop.f32.mrb[21].mxu0 }
 0x83f   :  { %v4973_v42 = vadd.f32 %v4972_v36, %v4971_v10  ;;  %v7124_v10 = vpack.c.bf16 %v1893_v31, %v1892_v30  ;;  %v1926_v30 = vld [vmem:[%s9924_s9 + $0x580] sm:$0xff] }
 0x849   :  { %v1515_v57 = vpop.permute.xlu0 %1514 }
 0x84a   :  { %v1524_v43 = vmul.f32 %v1515_v57, %v8697_v2  ;;  %v1884_v2 = vld [vmem:[%s9924_s9 + $0x430] sm:$0xff]  ;;  %v1894_v57 = vld [vmem:[%s9924_s9 + $0x480] sm:$0xff] }
 0x84b   :  { %v7108_v61 = vpack.c.bf16 %v1884_v2, %v1883_v41 }
 0x84d   :  { %v1539_v16 = vpop.permute.xlu1 %1538 }
 0x84e   :  { %v9327_v38 = vadd.f32 %v1539_v16, %v1524_v43  ;;  %v1895_v43 = vld [vmem:[%s9924_s9 + $0x488] sm:$0xff]  ;;  %v1901_v16 = vld [vmem:[%s9924_s9 + $0x4b8] sm:$0xff] }
 0x84f   :  { %v7128_v46 = vpack.c.bf16 %v1895_v43, %v1894_v57  ;;  %v7140_v41 = vpack.c.bf16 %v1902_v45, %v1901_v16  ;;  %v1929_v57 = vld [vmem:[%s9924_s9 + $0x598] sm:$0xff]  ;;  %v1930_v43 = vld [vmem:[%s9924_s9 + $0x5a0] sm:$0xff] }
 0x850   :  { %v1659_v48 = vrot.slane %v9327_v38, %v8675_v47  ;;  %v1652_v2 = vcombine.high %v9327_v38, %v9327_v38  ;;  %v1904_v38 = vld [vmem:[%s9924_s9 + $0x4d0] sm:$0xff]  ;;  %v7188_v45 = vpack.c.bf16 %v1930_v43, %v1929_v57  ;;  %v1958_v57 = vld [vmem:[%s9924_s9 + $0x680] sm:$0xff] }
 0x852   :  { %v1667_v58 = vcombine.high %v1659_v48, %v1659_v48  ;;  %v1675_v60 = vrot.slane %v1659_v48, %v8675_v47 }
 0x854   :  { %v1689_v62 = vrot.slane %v1667_v58, %v8675_v47  ;;  %6285 = vmatmul.mubr.msk.f32.vlgmr.msra.gmra.mrb[26].mxu1 %vm1428_vm4, %v1675_v60  ;;  %v1697_v28 = vcombine.high %v1675_v60, %v1675_v60  ;;  %v1666_v60 = vrot.slane %v1652_v2, %v8675_v47 }
 0x855   :  { %7098 = vmatpush3.bf16.xpose.msk.msra.mxu1 %vm8588_vm5, %v7096_v56  ;;  %6318 = vmatprep.mubr.msk.f32.mxu1 %vm7438_vm6, %v7437_v37 }
 0x856   :  { %6302 = vmatmul.mubr.msk.f32.vlgmr.msra.gmra.mrb[26].mxu0 %vm1428_vm4, %v1689_v62  ;;  %7099 = vmatprep.subr.bf16.mxu1 %v7436_v8  ;;  %v1699_v29 = vcombine.high %v1689_v62, %v1689_v62  ;;  %v1905_v62 = vld [vmem:[%s9924_s9 + $0x4d8] sm:$0xff]  ;;  %v1668_v52 = vcombine.high %v1666_v60, %v1666_v60  ;;  %v1682_v49 = vrot.slane %v1666_v60, %v8675_v47  ;;  %v1932_v60 = vld [vmem:[%s9924_s9 + $0x5b0] sm:$0xff] }
 0x857   :  { %7110 = vmatpush3.bf16.xpose.msk.msra.mxu0 %vm8588_vm5, %v7108_v61  ;;  %v3179_v1 = vpop.f32.mrb[22].mxu1  ;;  %6335 = vmatprep.mubr.msk.f32.mxu0 %vm7438_vm6, %v7437_v37  ;;  %v1896_v61 = vld [vmem:[%s9924_s9 + $0x490] sm:$0x3] }
 0x858   :  { %v4974_v53 = vsel %vm4950_vm7, %v3179_v1, 0.0  ;;  %v6218_v3 = vpop.f32.mrb[23].mxu1  ;;  %7111 = vmatprep.subr.bf16.mxu0 %v7436_v8  ;;  %v1911_v1 = vld [vmem:[%s9924_s9 + $0x508] sm:$0xff] }
 0x859   :  { %v4975_v51 = vadd.f32 %v4974_v53, %v4973_v42  ;;  %v3272_v25 = vpop.f32.mrb[22].mxu0  ;;  %v7136_v42 = vpack.c.bf16 %v1900_v40, %v1899_v34  ;;  %v1912_v53 = vld [vmem:[%s9924_s9 + $0x510] sm:$0xff]  ;;  %v7144_v3 = vpack.c.bf16 %v1905_v62, %v1904_v38  ;;  %v1921_v40 = vld [vmem:[%s9924_s9 + $0x558] sm:$0xff]  ;;  %v1939_v62 = vld [vmem:[%s9924_s9 + $0x5e8] sm:$0xff] }
 0x85a   :  { %v4976_v4 = vsel %vm4950_vm7, %v3272_v25, 0.0  ;;  %v6235_v6 = vpop.f32.mrb[23].mxu0  ;;  %v7156_v54 = vpack.c.bf16 %v1912_v53, %v1911_v1  ;;  %v1485_v25 = vld [vmem:[%s9922_s7 + $0x18] sm:$0xff]  ;;  %v1920_v34 = vld [vmem:[%s9924_s9 + $0x550] sm:$0xff] }
 0x85b   :  { %v4977_v7 = vadd.f32 %v4976_v4, %v4975_v51  ;;  %v1696_v51 = vrot.slane %v1668_v52, %v8675_v47  ;;  %v1906_v4 = vld [vmem:[%s9924_s9 + $0x4e0] sm:$0xff]  ;;  %v1907_v6 = vld [vmem:[%s9924_s9 + $0x4e8] sm:$0xff] }
 0x85c   :  { %v7148_v12 = vpack.c.bf16 %v1907_v6, %v1906_v4  ;;  %v1936_v6 = vld [vmem:[%s9924_s9 + $0x5d0] sm:$0xff] }
 0x85d   :  { %7102 = vmatpush3.bf16.xpose.msk.msra.mxu1 %vm8588_vm5, %v7100_v63 }
 0x85e   :  { %7103 = vmatprep.subr.bf16.mxu1 %v7436_v8 }
 0x85f   :  { %7114 = vmatpush3.bf16.xpose.msk.msra.mxu0 %vm8588_vm5, %v7112_v9  ;;  %v1493_v9 = vld [vmem:[%s9923_s8 + $0x18] sm:$0xff] }
 0x860   :  { %7115 = vmatprep.subr.bf16.mxu0 %v7436_v8 }
 0x865   :  { %7106 = vmatpush3.bf16.xpose.msk.msra.mxu1 %vm8588_vm5, %v7104_v15 }
 0x866   :  { %6316 = vmatprep.subr.mxu1 %v7437_v37 }
 0x867   :  { %7118 = vmatpush3.bf16.xpose.msk.msra.mxu0 %vm8588_vm5, %v7116_v18  ;;  %v7160_v18 = vpack.c.bf16 %v1914_v11, %v1913_v5  ;;  %v1943_v5 = vld [vmem:[%s9924_s9 + $0x608] sm:$0xff]  ;;  %v1944_v11 = vld [vmem:[%s9924_s9 + $0x610] sm:$0xff] }
 0x868   :  { %6333 = vmatprep.subr.mxu0 %v7437_v37 }
 0x86d   :  { %6317 = vmatpush3.xpose.msk.msra.mxu1 %vm1428_vm4, %v1882_v19  ;;  %v1908_v19 = vld [vmem:[%s9924_s9 + $0x4f0] sm:$0xff] }
 0x86e   :  { %7119 = vmatprep.subr.bf16.mxu1 %v7436_v8 }
 0x86f   :  { %6334 = vmatpush3.xpose.msk.msra.mxu0 %vm1428_vm4, %v1889_v22  ;;  %v7152_v22 = vpack.c.bf16 %v1909_v20, %v1908_v19 }
 0x870   :  { %6319 = vmatmul.mubr.msk.f32.vlgmr.msra.gmra.mrb[28].mxu1 %vm1428_vm4, %v1697_v28  ;;  %7131 = vmatprep.subr.bf16.mxu0 %v7436_v8  ;;  %v1919_v28 = vld [vmem:[%s9924_s9 + $0x548] sm:$0xff] }
 0x871   :  { %7122 = vmatpush3.bf16.xpose.msk.msra.mxu1 %vm8588_vm5, %v7120_v26  ;;  %6352 = vmatprep.mubr.msk.f32.mxu1 %vm7438_vm6, %v7437_v37  ;;  %v1918_v26 = vld [vmem:[%s9924_s9 + $0x540] sm:$0xff] }
 0x872   :  { %6336 = vmatmul.mubr.msk.f32.vlgmr.msra.gmra.mrb[28].mxu0 %vm1428_vm4, %v1699_v29  ;;  %7123 = vmatprep.subr.bf16.mxu1 %v7436_v8  ;;  %v1925_v29 = vld [vmem:[%s9924_s9 + $0x578] sm:$0xff]  ;;  %v7168_v31 = vpack.c.bf16 %v1919_v28, %v1918_v26 }
 0x873   :  { %7134 = vmatpush3.bf16.xpose.msk.msra.mxu0 %vm8588_vm5, %v7132_v44  ;;  %v3365_v32 = vpop.f32.mrb[24].mxu1  ;;  %6369 = vmatprep.mubr.msk.f32.mxu0 %vm7438_vm6, %v7437_v37  ;;  %v1917_v44 = vld [vmem:[%s9924_s9 + $0x538] sm:$0x3] }
 0x874   :  { %v4978_v33 = vsel %vm4950_vm7, %v3365_v32, 0.0  ;;  %v6252_v24 = vpop.f32.mrb[25].mxu1  ;;  %7135 = vmatprep.subr.bf16.mxu0 %v7436_v8  ;;  %v1698_v32 = vcombine.high %v1682_v49, %v1682_v49  ;;  %v1945_v26 = vld [vmem:[%s9924_s9 + $0x618] sm:$0x3] }
 0x875   :  { %v4979_v35 = vadd.f32 %v4978_v33, %v4977_v7  ;;  %v3458_v23 = vpop.f32.mrb[24].mxu0  ;;  %v7180_v33 = vpack.c.bf16 %v1926_v30, %v1925_v29  ;;  %v1700_v24 = vcombine.high %v1696_v51, %v1696_v51  ;;  %v1953_v28 = vld [vmem:[%s9924_s9 + $0x658] sm:$0xff] }
 0x876   :  { %v4980_v14 = vsel %vm4950_vm7, %v3458_v23, 0.0  ;;  %v6269_v36 = vpop.f32.mrb[25].mxu0  ;;  %v1928_v23 = vld [vmem:[%s9924_s9 + $0x590] sm:$0xff] }
 0x877   :  { %v9443_v39 = vadd.f32 %v4980_v14, %v4979_v35  ;;  %v1927_v35 = vld [vmem:[%s9924_s9 + $0x588] sm:$0xff]  ;;  %v1922_v36 = vld [vmem:[%s9924_s9 + $0x560] sm:$0xff] }
 0x878   :  { %v7184_v14 = vpack.c.bf16 %v1928_v23, %v1927_v35 }
 0x879   :  { %7126 = vmatpush3.bf16.xpose.msk.msra.mxu1 %vm8588_vm5, %v7124_v10  ;;  %v7172_v10 = vpack.c.bf16 %v1921_v40, %v1920_v34  ;;  %v1955_v34 = vld [vmem:[%s9924_s9 + $0x668] sm:$0xff]  ;;  %v1956_v40 = vld [vmem:[%s9924_s9 + $0x670] sm:$0xff] }
 0x87a   :  { %7127 = vmatprep.subr.bf16.mxu1 %v7436_v8  ;;  %v7232_v23 = vpack.c.bf16 %v1956_v40, %v1955_v34  ;;  %v5017_v40 = vld [vmem:[%s9926_s11] sm:$0xff] }
 0x87b   :  { %7138 = vmatpush3.bf16.xpose.msk.msra.mxu0 %vm8588_vm5, %v7136_v42  ;;  %v1923_v42 = vld [vmem:[%s9924_s9 + $0x568] sm:$0xff] }
 0x87c   :  { %7139 = vmatprep.subr.bf16.mxu0 %v7436_v8  ;;  %v7176_v16 = vpack.c.bf16 %v1923_v42, %v1922_v36  ;;  %v1957_v42 = vld [vmem:[%s9924_s9 + $0x678] sm:$0xff] }
 0x87f   :  { %v1469_v48 = vpop.xlane.xlu1 %1468 }
 0x880   :  { %v1473_v56 = vmul.f32 0.009090909, %v1469_v48  ;;  %v1931_v48 = vld [vmem:[%s9924_s9 + $0x5a8] sm:$0x3] }
 0x881   :  { %7130 = vmatpush3.bf16.xpose.msk.msra.mxu1 %vm8588_vm5, %v7128_v46  ;;  %v1924_v46 = vld [vmem:[%s9924_s9 + $0x570] sm:$0x3] }
 0x882   :  { %v1477_v58 = vadd.f32 1e-05, %v1473_v56  ;;  %6350 = vmatprep.subr.mxu1 %v7437_v37 }
 0x883   :  { %7142 = vmatpush3.bf16.xpose.msk.msra.mxu0 %vm8588_vm5, %v7140_v41 }
 0x884   :  { %7405 = vrsqrt.f32 %v1477_v58  ;;  %6367 = vmatprep.subr.mxu0 %v7437_v37 }
 0x889   :  { %6351 = vmatpush3.xpose.msk.msra.mxu1 %vm1428_vm4, %v1896_v61  ;;  %v1933_v61 = vld [vmem:[%s9924_s9 + $0x5b8] sm:$0xff] }
 0x88a   :  { %7143 = vmatprep.subr.bf16.mxu1 %v7436_v8  ;;  %v7192_v52 = vpack.c.bf16 %v1933_v61, %v1932_v60 }
 0x88b   :  { %6368 = vmatpush3.xpose.msk.msra.mxu0 %vm1428_vm4, %v1903_v0 }
 0x88c   :  { %6353 = vmatmul.mubr.msk.f32.vlgmr.msra.gmra.mrb[30].mxu1 %vm1428_vm4, %v1682_v49  ;;  %7155 = vmatprep.subr.bf16.mxu0 %v7436_v8  ;;  %v1934_v49 = vld [vmem:[%s9924_s9 + $0x5c0] sm:$0xff] }
 0x88d   :  { %7146 = vmatpush3.bf16.xpose.msk.msra.mxu1 %vm8588_vm5, %v7144_v3  ;;  %6386 = vmatprep.mubr.msk.f32.mxu1 %vm7438_vm6, %v7437_v37 }
 0x88e   :  { %v7406_v63 = vpop.eup %7405  ;;  %6370 = vmatmul.mubr.msk.f32.vlgmr.msra.gmra.mrb[30].mxu0 %vm1428_vm4, %v1696_v51  ;;  %7147 = vmatprep.subr.bf16.mxu1 %v7436_v8  ;;  %v1941_v51 = vld [vmem:[%s9924_s9 + $0x5f8] sm:$0xff] }
 0x88f   :  { %7158 = vmatpush3.bf16.xpose.msk.msra.mxu0 %vm8588_vm5, %v7156_v54  ;;  %v1489_v7 = vmul.f32 %v7406_v63, %v1485_v25  ;;  %6403 = vmatprep.mubr.msk.f32.mxu0 %vm7438_vm6, %v7437_v37  ;;  %v1935_v54 = vld [vmem:[%s9924_s9 + $0x5c8] sm:$0xff]  ;;  %v1942_v25 = vld [vmem:[%s9924_s9 + $0x600] sm:$0xff] }
 0x890   :  { %7159 = vmatprep.subr.bf16.mxu0 %v7436_v8  ;;  %v7196_v63 = vpack.c.bf16 %v1935_v54, %v1934_v49  ;;  %v7208_v4 = vpack.c.bf16 %v1942_v25, %v1941_v51  ;;  %v1962_v25 = vld [vmem:[%s9924_s9 + $0x6a0] sm:$0xff] }
 0x891   :  { %1519 = vperm.xlu0 %7293, %v1489_v7   ;;  %v1497_v13 = vmul.f32 %v1489_v7, %v9314_v17  ;;  %v1915_v17 = vld [vmem:[%s9924_s9 + $0x528] sm:$0xff]  ;;  %v1937_v7 = vld [vmem:[%s9924_s9 + $0x5d8] sm:$0xff] }
 0x892   :  { %v7164_v27 = vpack.c.bf16 %v1916_v21, %v1915_v17  ;;  %v7212_v21 = vpack.c.bf16 %v1944_v11, %v1943_v5  ;;  %v1965_v5 = vld [vmem:[%s9924_s9 + $0x6b8] sm:$0xff] }
 0x893   :  { %v1501_v15 = vsub.f32 %v1493_v9, %v1497_v13 }
 0x895   :  { %7150 = vmatpush3.bf16.xpose.msk.msra.mxu1 %vm8588_vm5, %v7148_v12  ;;  %1543 = vperm.xlu0 %7293, %v1501_v15   ;;  %v7200_v15 = vpack.c.bf16 %v1937_v7, %v1936_v6 }
 0x896   :  { %7151 = vmatprep.subr.bf16.mxu1 %v7436_v8 }
 0x897   :  { %7162 = vmatpush3.bf16.xpose.msk.msra.mxu0 %vm8588_vm5, %v7160_v18 }
 0x898   :  { %7163 = vmatprep.subr.bf16.mxu0 %v7436_v8 }
 0x89d   :  { %7154 = vmatpush3.bf16.xpose.msk.msra.mxu1 %vm8588_vm5, %v7152_v22 }
 0x89e   :  { %6384 = vmatprep.subr.mxu1 %v7437_v37 }
 0x89f   :  { %7166 = vmatpush3.bf16.xpose.msk.msra.mxu0 %vm8588_vm5, %v7164_v27  ;;  %v1946_v27 = vld [vmem:[%s9924_s9 + $0x620] sm:$0xff] }
 0x8a0   :  { %6401 = vmatprep.subr.mxu0 %v7437_v37 }
 0x8a5   :  { %6385 = vmatpush3.xpose.msk.msra.mxu1 %vm1428_vm4, %v1910_v55  ;;  %v1947_v55 = vld [vmem:[%s9924_s9 + $0x628] sm:$0xff] }
 0x8a6   :  { %7167 = vmatprep.subr.bf16.mxu1 %v7436_v8  ;;  %v7216_v29 = vpack.c.bf16 %v1947_v55, %v1946_v27  ;;  %v1966_v55 = vld [vmem:[%s9924_s9 + $0x6c0] sm:$0x3] }
 0x8a7   :  { %6402 = vmatpush3.xpose.msk.msra.mxu0 %vm1428_vm4, %v1917_v44  ;;  %v1954_v44 = vld [vmem:[%s9924_s9 + $0x660] sm:$0xff] }
 0x8a8   :  { %6387 = vmatmul.mubr.msk.f32.vlgmr.msra.gmra.mrb[32].mxu1 %vm1428_vm4, %v1698_v32  ;;  %7179 = vmatprep.subr.bf16.mxu0 %v7436_v8 }
 0x8a9   :  { %7170 = vmatpush3.bf16.xpose.msk.msra.mxu1 %vm8588_vm5, %v7168_v31  ;;  %6420 = vmatprep.mubr.msk.f32.mxu1 %vm7438_vm6, %v7437_v37  ;;  %v7228_v31 = vpack.c.bf16 %v1954_v44, %v1953_v28 }
 0x8aa   :  { %6404 = vmatmul.mubr.msk.f32.vlgmr.msra.gmra.mrb[32].mxu0 %vm1428_vm4, %v1700_v24  ;;  %7171 = vmatprep.subr.bf16.mxu1 %v7436_v8  ;;  %v1949_v24 = vld [vmem:[%s9924_s9 + $0x638] sm:$0xff] }
 0x8ab   :  { %7182 = vmatpush3.bf16.xpose.msk.msra.mxu0 %vm8588_vm5, %v7180_v33  ;;  %6437 = vmatprep.mubr.msk.f32.mxu0 %vm7438_vm6, %v7437_v37  ;;  %v1948_v33 = vld [vmem:[%s9924_s9 + $0x630] sm:$0xff] }
 0x8ac   :  { %7183 = vmatprep.subr.bf16.mxu0 %v7436_v8  ;;  %v7220_v35 = vpack.c.bf16 %v1949_v24, %v1948_v33 }
 0x8b1   :  { %7174 = vmatpush3.bf16.xpose.msk.msra.mxu1 %vm8588_vm5, %v7172_v10  ;;  %v1950_v10 = vld [vmem:[%s9924_s9 + $0x640] sm:$0xff] }
 0x8b2   :  { %7175 = vmatprep.subr.bf16.mxu1 %v7436_v8 }
 0x8b3   :  { %7186 = vmatpush3.bf16.xpose.msk.msra.mxu0 %vm8588_vm5, %v7184_v14  ;;  %v1951_v14 = vld [vmem:[%s9924_s9 + $0x648] sm:$0xff] }
 0x8b4   :  { %7187 = vmatprep.subr.bf16.mxu0 %v7436_v8 }
 0x8b9   :  { %7178 = vmatpush3.bf16.xpose.msk.msra.mxu1 %vm8588_vm5, %v7176_v16 }
 0x8ba   :  { %6418 = vmatprep.subr.mxu1 %v7437_v37 }
 0x8bb   :  { %7190 = vmatpush3.bf16.xpose.msk.msra.mxu0 %vm8588_vm5, %v7188_v45  ;;  %v7224_v45 = vpack.c.bf16 %v1951_v14, %v1950_v10  ;;  %v5019_v10 = vld [vmem:[%s9926_s11 + $0x10] sm:$0xff]  ;;  %v5020_v14 = vld [vmem:[%s9926_s11 + $0x18] sm:$0xff] }
 0x8bc   :  { %6435 = vmatprep.subr.mxu0 %v7437_v37 }
 0x8c1   :  { %6419 = vmatpush3.xpose.msk.msra.mxu1 %vm1428_vm4, %v1924_v46 }
 0x8c2   :  { %7191 = vmatprep.subr.bf16.mxu1 %v7436_v8 }
 0x8c3   :  { %6436 = vmatpush3.xpose.msk.msra.mxu0 %vm1428_vm4, %v1931_v48 }
 0x8c4   :  { %7203 = vmatprep.subr.bf16.mxu0 %v7436_v8 }
 0x910   :  { %v1520_v41 = vpop.permute.xlu0 %1519 }
 0x911   :  { %v1525_v2 = vmul.f32 %v1520_v41, %v8904_v50  ;;  %v1940_v50 = vld [vmem:[%s9924_s9 + $0x5f0] sm:$0xff] }
 0x912   :  { %v7204_v53 = vpack.c.bf16 %v1940_v50, %v1939_v62  ;;  %v1952_v62 = vld [vmem:[%s9924_s9 + $0x650] sm:$0x3]  ;;  %v1961_v50 = vld [vmem:[%s9924_s9 + $0x698] sm:$0xff] }
 0x914   :  { %v1544_v56 = vpop.permute.xlu0 %1543 }
 0x915   :  { %v9632_v58 = vadd.f32 %v1544_v56, %v1525_v2  ;;  %v7236_v56 = vpack.c.bf16 %v1958_v57, %v1957_v42  ;;  %v5021_v42 = vld [vmem:[%s9926_s11 + $0x20] sm:$0xff]  ;;  %v5022_v57 = vld [vmem:[%s9926_s11 + $0x28] sm:$0xff] }
 0x917   :  { %v1708_v38 = vrot.slane %v9632_v58, %v8675_v47  ;;  %v1701_v60 = vcombine.high %v9632_v58, %v9632_v58  ;;  %v1960_v58 = vld [vmem:[%s9924_s9 + $0x690] sm:$0xff] }
 0x919   :  { %v1716_v0 = vcombine.high %v1708_v38, %v1708_v38  ;;  %v1724_v1 = vrot.slane %v1708_v38, %v8675_v47  ;;  %v1715_v38 = vrot.slane %v1701_v60, %v8675_v47 }
 0x91b   :  { %v1738_v3 = vrot.slane %v1716_v0, %v8675_v47  ;;  %6421 = vmatmul.mubr.msk.f32.vlgmr.msra.gmra.mrb[34].mxu1 %vm1428_vm4, %v1724_v1  ;;  %v1746_v30 = vcombine.high %v1724_v1, %v1724_v1  ;;  %v1959_v0 = vld [vmem:[%s9924_s9 + $0x688] sm:$0x3]  ;;  %v1731_v49 = vrot.slane %v1715_v38, %v8675_v47 }
 0x91c   :  { %7194 = vmatpush3.bf16.xpose.msk.msra.mxu1 %vm8588_vm5, %v7192_v52  ;;  %6454 = vmatprep.mubr.msk.f32.mxu1 %vm7438_vm6, %v7437_v37  ;;  %v1717_v52 = vcombine.high %v1715_v38, %v1715_v38  ;;  %v1967_v1 = vld [vmem:[%s9924_s9 + $0x6c8] sm:$0xff] }
 0x91d   :  { %6438 = vmatmul.mubr.msk.f32.vlgmr.msra.gmra.mrb[34].mxu0 %vm1428_vm4, %v1738_v3  ;;  %7195 = vmatprep.subr.bf16.mxu1 %v7436_v8  ;;  %v1748_v32 = vcombine.high %v1738_v3, %v1738_v3  ;;  %v7240_v3 = vpack.c.bf16 %v1961_v50, %v1960_v58  ;;  %v1747_v28 = vcombine.high %v1731_v49, %v1731_v49 }
 0x91e   :  { %7206 = vmatpush3.bf16.xpose.msk.msra.mxu0 %vm8588_vm5, %v7204_v53  ;;  %6471 = vmatprep.mubr.msk.f32.mxu0 %vm7438_vm6, %v7437_v37  ;;  %v1968_v53 = vld [vmem:[%s9924_s9 + $0x6d0] sm:$0xff]  ;;  %v1745_v51 = vrot.slane %v1717_v52, %v8675_v47  ;;  %v1963_v47 = vld [vmem:[%s9924_s9 + $0x6a8] sm:$0xff] }
 0x91f   :  { %7207 = vmatprep.subr.bf16.mxu0 %v7436_v8  ;;  %v7252_v54 = vpack.c.bf16 %v1968_v53, %v1967_v1  ;;  %v7244_v6 = vpack.c.bf16 %v1963_v47, %v1962_v25 }
 0x920   :  { %v1749_v44 = vcombine.high %v1745_v51, %v1745_v51 }
 0x924   :  { %7198 = vmatpush3.bf16.xpose.msk.msra.mxu1 %vm8588_vm5, %v7196_v63  ;;  %v1969_v63 = vld [vmem:[%s9924_s9 + $0x6d8] sm:$0xff] }
 0x925   :  { %7199 = vmatprep.subr.bf16.mxu1 %v7436_v8 }
 0x926   :  { %7210 = vmatpush3.bf16.xpose.msk.msra.mxu0 %vm8588_vm5, %v7208_v4  ;;  %v1970_v4 = vld [vmem:[%s9924_s9 + $0x6e0] sm:$0xff] }
 0x927   :  { %v3551_v9 = vpop.f32.mrb[26].mxu1  ;;  %7211 = vmatprep.subr.bf16.mxu0 %v7436_v8  ;;  %v7256_v7 = vpack.c.bf16 %v1970_v4, %v1969_v63 }
 0x928   :  { %v4982_v12 = vsel %vm4950_vm7, %v3551_v9, 0.0  ;;  %v6286_v13 = vpop.f32.mrb[27].mxu1  ;;  %v1964_v9 = vld [vmem:[%s9924_s9 + $0x6b0] sm:$0xff] }
 0x929   :  { %v4983_v18 = vadd.f32 %v4982_v12, %v9443_v39  ;;  %v3644_v19 = vpop.f32.mrb[26].mxu0  ;;  %v1938_v39 = vld [vmem:[%s9924_s9 + $0x5e0] sm:$0x3]  ;;  %v1971_v12 = vld [vmem:[%s9924_s9 + $0x6e8] sm:$0xff]  ;;  %v1972_v13 = vld [vmem:[%s9924_s9 + $0x6f0] sm:$0xff] }
 0x92a   :  { %v4984_v20 = vsel %vm4950_vm7, %v3644_v19, 0.0  ;;  %v6303_v17 = vpop.f32.mrb[27].mxu0  ;;  %v7248_v19 = vpack.c.bf16 %v1965_v5, %v1964_v9 }
 0x92b   :  { %v4985_v22 = vadd.f32 %v4984_v20, %v4983_v18 }
 0x92c   :  { %7202 = vmatpush3.bf16.xpose.msk.msra.mxu1 %vm8588_vm5, %v7200_v15 }
 0x92d   :  { %6452 = vmatprep.subr.mxu1 %v7437_v37 }
 0x92e   :  { %7214 = vmatpush3.bf16.xpose.msk.msra.mxu0 %vm8588_vm5, %v7212_v21 }
 0x92f   :  { %6469 = vmatprep.subr.mxu0 %v7437_v37 }
 0x934   :  { %6453 = vmatpush3.xpose.msk.msra.mxu1 %vm1428_vm4, %v1938_v39  ;;  %v7260_v39 = vpack.c.bf16 %v1972_v13, %v1971_v12 }
 0x935   :  { %7215 = vmatprep.subr.bf16.mxu1 %v7436_v8 }
 0x936   :  { %6470 = vmatpush3.xpose.msk.msra.mxu0 %vm1428_vm4, %v1945_v26  ;;  %v1973_v26 = vld [vmem:[%s9924_s9 + $0x6f8] sm:$0x3] }
 0x937   :  { %6455 = vmatmul.mubr.msk.f32.vlgmr.msra.gmra.mrb[36].mxu1 %vm1428_vm4, %v1746_v30  ;;  %7227 = vmatprep.subr.bf16.mxu0 %v7436_v8 }
 0x938   :  { %7218 = vmatpush3.bf16.xpose.msk.msra.mxu1 %vm8588_vm5, %v7216_v29  ;;  %6488 = vmatprep.mubr.msk.f32.mxu1 %vm7438_vm6, %v7437_v37 }
 0x939   :  { %6472 = vmatmul.mubr.msk.f32.vlgmr.msra.gmra.mrb[36].mxu0 %vm1428_vm4, %v1748_v32  ;;  %7219 = vmatprep.subr.bf16.mxu1 %v7436_v8 }
 0x93a   :  { %7230 = vmatpush3.bf16.xpose.msk.msra.mxu0 %vm8588_vm5, %v7228_v31  ;;  %6505 = vmatprep.mubr.msk.f32.mxu0 %vm7438_vm6, %v7437_v37 }
 0x93b   :  { %7231 = vmatprep.subr.bf16.mxu0 %v7436_v8 }
 0x940   :  { %7222 = vmatpush3.bf16.xpose.msk.msra.mxu1 %vm8588_vm5, %v7220_v35  ;;  %v5018_v35 = vld [vmem:[%s9926_s11 + $0x8] sm:$0xff] }
 0x941   :  { %7223 = vmatprep.subr.bf16.mxu1 %v7436_v8 }
 0x942   :  { %7234 = vmatpush3.bf16.xpose.msk.msra.mxu0 %vm8588_vm5, %v7232_v23  ;;  %v7264_v23 = vpack.c.bf16 %v5018_v35, %v5017_v40 }
 0x943   :  { %v3737_v36 = vpop.f32.mrb[28].mxu1  ;;  %7235 = vmatprep.subr.bf16.mxu0 %v7436_v8 }
 0x944   :  { %v4986_v43 = vsel %vm4950_vm7, %v3737_v36, 0.0  ;;  %v6320_v16 = vpop.f32.mrb[29].mxu1  ;;  %v7267_v36 = vpack.c.bf16 %v5020_v14, %v5019_v10 }
 0x945   :  { %v4987_v46 = vadd.f32 %v4986_v43, %v4985_v22  ;;  %v3830_v48 = vpop.f32.mrb[28].mxu0  ;;  %v7270_v43 = vpack.c.bf16 %v5022_v57, %v5021_v42  ;;  %v5023_v16 = vld [vmem:[%s9926_s11 + $0x30] sm:$0x3] }
 0x946   :  { %v4988_v41 = vsel %vm4950_vm7, %v3830_v48, 0.0  ;;  %v6337_v2 = vpop.f32.mrb[29].mxu0 }
 0x947   :  { %v4989_v61 = vadd.f32 %v4988_v41, %v4987_v46 }
 0x948   :  { %7226 = vmatpush3.bf16.xpose.msk.msra.mxu1 %vm8588_vm5, %v7224_v45 }
 0x949   :  { %6486 = vmatprep.subr.mxu1 %v7437_v37 }
 0x94a   :  { %7238 = vmatpush3.bf16.xpose.msk.msra.mxu0 %vm8588_vm5, %v7236_v56 }
 0x94b   :  { %6503 = vmatprep.subr.mxu0 %v7437_v37 }
 0x950   :  { %6487 = vmatpush3.xpose.msk.msra.mxu1 %vm1428_vm4, %v1952_v62 }
 0x951   :  { %7239 = vmatprep.subr.bf16.mxu1 %v7436_v8 }
 0x952   :  { %6504 = vmatpush3.xpose.msk.msra.mxu0 %vm1428_vm4, %v1959_v0 }
 0x953   :  { %6489 = vmatmul.mubr.msk.f32.vlgmr.msra.gmra.mrb[38].mxu1 %vm1428_vm4, %v1731_v49  ;;  %7251 = vmatprep.subr.bf16.mxu0 %v7436_v8 }
 0x954   :  { %7242 = vmatpush3.bf16.xpose.msk.msra.mxu1 %vm8588_vm5, %v7240_v3  ;;  %6522 = vmatprep.mubr.msk.f32.mxu1 %vm7438_vm6, %v7437_v37 }
 0x955   :  { %6506 = vmatmul.mubr.msk.f32.vlgmr.msra.gmra.mrb[38].mxu0 %vm1428_vm4, %v1745_v51  ;;  %7243 = vmatprep.subr.bf16.mxu1 %v7436_v8 }
 0x956   :  { %7254 = vmatpush3.bf16.xpose.msk.msra.mxu0 %vm8588_vm5, %v7252_v54  ;;  %6539 = vmatprep.mubr.msk.f32.mxu0 %vm7438_vm6, %v7437_v37 }
 0x957   :  { %7255 = vmatprep.subr.bf16.mxu0 %v7436_v8 }
 0x95c   :  { %7246 = vmatpush3.bf16.xpose.msk.msra.mxu1 %vm8588_vm5, %v7244_v6 }
 0x95d   :  { %7247 = vmatprep.subr.bf16.mxu1 %v7436_v8 }
 0x95e   :  { %7258 = vmatpush3.bf16.xpose.msk.msra.mxu0 %vm8588_vm5, %v7256_v7 }
 0x95f   :  { %v3923_v11 = vpop.f32.mrb[30].mxu1  ;;  %7259 = vmatprep.subr.bf16.mxu0 %v7436_v8 }
 0x960   :  { %v4990_v15 = vsel %vm4950_vm7, %v3923_v11, 0.0  ;;  %v6354_v18 = vpop.f32.mrb[31].mxu1  ;;  %v5014_v11 = vld [vmem:[%s9925_s10] sm:$0x1]  ;;  %s7412_s10 = scalar_lea.vmem %s5112_s16, 32 }
 0x961   :  { %v4991_v20 = vadd.f32 %v4990_v15, %v4989_v61  ;;  %v4016_v17 = vpop.f32.mrb[30].mxu0  ;;  %p7414_p2 = scmp.lt.s32.totalorder %s7412_s10, %s7408_s17 }
 0x962   :  { %v4992_v21 = vsel %vm4950_vm7, %v4016_v17, 0.0  ;;  %v6371_v22 = vpop.f32.mrb[31].mxu0 }
 0x963   :  { %v4993_v27 = vadd.f32 %v4992_v21, %v4991_v20  ;;  %p7415_p3 = por %p7414_p2, %p7413_p1 }
 0x964   :  { %7250 = vmatpush3.bf16.xpose.msk.msra.mxu1 %vm8588_vm5, %v7248_v19  ;;  %v5024_v19 = vld [vmem:[%s9927_s12] sm:$0x1] }
 0x965   :  { %6520 = vmatprep.subr.mxu1 %v7437_v37  ;;  %p7416_p4 = pnand %p7415_p3, %p7409_p0 }
 0x966   :  { %7262 = vmatpush3.bf16.xpose.msk.msra.mxu0 %vm8588_vm5, %v7260_v39 }
 0x967   :  { %6537 = vmatprep.subr.mxu0 %v7437_v37 }
 0x96c   :  { %6521 = vmatpush3.xpose.msk.msra.mxu1 %vm1428_vm4, %v1966_v55 }
 0x96d   :  { %7263 = vmatprep.subr.bf16.mxu1 %v7436_v8 }
 0x96e   :  { %6538 = vmatpush3.xpose.msk.msra.mxu0 %vm1428_vm4, %v1973_v26 }
 0x96f   :  { %6523 = vmatmul.mubr.msk.f32.vlgmr.msra.gmra.mrb[40].mxu1 %vm1428_vm4, %v1747_v28 }
 0x970   :  { %6556 = vmatprep.mubr.msk.f32.mxu1 %vm7438_vm6, %v7437_v37  ;;  %7265 = vmatpush3.bf16.msra.mxu1 %v7264_v23 }
 0x971   :  { %6540 = vmatmul.mubr.msk.f32.vlgmr.msra.gmra.mrb[40].mxu0 %vm1428_vm4, %v1749_v44  ;;  %7266 = vmatprep.subr.bf16.mxu1 %v7436_v8 }
 0x974   :  { %7268 = vmatpush3.bf16.msra.mxu1 %v7267_v36 }
 0x975   :  { %7269 = vmatprep.subr.bf16.mxu1 %v7436_v8 }
 0x978   :  { %7271 = vmatpush3.bf16.msra.mxu1 %v7270_v43 }
 0x979   :  { %6554 = vmatprep.subr.mxu1 %v7437_v37 }
 0x97b   :  { %v4109_v59 = vpop.f32.mrb[32].mxu1 }
 0x97c   :  { %v4994_v29 = vsel %vm4950_vm7, %v4109_v59, 0.0  ;;  %v6388_v30 = vpop.f32.mrb[33].mxu1  ;;  %6555 = vmatpush3.msk.msra.mxu1 %vm5029_vm8, %v5023_v16 }
 0x97d   :  { %v4995_v31 = vadd.f32 %v4994_v29, %v4993_v27  ;;  %v4202_v32 = vpop.f32.mrb[32].mxu0 }
 0x97e   :  { %v4996_v33 = vsel %vm4950_vm7, %v4202_v32, 0.0  ;;  %v6405_v24 = vpop.f32.mrb[33].mxu0 }
 0x97f   :  { %v4997_v34 = vadd.f32 %v4996_v33, %v4995_v31 }
 0x9ee   :  { %v4295_v45 = vpop.f32.mrb[34].mxu1 }
 0x9ef   :  { %v4998_v8 = vsel %vm4950_vm7, %v4295_v45, 0.0  ;;  %v6422_v46 = vpop.f32.mrb[35].mxu1 }
 0x9f0   :  { %v4999_v48 = vadd.f32 %v4998_v8, %v4997_v34  ;;  %v4388_v41 = vpop.f32.mrb[34].mxu0 }
 0x9f1   :  { %v5000_v2 = vsel %vm4950_vm7, %v4388_v41, 0.0  ;;  %v6439_v56 = vpop.f32.mrb[35].mxu0 }
 0x9f2   :  { %v5001_v60 = vadd.f32 %v5000_v2, %v4999_v48 }
 0xa0a   :  { %v4481_v61 = vpop.f32.mrb[36].mxu1 }
 0xa0b   :  { %v5002_v38 = vsel %vm4950_vm7, %v4481_v61, 0.0  ;;  %v6456_v37 = vpop.f32.mrb[37].mxu1 }
 0xa0c   :  { %v5003_v62 = vadd.f32 %v5002_v38, %v5001_v60  ;;  %v4574_v58 = vpop.f32.mrb[36].mxu0 }
 0xa0d   :  { %v5004_v50 = vsel %vm4950_vm7, %v4574_v58, 0.0  ;;  %v6473_v52 = vpop.f32.mrb[37].mxu0 }
 0xa0e   :  { %v5005_v0 = vadd.f32 %v5004_v50, %v5003_v62 }
 0xa26   :  { %v4667_v1 = vpop.f32.mrb[38].mxu1 }
 0xa27   :  { %v5006_v53 = vsel %vm4950_vm7, %v4667_v1, 0.0  ;;  %v6490_v3 = vpop.f32.mrb[39].mxu1 }
 0xa28   :  { %v5007_v49 = vadd.f32 %v5006_v53, %v5005_v0  ;;  %v4760_v54 = vpop.f32.mrb[38].mxu0 }
 0xa29   :  { %v5008_v51 = vsel %vm4950_vm7, %v4760_v54, 0.0  ;;  %v6507_v25 = vpop.f32.mrb[39].mxu0 }
 0xa2a   :  { %v5009_v47 = vadd.f32 %v5008_v51, %v5007_v49 }
 0xa42   :  { %v4853_v63 = vpop.f32.mrb[40].mxu1 }
 0xa43   :  { %v5010_v4 = vsel %vm4950_vm7, %v4853_v63, 0.0  ;;  %v6524_v6 = vpop.f32.mrb[41].mxu1 }
 0xa44   :  { %v5011_v7 = vadd.f32 %v5010_v4, %v5009_v47  ;;  %v4946_v9 = vpop.f32.mrb[40].mxu0 }
 0xa45   :  { %v5012_v5 = vsel %vm4950_vm7, %v4946_v9, 0.0  ;;  %v6541_v12 = vpop.f32.mrb[41].mxu0 }
 0xa46   :  { %v5013_v13 = vadd.f32 %v5012_v5, %v5011_v7 }
 0xa48   :  { %v5015_v15 = vadd.f32 %v5014_v11, %v5013_v13 }
 0xa4a   :  { %v5016_v18 = vmax.f32 %v5015_v15, 0.0 }
 0xa4c   :  { %6557 = vmatmul.mubr.msk.f32.vlgmr.msra.gmra.mrb[42].mxu1 %vm5025_vm9, %v5016_v18 }
 0xb1f   :  { %v5099_v20 = vpop.f32.mrb[42].mxu1 }
 0xb20   :  { %v5100_v17 = vadd.f32 %v5099_v20, %v5024_v19  ;;  %v6558_v21 = vpop.f32.mrb[43].mxu1 }
 0xb22   :  { %5104 = vst.msk [vmem:[#allocation2] sm:$0x1] %vm5103_vm10, %v5100_v17 }
 0xb23   :  { %7419 = shalt.err (!%p7416_p4)
}
 0xb24   :  { %s7420_s12 = scalar_lea.hbm %s9929_s14, 16 }
 0xb25   :  { %p7421_p5 = scmp.ne.s32.totalorder %s9929_s14, %s7420_s12  ;;  %p7424_p6 = scmp.lt.u32.totalorder %s7420_s12, %s9929_s14 }
 0xb27   :  { %p7426_p7 = pnand %p7424_p6, %p7421_p5 }
 0xb29   :  { %7429 = shalt.err (!%p7426_p7)
}
 0xb2a   :  { %5114 = dma.vmem_to_hbm [thread:$0]  %s5112_s16, 16, %s9929_s14, [#allocation3]  }
 0xb2b   :  { %7430 = dma.done.wait [#allocation3], 16  }
 0xb2c   :  { %7431 = vsyncadd [#allocation3], 4294967280 }
 0xb2d   :  { %5118 = vsyncpa [#allocation3], 1 }

</bundles_post_ra>
